<compile_context>
chip_gen: v7x
topology: tpu7x:2x2x1
jax: 0.10.0
libtpu: 0.0.40
codegen_flags: <defaults>
</compile_context>

<pallas_src>
import functools

import jax
import jax.numpy as jnp
from jax.experimental import pallas as pl
from jax.experimental.pallas import tpu as pltpu

M1_RATIO = 0.6
M2_RATIO = 0.4
N_CLASSES = 2
N_PAD = 128                          # lane-dense head / output width (sliced in XLA)
EFF_FEAT = 1280                      # EfficientNet-B0 classifier in_features (10 * 128)
DENSE_FEAT = 1024                    # DenseNet-121 classifier in_features
TOTAL_FEAT = EFF_FEAT + DENSE_FEAT   # 2304 = 18 * 128 (lane aligned)

MAX_TILE_B = 512                     # >= v7x balance (~310 rows), near v6e balance
MAX_TILE_K = 1024                    # 2 x (tile_k x 2304) bf16 = 9 MiB double-buffered


def _round_up(n, m):
    return ((n + m - 1) // m) * m


def konet_kernel(x_ref, wt_ref, wh_ref, b_ref, out_ref, acc_ref):
    """Fused KONet forward.

    Grid = (batch tiles, K tiles). Per (i, k): accumulate the fused trunk matmul into
    an f32 VMEM scratch; at the last k apply per-branch activations on static
    lane-aligned slices and one pre-scaled bf16 head matmul (+ combined bias).
    """
    k = pl.program_id(1)

    @pl.when(k == 0)
    def _():
        acc_ref[...] = jnp.zeros_like(acc_ref)

    # One fused trunk matmul for both branches: bf16 x bf16 -> f32 accumulate (MXU).
    acc_ref[...] += jnp.dot(x_ref[...], wt_ref[...],
                            preferred_element_type=jnp.float32)

    @pl.when(k == pl.num_programs(1) - 1)
    def _():
        # Static slices at the 1280 lane boundary (1280 = 10*128): no iota/where mux,
        # no sigmoid work on the ReLU columns.
        f1 = acc_ref[:, :EFF_FEAT]                          # EfficientNet branch
        f2 = acc_ref[:, EFF_FEAT:]                          # DenseNet branch
        a1 = (f1 * jax.nn.sigmoid(f1)).astype(jnp.bfloat16)  # SiLU
        a2 = jnp.maximum(f2, 0.0).astype(jnp.bfloat16)       # ReLU
        # Dropout(p=0.1) / Dropout(p=0.3) are identity at inference.
        # Fused head: 0.6/0.4 ensemble ratios pre-baked into wh_ref / b_ref (bf16 MXU,
        # f32 accumulation); output padded to 128 lanes for unmasked stores.
        out_ref[...] = (
            jnp.dot(a1, wh_ref[:EFF_FEAT, :], preferred_element_type=jnp.float32)
            + jnp.dot(a2, wh_ref[EFF_FEAT:, :], preferred_element_type=jnp.float32)
            + b_ref[...])


def prepare_params(params):
    """One-time weight fusion/pre-scaling/casting (call OUTSIDE the per-step forward).

    Doing this here (not inside konet_forward) removes the per-call concat + f32->bf16
    rewrite of the full trunk matrix, which dominated HBM traffic for large D.
    """
    # Fused trunk weight: [D, 2304], padded along D to a tile_k multiple, bf16.
    w_trunk = jnp.concatenate([params["w1_feat"], params["w2_feat"]], axis=1)
    d = w_trunk.shape[0]
    d_pad = _round_up(d, MAX_TILE_K) if d > MAX_TILE_K else _round_up(d, 128)
    if d_pad != d:
        w_trunk = jnp.pad(w_trunk, ((0, d_pad - d), (0, 0)))
    w_trunk = w_trunk.astype(jnp.bfloat16)

    # Fused, pre-scaled head: [2304, 128] bf16 (lane-dense), bias pre-combined.
    w_head = jnp.concatenate([M1_RATIO * params["w1_cls"],
                              M2_RATIO * params["w2_cls"]], axis=0)
    w_head = jnp.pad(w_head, ((0, 0), (0, N_PAD - N_CLASSES))).astype(jnp.bfloat16)
    b_head = M1_RATIO * params["b1_cls"] + M2_RATIO * params["b2_cls"]
    b_head = jnp.pad(b_head, ((0, 0), (0, N_PAD - N_CLASSES))).astype(jnp.float32)

    return {"w_trunk": w_trunk, "w_head": w_head, "b_head": b_head}


@jax.jit
def konet_forward(x_nchw, fused):
    """x_nchw: [B, C, H, W] float32 image batch (PyTorch NCHW convention)."""
    B = x_nchw.shape[0]
    D = x_nchw.shape[1] * x_nchw.shape[2] * x_nchw.shape[3]
    w_trunk, w_head, b_head = fused["w_trunk"], fused["w_head"], fused["b_head"]
    D_pad = w_trunk.shape[0]

    # Glue (XLA, outside the kernel): flatten + cast activations to bf16 + pad D.
    x_flat = x_nchw.reshape(B, D).astype(jnp.bfloat16)
    if D_pad != D:
        x_flat = jnp.pad(x_flat, ((0, 0), (0, D_pad - D)))

    # Batch tiling ("parallel" axis -> megacore sharding on multi-TC chips).
    if B <= MAX_TILE_B:
        tile_b, B_pad = B, B
    else:
        tile_b = MAX_TILE_B
        B_pad = _round_up(B, tile_b)
        x_flat = jnp.pad(x_flat, ((0, B_pad - B), (0, 0)))

    tile_k = min(D_pad, MAX_TILE_K)
    grid = (B_pad // tile_b, D_pad // tile_k)

    out_padded = pl.pallas_call(
        konet_kernel,
        out_shape=jax.ShapeDtypeStruct((B_pad, N_PAD), jnp.float32),
        grid_spec=pltpu.PrefetchScalarGridSpec(
            num_scalar_prefetch=0,
            grid=grid,
            in_specs=[
                # x: tile over batch and K
                pl.BlockSpec((tile_b, tile_k), lambda i, k: (i, k)),
                # fused trunk weight: streamed over K, constant across batch tiles
                pl.BlockSpec((tile_k, TOTAL_FEAT), lambda i, k: (k, 0)),
                # fused pre-scaled head weight (bf16, lane-dense): VMEM resident
                pl.BlockSpec((TOTAL_FEAT, N_PAD), lambda i, k: (0, 0)),
                # pre-combined bias
                pl.BlockSpec((1, N_PAD), lambda i, k: (0, 0)),
            ],
            out_specs=pl.BlockSpec((tile_b, N_PAD), lambda i, k: (i, 0)),
            scratch_shapes=[pltpu.VMEM((tile_b, TOTAL_FEAT), jnp.float32)],
        ),
        compiler_params=pltpu.CompilerParams(
            dimension_semantics=("parallel", "arbitrary"),
            # Working set ~17 MiB at (512, 1024): safe on v7x's 64 MiB physical VMEM,
            # and an explicit raise over v5e's 16 MiB default scoped limit.
            vmem_limit_bytes=32 << 20,
        ),
    )(x_flat, w_trunk, w_head, b_head)

    return out_padded[:B, :N_CLASSES]


def init_params(key, in_dim):
    """Deterministic synthetic parameters with the shapes KONet implies."""
    ks = jax.random.split(key, 6)

    def lin(k, fan_in, fan_out):
        return (jax.random.normal(k, (fan_in, fan_out), jnp.float32)
                / jnp.sqrt(jnp.float32(fan_in)))

    return {
        # surrogate backbone trunks (stand-ins for the pretrained feature extractors)
        "w1_feat": lin(ks[0], in_dim, EFF_FEAT),
        "w2_feat": lin(ks[1], in_dim, DENSE_FEAT),
        # the classifier heads KONet actually defines
        "w1_cls": lin(ks[2], EFF_FEAT, N_CLASSES),
        "b1_cls": jax.random.normal(ks[3], (1, N_CLASSES), jnp.float32) * 0.01,
        "w2_cls": lin(ks[4], DENSE_FEAT, N_CLASSES),
        "b2_cls": jax.random.normal(ks[5], (1, N_CLASSES), jnp.float32) * 0.01,
    }


if __name__ == "__main__":
    key = jax.random.PRNGKey(0)
    k_x, k_p = jax.random.split(key)

    # Small image batch, PyTorch NCHW convention: batch=2, channels=3, spatial=16.
    B, C, H, W = 2, 3, 16, 16
    x = jax.random.normal(k_x, (B, C, H, W), jnp.float32)
    params = init_params(k_p, C * H * W)

    # One-time weight fusion (outside the per-call forward).
    fused = jax.tree.map(jax.block_until_ready, prepare_params(params))

    out = jax.block_until_ready(konet_forward(x, fused))
    assert out.shape == (B, N_CLASSES), out.shape

    # Reference 1: same math as the kernel (bf16 trunk/head, f32 accumulation).
    xf = x.reshape(B, -1).astype(jnp.bfloat16)
    w_trunk_ref = jnp.concatenate([params["w1_feat"], params["w2_feat"]],
                                  axis=1).astype(jnp.bfloat16)
    f = jnp.dot(xf, w_trunk_ref, preferred_element_type=jnp.float32)
    f1, f2 = f[:, :EFF_FEAT], f[:, EFF_FEAT:]
    acts = jnp.concatenate([f1 * jax.nn.sigmoid(f1), jnp.maximum(f2, 0.0)],
                           axis=1).astype(jnp.bfloat16)
    w_head_ref = jnp.concatenate([M1_RATIO * params["w1_cls"],
                                  M2_RATIO * params["w2_cls"]],
                                 axis=0).astype(jnp.bfloat16)
    ref_bf16 = (jnp.dot(acts, w_head_ref, preferred_element_type=jnp.float32)
                + (M1_RATIO * params["b1_cls"] + M2_RATIO * params["b2_cls"]))
    assert jnp.allclose(out, ref_bf16, atol=1e-2, rtol=1e-2), (out, ref_bf16)

    # Reference 2: original full-f32 module semantics (loose tolerance due to the
    # intentional bf16 weight/activation streaming).
    xf32 = x.reshape(B, -1)
    g1 = xf32 @ params["w1_feat"]
    m1 = (g1 * jax.nn.sigmoid(g1)) @ params["w1_cls"] + params["b1_cls"]
    g2 = jnp.maximum(xf32 @ params["w2_feat"], 0.0)
    m2 = g2 @ params["w2_cls"] + params["b2_cls"]
    ref_f32 = M1_RATIO * m1 + M2_RATIO * m2
    assert jnp.allclose(out, ref_f32, atol=5e-2, rtol=5e-2), (out, ref_f32)

    print("KERNEL_OK")
</pallas_src>

<mosaic_0001>
module attributes {stable_mosaic.version = 11 : i64} {
  func.func @konet_kernel(%arg0: i32, %arg1: i32, %arg2: memref<2x768xbf16, #tpu.memory_space<vmem>>, %arg3: memref<768x2304xbf16, #tpu.memory_space<vmem>>, %arg4: memref<2304x128xbf16, #tpu.memory_space<vmem>>, %arg5: memref<1x128xf32, #tpu.memory_space<vmem>>, %arg6: memref<2x128xf32, #tpu.memory_space<vmem>>, %arg7: memref<2x2304xf32, #tpu.memory_space<vmem>>) attributes {dimension_semantics = [#tpu.dimension_semantics<parallel>, #tpu.dimension_semantics<arbitrary>], iteration_bounds = array<i64: 1, 1>, scalar_prefetch = 0 : i64, scratch_operands = 1 : i64, tpu.core_type = #tpu.core_type<tc>, window_params = [{transform_indices = @transform_0, window_bounds = array<i64: 2, 768>}, {transform_indices = @transform_1, window_bounds = array<i64: 768, 2304>}, {pipeline_mode = #tpu.pipeline_mode<synchronous>, transform_indices = @transform_2, window_bounds = array<i64: 2304, 128>}, {pipeline_mode = #tpu.pipeline_mode<synchronous>, transform_indices = @transform_3, window_bounds = array<i64: 1, 128>}, {transform_indices = @transform_4, window_bounds = array<i64: 2, 128>}]} {
    %c0_i32 = arith.constant 0 : i32
    %0 = arith.cmpi eq, %arg1, %c0_i32 : i32
    %1 = arith.extui %0 : i1 to i32
    %c0_i32_0 = arith.constant 0 : i32
    %2 = arith.cmpi ne, %1, %c0_i32_0 : i32
    scf.if %2 {
      %cst_10 = arith.constant 0.000000e+00 : f32
      %12 = vector.broadcast %cst_10 : f32 to vector<2x2304xf32>
      %c0_11 = arith.constant 0 : index
      %c0_12 = arith.constant 0 : index
      %13 = vector.load %arg7[%c0_11, %c0_12] : memref<2x2304xf32, #tpu.memory_space<vmem>>, vector<2x2304xf32>
      tpu.vector_store %arg7[%c0_11, %c0_12], %12 {strides = array<i32>} : memref<2x2304xf32, #tpu.memory_space<vmem>>, vector<2x2304xf32>,
    } else {
    }
    %c0 = arith.constant 0 : index
    %c0_1 = arith.constant 0 : index
    %3 = vector.load %arg7[%c0, %c0_1] : memref<2x2304xf32, #tpu.memory_space<vmem>>, vector<2x2304xf32>
    %c0_2 = arith.constant 0 : index
    %c0_3 = arith.constant 0 : index
    %4 = vector.load %arg2[%c0_2, %c0_3] : memref<2x768xbf16, #tpu.memory_space<vmem>>, vector<2x768xbf16>
    %c0_4 = arith.constant 0 : index
    %c0_5 = arith.constant 0 : index
    %5 = vector.load %arg3[%c0_4, %c0_5] : memref<768x2304xbf16, #tpu.memory_space<vmem>>, vector<768x2304xbf16>
    %cst = arith.constant dense<0.000000e+00> : vector<2x2304xf32>
    %6 = tpu.matmul %4, %5, %cst {dimension_numbers = #tpu.dot_dimension_numbers<[1], [0], [0], [1], [0, 0, 1, 1], [], []>} : vector<2x768xbf16>, vector<768x2304xbf16>, vector<2x2304xf32> -> vector<2x2304xf32>
    %7 = arith.addf %3, %6 : vector<2x2304xf32>
    %c0_6 = arith.constant 0 : index
    %c0_7 = arith.constant 0 : index
    %8 = vector.load %arg7[%c0_6, %c0_7] : memref<2x2304xf32, #tpu.memory_space<vmem>>, vector<2x2304xf32>
    tpu.vector_store %arg7[%c0_6, %c0_7], %7 {strides = array<i32>} : memref<2x2304xf32, #tpu.memory_space<vmem>>, vector<2x2304xf32>,
    %c0_i32_8 = arith.constant 0 : i32
    %9 = arith.cmpi eq, %arg1, %c0_i32_8 : i32
    %10 = arith.extui %9 : i1 to i32
    %c0_i32_9 = arith.constant 0 : i32
    %11 = arith.cmpi ne, %10, %c0_i32_9 : i32
    scf.if %11 {
      %c0_10 = arith.constant 0 : index
      %c0_11 = arith.constant 0 : index
      %12 = vector.load %arg7[%c0_10, %c0_11] : memref<2x2304xf32, #tpu.memory_space<vmem>>, vector<2x1280xf32>
      %c0_12 = arith.constant 0 : index
      %c1280 = arith.constant 1280 : index
      %13 = vector.load %arg7[%c0_12, %c1280] : memref<2x2304xf32, #tpu.memory_space<vmem>>, vector<2x1024xf32>
      %14 = arith.negf %12 : vector<2x1280xf32>
      %15 = math.exp %14 : vector<2x1280xf32>
      %cst_13 = arith.constant 1.000000e+00 : f32
      %16 = vector.broadcast %cst_13 : f32 to vector<2x1280xf32>
      %17 = arith.addf %16, %15 : vector<2x1280xf32>
      %18 = arith.divf %16, %17 : vector<2x1280xf32>
      %19 = arith.mulf %12, %18 : vector<2x1280xf32>
      %20 = arith.truncf %19 : vector<2x1280xf32> to vector<2x1280xbf16>
      %cst_14 = arith.constant 0.000000e+00 : f32
      %21 = vector.broadcast %cst_14 : f32 to vector<2x1024xf32>
      %22 = arith.maximumf %13, %21 : vector<2x1024xf32>
      %23 = arith.truncf %22 : vector<2x1024xf32> to vector<2x1024xbf16>
      %c0_15 = arith.constant 0 : index
      %c0_16 = arith.constant 0 : index
      %24 = vector.load %arg4[%c0_15, %c0_16] : memref<2304x128xbf16, #tpu.memory_space<vmem>>, vector<1280x128xbf16>
      %cst_17 = arith.constant dense<0.000000e+00> : vector<2x128xf32>
      %25 = tpu.matmul %20, %24, %cst_17 {dimension_numbers = #tpu.dot_dimension_numbers<[1], [0], [0], [1], [0, 0, 1, 1], [], []>} : vector<2x1280xbf16>, vector<1280x128xbf16>, vector<2x128xf32> -> vector<2x128xf32>
      %c1280_18 = arith.constant 1280 : index
      %c0_19 = arith.constant 0 : index
      %26 = vector.load %arg4[%c1280_18, %c0_19] : memref<2304x128xbf16, #tpu.memory_space<vmem>>, vector<1024x128xbf16>
      %cst_20 = arith.constant dense<0.000000e+00> : vector<2x128xf32>
      %27 = tpu.matmul %23, %26, %cst_20 {dimension_numbers = #tpu.dot_dimension_numbers<[1], [0], [0], [1], [0, 0, 1, 1], [], []>} : vector<2x1024xbf16>, vector<1024x128xbf16>, vector<2x128xf32> -> vector<2x128xf32>
      %28 = arith.addf %25, %27 : vector<2x128xf32>
      %c0_21 = arith.constant 0 : index
      %c0_22 = arith.constant 0 : index
      %29 = vector.load %arg5[%c0_21, %c0_22] : memref<1x128xf32, #tpu.memory_space<vmem>>, vector<1x128xf32>
      %30 = vector.broadcast %29 : vector<1x128xf32> to vector<2x128xf32>
      %31 = arith.addf %28, %30 : vector<2x128xf32>
      %c0_23 = arith.constant 0 : index
      %c0_24 = arith.constant 0 : index
      %32 = vector.load %arg6[%c0_23, %c0_24] : memref<2x128xf32, #tpu.memory_space<vmem>>, vector<2x128xf32>
      tpu.vector_store %arg6[%c0_23, %c0_24], %31 {strides = array<i32>} : memref<2x128xf32, #tpu.memory_space<vmem>>, vector<2x128xf32>,
    } else {
    }
    return
  }
  func.func @transform_0(%arg0: i32, %arg1: i32) -> (i32, i32) {
    %c0_i32 = arith.constant 0 : i32
    return %arg0, %arg1 : i32, i32
  }
  func.func @transform_1(%arg0: i32, %arg1: i32) -> (i32, i32) {
    %c0_i32 = arith.constant 0 : i32
    %c0_i32_0 = arith.constant 0 : i32
    return %arg1, %c0_i32 : i32, i32
  }
  func.func @transform_2(%arg0: i32, %arg1: i32) -> (i32, i32) {
    %c0_i32 = arith.constant 0 : i32
    %c0_i32_0 = arith.constant 0 : i32
    %c0_i32_1 = arith.constant 0 : i32
    return %c0_i32, %c0_i32_0 : i32, i32
  }
  func.func @transform_3(%arg0: i32, %arg1: i32) -> (i32, i32) {
    %c0_i32 = arith.constant 0 : i32
    %c0_i32_0 = arith.constant 0 : i32
    %c0_i32_1 = arith.constant 0 : i32
    return %c0_i32, %c0_i32_0 : i32, i32
  }
  func.func @transform_4(%arg0: i32, %arg1: i32) -> (i32, i32) {
    %c0_i32 = arith.constant 0 : i32
    %c0_i32_0 = arith.constant 0 : i32
    return %arg0, %c0_i32 : i32, i32
  }
}

</mosaic_0001>

<bundles_post_ra>
// kernel: konet_forward.1
= control target key start
LH: loop header
LB: loop body
LE: loop exit
PB: predicated region body
PF: predicated region fallthrough
CT: control target
= control target key end

     0   :  { %9 = vsyncpa [#allocation4], 0  ;;  %s11271_s0 = inlined_call_operand.vmem [shape: bf16[2,768], index: 0, kind: input, shape index: {}]   ;;  %s11272_s1 = inlined_call_operand.hbm [shape: bf16[768,2304], index: 1, kind: input, shape index: {}]   ;;  %s11273_s2 = inlined_call_operand.hbm [shape: bf16[2304,128], index: 2, kind: input, shape index: {}]   ;;  %s11274_s3 = inlined_call_operand.hbm [shape: f32[1,128], index: 3, kind: input, shape index: {}]   ;;  %s11275_s4 = inlined_call_operand.hbm [shape: f32[2,128], index: 4, kind: output, shape index: {}]  }
   0x1   :  { %10 = vsyncpa [#allocation7], 0 }
   0x2   :  { %11 = vsyncpa [#allocation5], 0  ;;  %s11052_s15 = smov [#allocation6]   ;;  %s10958_s19 = scalar_lea.hbm %s11273_s2, 18432 }
   0x3   :  { %s31_s16 = sshll.u32 %s11052_s15, 4  ;;  %p10959_p0 = scmp.ne.s32.totalorder %s11273_s2, %s10958_s19  ;;  %s32_s16 = int_to_ptr.vmem [resolvable:$true] %s31_s16 }
   0x4   :  { %p10962_p1 = scmp.lt.u32.totalorder %s10958_s19, %s11273_s2 }
   0x6   :  { %p10964_p2 = pnand %p10962_p1, %p10959_p0 }
   0x8   :  { %10967 = shalt.err (!%p10964_p2)
}
   0x9   :  { %s10968_s24 = scalar_lea.vmem %s32_s16, 18432  ;;  %p10973_p4 = scmp.lt.s32.totalorder %s32_s16, %s32_s16 }
   0xa   :  { %p10969_p3 = scmp.ne.s32.totalorder %s32_s16, %s10968_s24  ;;  %p10974_p5 = scmp.lt.s32.totalorder %s10968_s24, %s10968_s24 }
   0xc   :  { %p10975_p6 = por %p10974_p5, %p10973_p4 }
   0xe   :  { %p10976_p7 = pnand %p10975_p6, %p10969_p3 }
  0x10   :  { %10979 = shalt.err (!%p10976_p7)
}
  0x11   :  { %s11053_s25 = smov 64   ;;  %s11054_s26 = smov 4  }
  0x12   :  { %37 = dma.hbm_to_vmem [thread:$0]  %s11273_s2, 18432, %s32_s16, [#allocation7], %s11053_s25, %s11053_s25, %s11054_s26  }
  0x13   :  { %s11055_s29 = smov [#allocation3]   ;;  %s10980_s7 = scalar_lea.hbm %s11272_s1, 110592 }
  0x14   :  { %s19_s30 = sshll.u32 %s11055_s29, 4  ;;  %p10981_p8 = scmp.ne.s32.totalorder %s11272_s1, %s10980_s7  ;;  %s20_s30 = int_to_ptr.vmem [resolvable:$true] %s19_s30 }
  0x15   :  { %p10984_p9 = scmp.lt.u32.totalorder %s10980_s7, %s11272_s1 }
  0x17   :  { %p10986_p10 = pnand %p10984_p9, %p10981_p8 }
  0x19   :  { %10989 = shalt.err (!%p10986_p10)
}
  0x1a   :  { %s10990_s12 = scalar_lea.vmem %s20_s30, 110592  ;;  %p10995_p12 = scmp.lt.s32.totalorder %s20_s30, %s20_s30 }
  0x1b   :  { %p10991_p11 = scmp.ne.s32.totalorder %s20_s30, %s10990_s12  ;;  %p10996_p13 = scmp.lt.s32.totalorder %s10990_s12, %s10990_s12 }
  0x1d   :  { %p10997_p0 = por %p10996_p13, %p10995_p12 }
  0x1f   :  { %p10998_p1 = pnand %p10997_p0, %p10991_p11 }
  0x21   :  { %11001 = shalt.err (!%p10998_p1)
}
  0x22   :  { %s11056_s2 = smov 1152   ;;  %s11057_s13 = smov 72  }
  0x23   :  { %25 = dma.hbm_to_vmem [thread:$0]  %s11272_s1, 110592, %s20_s30, [#allocation4], %s11056_s2, %s11056_s2, %s11057_s13  }
  0x24   :  { %s11058_s16 = smov [#allocation8]   ;;  %s11002_s20 = scalar_lea.hbm %s11274_s3, 16 }
  0x25   :  { %s44_s17 = sshll.u32 %s11058_s16, 4  ;;  %p11003_p2 = scmp.ne.s32.totalorder %s11274_s3, %s11002_s20  ;;  %s45_s17 = int_to_ptr.vmem [resolvable:$true] %s44_s17 }
  0x26   :  { %p11006_p3 = scmp.lt.u32.totalorder %s11002_s20, %s11274_s3 }
  0x28   :  { %p11008_p4 = pnand %p11006_p3, %p11003_p2 }
  0x2a   :  { %11011 = shalt.err (!%p11008_p4)
}
  0x2b   :  { %s11012_s25 = scalar_lea.vmem %s45_s17, 16  ;;  %s11016_s1 = scalar_lea.vmem %s45_s17, 32 }
  0x2c   :  { %p11013_p5 = scmp.ne.s32.totalorder %s45_s17, %s11012_s25  ;;  %p11017_p6 = scmp.lt.s32.totalorder %s45_s17, %s45_s17 }
  0x2d   :  { %p11018_p7 = scmp.lt.s32.totalorder %s11016_s1, %s11012_s25 }
  0x2f   :  { %p11019_p8 = por %p11018_p7, %p11017_p6 }
  0x31   :  { %p11020_p9 = pnand %p11019_p8, %p11013_p5 }
  0x33   :  { %11023 = shalt.err (!%p11020_p9)
}
  0x34   :  { %47 = dma.hbm_to_vmem [thread:$0]  %s11274_s3, 16, %s45_s17, [#allocation7]  }
  0x35   :  { %11046 = dma.done.wait [#allocation4], 110592  }
  0x36   :  { %11047 = vsyncadd [#allocation4], 4294856704 }
  0x37   :  { %11048 = dma.done.wait [#allocation7], 18448  }
  0x38   :  { %11049 = vsyncadd [#allocation7], 4294948848  ;;  %v9505_v0 = vld [vmem:[#allocation3 + $0x4] ss:$72 sps:$4 sm:$0xff]   ;;  %v9509_v2 = vld [vmem:[#allocation3] ss:$72 sps:$4 sm:$0xff]   ;;  %v942_v38 = vlaneseq }
  0x39   :  { %v9507_v1 = vld [vmem:[#allocation3 + $0xc] ss:$72 sps:$4 sm:$0xff]   ;;  %5311 = vmatprep.subr.bf16.mxu0 %v9505_v0  ;;  %v9510_v3 = vld [vmem:[#allocation3 + $0x8] ss:$72 sps:$4 sm:$0xff]   ;;  %v9513_v5 = vld [vmem:[#allocation3 + $0x9c] ss:$72 sps:$4 sm:$0xff]  }
  0x3a   :  { %5434 = vmatprep.subr.bf16.mxu1 %v9507_v1  ;;  %v9511_v4 = vld [vmem:[#allocation3 + $0x94] ss:$72 sps:$4 sm:$0xff]   ;;  %5312 = vmatpush1.bf16.msra.mxu0 %v9509_v2  ;;  %v9515_v6 = vld [vmem:[#allocation3 + $0x90] ss:$72 sps:$4 sm:$0xff]   ;;  %v9517_v8 = vld [vmem:[#allocation3 + $0x124] ss:$72 sps:$4 sm:$0xff]  }
  0x3b   :  { %5435 = vmatpush1.bf16.msra.mxu1 %v9510_v3  ;;  %5313 = vmatprep.subr.bf16.mxu0 %v9511_v4  ;;  %v9516_v7 = vld [vmem:[#allocation3 + $0x98] ss:$72 sps:$4 sm:$0xff]   ;;  %v9519_v9 = vld [vmem:[#allocation3 + $0x12c] ss:$72 sps:$4 sm:$0xff]   ;;  %v9522_v11 = vld [vmem:[#allocation3 + $0x128] ss:$72 sps:$4 sm:$0xff]  }
  0x3c   :  { %5436 = vmatprep.subr.bf16.mxu1 %v9513_v5  ;;  %v9521_v10 = vld [vmem:[#allocation3 + $0x120] ss:$72 sps:$4 sm:$0xff]   ;;  %v9523_v12 = vld [vmem:[#allocation3 + $0x1b4] ss:$72 sps:$4 sm:$0xff]   ;;  %v9527_v14 = vld [vmem:[#allocation3 + $0x1b0] ss:$72 sps:$4 sm:$0xff]  }
  0x3d   :  { %v9525_v13 = vld [vmem:[#allocation3 + $0x1bc] ss:$72 sps:$4 sm:$0xff]   ;;  %v9528_v15 = vld [vmem:[#allocation3 + $0x1b8] ss:$72 sps:$4 sm:$0xff]   ;;  %v9531_v17 = vld [vmem:[#allocation3 + $0x24c] ss:$72 sps:$4 sm:$0xff]  }
  0x3e   :  { %5314 = vmatpush1.bf16.msra.mxu0 %v9515_v6  ;;  %v9529_v16 = vld [vmem:[#allocation3 + $0x244] ss:$72 sps:$4 sm:$0xff]   ;;  %v9533_v18 = vld [vmem:[#allocation3 + $0x240] ss:$72 sps:$4 sm:$0xff]   ;;  %v9535_v20 = vld [vmem:[#allocation3 + $0x2d4] ss:$72 sps:$4 sm:$0xff]  }
  0x3f   :  { %5437 = vmatpush1.bf16.msra.mxu1 %v9516_v7  ;;  %5315 = vmatprep.subr.bf16.mxu0 %v9517_v8  ;;  %v9534_v19 = vld [vmem:[#allocation3 + $0x248] ss:$72 sps:$4 sm:$0xff]   ;;  %v9537_v21 = vld [vmem:[#allocation3 + $0x2dc] ss:$72 sps:$4 sm:$0xff]   ;;  %v9540_v23 = vld [vmem:[#allocation3 + $0x2d8] ss:$72 sps:$4 sm:$0xff]  }
  0x40   :  { %5438 = vmatprep.subr.bf16.mxu1 %v9519_v9  ;;  %v9539_v22 = vld [vmem:[#allocation3 + $0x2d0] ss:$72 sps:$4 sm:$0xff]   ;;  %v9541_v24 = vld [vmem:[#allocation3 + $0x364] ss:$72 sps:$4 sm:$0xff]   ;;  %v9545_v26 = vld [vmem:[#allocation3 + $0x360] ss:$72 sps:$4 sm:$0xff]  }
  0x41   :  { %v9543_v25 = vld [vmem:[#allocation3 + $0x36c] ss:$72 sps:$4 sm:$0xff]   ;;  %v9546_v27 = vld [vmem:[#allocation3 + $0x368] ss:$72 sps:$4 sm:$0xff]   ;;  %v9549_v29 = vld [vmem:[#allocation3 + $0x3fc] ss:$72 sps:$4 sm:$0xff]  }
  0x42   :  { %5316 = vmatpush1.bf16.msra.mxu0 %v9521_v10  ;;  %v9547_v28 = vld [vmem:[#allocation3 + $0x3f4] ss:$72 sps:$4 sm:$0xff]   ;;  %v9551_v30 = vld [vmem:[#allocation3 + $0x3f0] ss:$72 sps:$4 sm:$0xff]   ;;  %v9553_v32 = vld [vmem:[#allocation3 + $0x484] ss:$72 sps:$4 sm:$0xff]  }
  0x43   :  { %5439 = vmatpush1.bf16.msra.mxu1 %v9522_v11  ;;  %5317 = vmatprep.subr.bf16.mxu0 %v9523_v12  ;;  %v9552_v31 = vld [vmem:[#allocation3 + $0x3f8] ss:$72 sps:$4 sm:$0xff]   ;;  %v9555_v33 = vld [vmem:[#allocation3 + $0x48c] ss:$72 sps:$4 sm:$0xff]   ;;  %v9558_v35 = vld [vmem:[#allocation3 + $0x488] ss:$72 sps:$4 sm:$0xff]  }
  0x44   :  { %5440 = vmatprep.subr.bf16.mxu1 %v9525_v13  ;;  %v9557_v34 = vld [vmem:[#allocation3 + $0x480] ss:$72 sps:$4 sm:$0xff]   ;;  %v11059_v36 = vmov 1966171168   ;;  %v9559_v39 = vld [vmem:[#allocation3 + $0x514] ss:$72 sps:$4 sm:$0xff]  }
  0x45   :  { %v940_v37 = vunpack.c.l.s4 %v11059_v36  ;;  %v9561_v40 = vld [vmem:[#allocation3 + $0x51c] ss:$72 sps:$4 sm:$0xff]   ;;  %v9563_v41 = vld [vmem:[#allocation3 + $0x510] ss:$72 sps:$4 sm:$0xff]   ;;  %v11124_v43 = vshrl.u32 %v942_v38, 7 }
  0x46   :  { %5318 = vmatpush1.bf16.msra.mxu0 %v9527_v14  ;;  %v9564_v44 = vld [vmem:[#allocation3 + $0x518] ss:$72 sps:$4 sm:$0xff]   ;;  %v9565_v45 = vld [vmem:[#allocation3 + $0x5a4] ss:$72 sps:$4 sm:$0xff]   ;;  %v9570_v48 = vld [vmem:[#allocation3 + $0x5a8] ss:$72 sps:$4 sm:$0xff]  }
  0x47   :  { %5441 = vmatpush1.bf16.msra.mxu1 %v9528_v15  ;;  %5319 = vmatprep.subr.bf16.mxu0 %v9529_v16  ;;  %v941_v42 = vunpack.c.0.s8 %v940_v37  ;;  %v9567_v46 = vld [vmem:[#allocation3 + $0x5ac] ss:$72 sps:$4 sm:$0xff]   ;;  %v9569_v47 = vld [vmem:[#allocation3 + $0x5a0] ss:$72 sps:$4 sm:$0xff]   ;;  %v9573_v51 = vld [vmem:[#allocation3 + $0x63c] ss:$72 sps:$4 sm:$0xff]  }
  0x48   :  { %5442 = vmatprep.subr.bf16.mxu1 %v9531_v17  ;;  %v9571_v50 = vld [vmem:[#allocation3 + $0x634] ss:$72 sps:$4 sm:$0xff]   ;;  %v9575_v53 = vld [vmem:[#allocation3 + $0x630] ss:$72 sps:$4 sm:$0xff]   ;;  %v9577_v56 = vld [vmem:[#allocation3 + $0x6c4] ss:$72 sps:$4 sm:$0xff]  }
  0x49   :  { %v944_v49 = vsub.s32 %v941_v42, %v11124_v43  ;;  %v72_v52 = vld [vmem:[%s11271_s0] sm:$0x3f]  ;;  %v9579_v57 = vld [vmem:[#allocation3 + $0x6cc] ss:$72 sps:$4 sm:$0xff]   ;;  %v9582_v61 = vld [vmem:[#allocation3 + $0x6c8] ss:$72 sps:$4 sm:$0xff]  }
  0x4a   :  { %5320 = vmatpush1.bf16.msra.mxu0 %v9533_v18  ;;  %v9576_v55 = vld [vmem:[#allocation3 + $0x638] ss:$72 sps:$4 sm:$0xff]   ;;  %v9583_v62 = vld [vmem:[#allocation3 + $0x754] ss:$72 sps:$4 sm:$0xff]   ;;  %v9589_v2 = vld [vmem:[#allocation3 + $0x7e4] ss:$72 sps:$4 sm:$0xff]   ;;  %v938_v8 = vcombine.high %v72_v52, %v72_v52 }
  0x4b   :  { %5443 = vmatpush1.bf16.msra.mxu1 %v9534_v19  ;;  %5321 = vmatprep.subr.bf16.mxu0 %v9535_v20  ;;  %v945_v54 = vrot.slane %v72_v52, %v944_v49  ;;  %v9581_v59 = vld [vmem:[#allocation3 + $0x6c0] ss:$72 sps:$4 sm:$0xff]   ;;  %v9585_v63 = vld [vmem:[#allocation3 + $0x75c] ss:$72 sps:$4 sm:$0xff]   ;;  %v9587_v0 = vld [vmem:[#allocation3 + $0x750] ss:$72 sps:$4 sm:$0xff]  }
  0x4c   :  { %5444 = vmatprep.subr.bf16.mxu1 %v9537_v21  ;;  %v9588_v1 = vld [vmem:[#allocation3 + $0x758] ss:$72 sps:$4 sm:$0xff]   ;;  %v9591_v3 = vld [vmem:[#allocation3 + $0x7ec] ss:$72 sps:$4 sm:$0xff]   ;;  %v9594_v5 = vld [vmem:[#allocation3 + $0x7e8] ss:$72 sps:$4 sm:$0xff]   ;;  %v952_v11 = vrot.slane %v938_v8, %v944_v49 }
  0x4d   :  { %v953_v58 = vcombine.high %v945_v54, %v945_v54  ;;  %v9593_v4 = vld [vmem:[#allocation3 + $0x7e0] ss:$72 sps:$4 sm:$0xff]   ;;  %v9595_v6 = vld [vmem:[#allocation3 + $0x874] ss:$72 sps:$4 sm:$0xff]   ;;  %v9599_v9 = vld [vmem:[#allocation3 + $0x870] ss:$72 sps:$4 sm:$0xff]   ;;  %v11134_v16 = vrot.slane %v945_v54, %v944_v49 }
  0x4e   :  { %5322 = vmatpush1.bf16.msra.mxu0 %v9539_v22  ;;  %v9597_v7 = vld [vmem:[#allocation3 + $0x87c] ss:$72 sps:$4 sm:$0xff]   ;;  %v9600_v10 = vld [vmem:[#allocation3 + $0x878] ss:$72 sps:$4 sm:$0xff]   ;;  %v9606_v13 = vld [vmem:[#allocation3 + $0x90c] ss:$72 sps:$4 sm:$0xff]   ;;  %v954_v14 = vcombine.high %v952_v11, %v952_v11  ;;  %v11138_v19 = vrot.slane %v952_v11, %v944_v49 }
  0x4f   :  { %5445 = vmatpush1.bf16.msra.mxu1 %v9540_v23  ;;  %5323 = vmatprep.subr.bf16.mxu0 %v9541_v24  ;;  %v11130_v60 = vrot.slane %v953_v58, %v944_v49  ;;  %v9603_v12 = vld [vmem:[#allocation3 + $0x904] ss:$72 sps:$4 sm:$0xff]   ;;  %v9601_v15 = vld [vmem:[#allocation3 + $0x900] ss:$72 sps:$4 sm:$0xff]   ;;  %v9609_v20 = vld [vmem:[#allocation3 + $0x994] ss:$72 sps:$4 sm:$0xff]  }
  0x50   :  { %5446 = vmatprep.subr.bf16.mxu1 %v9543_v25  ;;  %v9604_v17 = vld [vmem:[#allocation3 + $0x908] ss:$72 sps:$4 sm:$0xff]   ;;  %v11136_v18 = vrot.slane %v954_v14, %v944_v49  ;;  %v9612_v21 = vld [vmem:[#allocation3 + $0x99c] ss:$72 sps:$4 sm:$0xff]   ;;  %v9610_v24 = vld [vmem:[#allocation3 + $0x998] ss:$72 sps:$4 sm:$0xff]  }
  0x51   :  { %5343 = vmatprep.mubr.bf16.mxu0 %v11130_v60  ;;  %5466 = vmatprep.mubr.bf16.mxu1 %v11130_v60  ;;  %v11142_v22 = vcombine.high %v11130_v60, %v11130_v60  ;;  %v9607_v23 = vld [vmem:[#allocation3 + $0x990] ss:$72 sps:$4 sm:$0xff]   ;;  %v9615_v25 = vld [vmem:[#allocation3 + $0xa24] ss:$72 sps:$4 sm:$0xff]   ;;  %v9633_v37 = vld [vmem:[#allocation3 + $0xbd4] ss:$72 sps:$4 sm:$0xff]  }
  0x52   :  { %5324 = vmatpush1.bf16.msra.mxu0 %v9545_v26  ;;  %v9618_v26 = vld [vmem:[#allocation3 + $0xa2c] ss:$72 sps:$4 sm:$0xff]   ;;  %v9628_v36 = vld [vmem:[#allocation3 + $0xb48] ss:$72 sps:$4 sm:$0xff]   ;;  %v9636_v38 = vld [vmem:[#allocation3 + $0xbdc] ss:$72 sps:$4 sm:$0xff]  }
  0x53   :  { %5447 = vmatpush1.bf16.msra.mxu1 %v9546_v27  ;;  %5325 = vmatprep.subr.bf16.mxu0 %v9547_v28  ;;  %v9613_v27 = vld [vmem:[#allocation3 + $0xa20] ss:$72 sps:$4 sm:$0xff]   ;;  %v9642_v42 = vld [vmem:[#allocation3 + $0xc6c] ss:$72 sps:$4 sm:$0xff]   ;;  %v9684_v8 = vld [vmem:[#allocation3 + $0x105c] ss:$72 sps:$4 sm:$0xff]  }
  0x54   :  { %5448 = vmatprep.subr.bf16.mxu1 %v9549_v29  ;;  %v9616_v28 = vld [vmem:[#allocation3 + $0xa28] ss:$72 sps:$4 sm:$0xff]   ;;  %v9621_v29 = vld [vmem:[#allocation3 + $0xab4] ss:$72 sps:$4 sm:$0xff]   ;;  %v9646_v49 = vld [vmem:[#allocation3 + $0xcf8] ss:$72 sps:$4 sm:$0xff]  }
  0x55   :  { %v9649_v52 = vld [vmem:[#allocation3 + $0xd80] ss:$72 sps:$4 sm:$0xff]   ;;  %v9657_v54 = vld [vmem:[#allocation3 + $0xe14] ss:$72 sps:$4 sm:$0xff]   ;;  %v9663_v58 = vld [vmem:[#allocation3 + $0xea4] ss:$72 sps:$4 sm:$0xff]  }
  0x56   :  { %5326 = vmatpush1.bf16.msra.mxu0 %v9551_v30  ;;  %v9624_v30 = vld [vmem:[#allocation3 + $0xabc] ss:$72 sps:$4 sm:$0xff]   ;;  %v9688_v14 = vld [vmem:[#allocation3 + $0x10e8] ss:$72 sps:$4 sm:$0xff]   ;;  %s11062_s0 = smov [#allocation9]  }
  0x57   :  { %5449 = vmatpush1.bf16.msra.mxu1 %v9552_v31  ;;  %5327 = vmatprep.subr.bf16.mxu0 %v9553_v32  ;;  %v9619_v31 = vld [vmem:[#allocation3 + $0xab0] ss:$72 sps:$4 sm:$0xff]   ;;  %v9687_v11 = vld [vmem:[#allocation3 + $0x10e4] ss:$72 sps:$4 sm:$0xff]   ;;  %s8202_s29 = sshll.u32 %s11062_s0, 4  ;;  %s8203_s29 = int_to_ptr.vmem [resolvable:$true] %s8202_s29 }
  0x58   :  { %5450 = vmatprep.subr.bf16.mxu1 %v9555_v33  ;;  %v9622_v32 = vld [vmem:[#allocation3 + $0xab8] ss:$72 sps:$4 sm:$0xff]   ;;  %v9627_v33 = vld [vmem:[#allocation3 + $0xb44] ss:$72 sps:$4 sm:$0xff]   ;;  %s11024_s30 = scalar_lea.vmem %s8203_s29, 32  ;;  %p11029_p11 = scmp.lt.s32.totalorder %s8203_s29, %s8203_s29 }
  0x59   :  { %p11025_p10 = scmp.ne.s32.totalorder %s8203_s29, %s11024_s30  ;;  %p11030_p12 = scmp.lt.s32.totalorder %s11024_s30, %s11024_s30 }
  0x5a   :  { %5328 = vmatpush1.bf16.msra.mxu0 %v9557_v34  ;;  %v9630_v34 = vld [vmem:[#allocation3 + $0xb4c] ss:$72 sps:$4 sm:$0xff]  }
  0x5b   :  { %5451 = vmatpush1.bf16.msra.mxu1 %v9558_v35  ;;  %5329 = vmatprep.subr.bf16.mxu0 %v9559_v39  ;;  %v9625_v35 = vld [vmem:[#allocation3 + $0xb40] ss:$72 sps:$4 sm:$0xff]   ;;  %v9631_v39 = vld [vmem:[#allocation3 + $0xbd0] ss:$72 sps:$4 sm:$0xff]   ;;  %p11031_p13 = por %p11030_p12, %p11029_p11 }
  0x5c   :  { %5452 = vmatprep.subr.bf16.mxu1 %v9561_v40  ;;  %v9634_v40 = vld [vmem:[#allocation3 + $0xbd8] ss:$72 sps:$4 sm:$0xff]  }
  0x5d   :  { %p11032_p0 = pnand %p11031_p13, %p11025_p10 }
  0x5e   :  { %5330 = vmatpush1.bf16.msra.mxu0 %v9563_v41  ;;  %v9639_v41 = vld [vmem:[#allocation3 + $0xc64] ss:$72 sps:$4 sm:$0xff]  }
  0x5f   :  { %5453 = vmatpush1.bf16.msra.mxu1 %v9564_v44  ;;  %5331 = vmatprep.subr.bf16.mxu0 %v9565_v45  ;;  %v9637_v44 = vld [vmem:[#allocation3 + $0xc60] ss:$72 sps:$4 sm:$0xff]  }
  0x60   :  { %5454 = vmatprep.subr.bf16.mxu1 %v9567_v46  ;;  %v9640_v45 = vld [vmem:[#allocation3 + $0xc68] ss:$72 sps:$4 sm:$0xff]   ;;  %v9645_v46 = vld [vmem:[#allocation3 + $0xcf4] ss:$72 sps:$4 sm:$0xff]  }
  0x62   :  { %5332 = vmatpush1.bf16.msra.mxu0 %v9569_v47  ;;  %v9648_v47 = vld [vmem:[#allocation3 + $0xcfc] ss:$72 sps:$4 sm:$0xff]  }
  0x63   :  { %5455 = vmatpush1.bf16.msra.mxu1 %v9570_v48  ;;  %5333 = vmatprep.subr.bf16.mxu0 %v9571_v50  ;;  %v9643_v48 = vld [vmem:[#allocation3 + $0xcf0] ss:$72 sps:$4 sm:$0xff]   ;;  %v9651_v50 = vld [vmem:[#allocation3 + $0xd84] ss:$72 sps:$4 sm:$0xff]  }
  0x64   :  { %5456 = vmatprep.subr.bf16.mxu1 %v9573_v51  ;;  %v9654_v51 = vld [vmem:[#allocation3 + $0xd8c] ss:$72 sps:$4 sm:$0xff]  }
  0x66   :  { %5334 = vmatpush1.bf16.msra.mxu0 %v9575_v53  ;;  %v9652_v53 = vld [vmem:[#allocation3 + $0xd88] ss:$72 sps:$4 sm:$0xff]  }
  0x67   :  { %5457 = vmatpush1.bf16.msra.mxu1 %v9576_v55  ;;  %5335 = vmatprep.subr.bf16.mxu0 %v9577_v56  ;;  %v9660_v55 = vld [vmem:[#allocation3 + $0xe1c] ss:$72 sps:$4 sm:$0xff]   ;;  %v9655_v56 = vld [vmem:[#allocation3 + $0xe10] ss:$72 sps:$4 sm:$0xff]  }
  0x68   :  { %5458 = vmatprep.subr.bf16.mxu1 %v9579_v57  ;;  %v9658_v57 = vld [vmem:[#allocation3 + $0xe18] ss:$72 sps:$4 sm:$0xff]  }
  0x6a   :  { %5336 = vmatpush1.bf16.msra.mxu0 %v9581_v59  ;;  %v9666_v59 = vld [vmem:[#allocation3 + $0xeac] ss:$72 sps:$4 sm:$0xff]  }
  0x6b   :  { %5459 = vmatpush1.bf16.msra.mxu1 %v9582_v61  ;;  %5337 = vmatprep.subr.bf16.mxu0 %v9583_v62  ;;  %v9661_v61 = vld [vmem:[#allocation3 + $0xea0] ss:$72 sps:$4 sm:$0xff]  }
  0x6c   :  { %5460 = vmatprep.subr.bf16.mxu1 %v9585_v63  ;;  %v9664_v62 = vld [vmem:[#allocation3 + $0xea8] ss:$72 sps:$4 sm:$0xff]   ;;  %v9669_v63 = vld [vmem:[#allocation3 + $0xf34] ss:$72 sps:$4 sm:$0xff]  }
  0x6e   :  { %5338 = vmatpush1.bf16.msra.mxu0 %v9587_v0  ;;  %v9672_v0 = vld [vmem:[#allocation3 + $0xf3c] ss:$72 sps:$4 sm:$0xff]  }
  0x6f   :  { %5461 = vmatpush1.bf16.msra.mxu1 %v9588_v1  ;;  %5339 = vmatprep.subr.bf16.mxu0 %v9589_v2  ;;  %v9667_v1 = vld [vmem:[#allocation3 + $0xf30] ss:$72 sps:$4 sm:$0xff]  }
  0x70   :  { %5462 = vmatprep.subr.bf16.mxu1 %v9591_v3  ;;  %v9670_v2 = vld [vmem:[#allocation3 + $0xf38] ss:$72 sps:$4 sm:$0xff]   ;;  %v9675_v3 = vld [vmem:[#allocation3 + $0xfc4] ss:$72 sps:$4 sm:$0xff]  }
  0x72   :  { %5340 = vmatpush1.bf16.msra.mxu0 %v9593_v4  ;;  %v9678_v4 = vld [vmem:[#allocation3 + $0xfcc] ss:$72 sps:$4 sm:$0xff]  }
  0x73   :  { %5463 = vmatpush1.bf16.msra.mxu1 %v9594_v5  ;;  %5341 = vmatprep.subr.bf16.mxu0 %v9595_v6  ;;  %v9673_v5 = vld [vmem:[#allocation3 + $0xfc0] ss:$72 sps:$4 sm:$0xff]  }
  0x74   :  { %5464 = vmatprep.subr.bf16.mxu1 %v9597_v7  ;;  %v9676_v6 = vld [vmem:[#allocation3 + $0xfc8] ss:$72 sps:$4 sm:$0xff]   ;;  %v9681_v7 = vld [vmem:[#allocation3 + $0x1054] ss:$72 sps:$4 sm:$0xff]  }
  0x76   :  { %5342 = vmatpush1.bf16.msra.mxu0 %v9599_v9  ;;  %v9679_v9 = vld [vmem:[#allocation3 + $0x1050] ss:$72 sps:$4 sm:$0xff]  }
  0x77   :  { %5465 = vmatpush1.bf16.msra.mxu1 %v9600_v10  ;;  %5352 = vmatprep.subr.bf16.mxu0 %v9603_v12  ;;  %v9682_v10 = vld [vmem:[#allocation3 + $0x1058] ss:$72 sps:$4 sm:$0xff]   ;;  %v9690_v12 = vld [vmem:[#allocation3 + $0x10ec] ss:$72 sps:$4 sm:$0xff]  }
  0x78   :  { %5475 = vmatprep.subr.bf16.mxu1 %v9606_v13  ;;  %v9685_v13 = vld [vmem:[#allocation3 + $0x10e0] ss:$72 sps:$4 sm:$0xff]  }
  0x79   :  { %5344 = vmatmul.mubr.bf16.vlgmr.msra.gmra.mrb[0].mxu0 %v11134_v16 }
  0x7a   :  { %5467 = vmatmul.mubr.bf16.vlgmr.msra.gmra.mrb[0].mxu1 %v11134_v16  ;;  %5353 = vmatpush1.bf16.msra.mxu0 %v9601_v15  ;;  %v9693_v15 = vld [vmem:[#allocation3 + $0x1174] ss:$72 sps:$4 sm:$0xff]  }
  0x7b   :  { %5476 = vmatpush1.bf16.msra.mxu1 %v9604_v17  ;;  %5354 = vmatprep.subr.bf16.mxu0 %v9609_v20  ;;  %v9696_v17 = vld [vmem:[#allocation3 + $0x117c] ss:$72 sps:$4 sm:$0xff]   ;;  %v9691_v20 = vld [vmem:[#allocation3 + $0x1170] ss:$72 sps:$4 sm:$0xff]  }
  0x7c   :  { %5477 = vmatprep.subr.bf16.mxu1 %v9612_v21  ;;  %5384 = vmatprep.mubr.bf16.mxu0 %v11142_v22  ;;  %v9694_v21 = vld [vmem:[#allocation3 + $0x1178] ss:$72 sps:$4 sm:$0xff]  }
  0x7d   :  { %5507 = vmatprep.mubr.bf16.mxu1 %v11142_v22 }
  0x7e   :  { %5355 = vmatpush1.bf16.msra.mxu0 %v9607_v23  ;;  %v9699_v23 = vld [vmem:[#allocation3 + $0x1204] ss:$72 sps:$4 sm:$0xff]  }
  0x7f   :  { %5478 = vmatpush1.bf16.msra.mxu1 %v9610_v24  ;;  %5356 = vmatprep.subr.bf16.mxu0 %v9615_v25  ;;  %v9702_v24 = vld [vmem:[#allocation3 + $0x120c] ss:$72 sps:$4 sm:$0xff]   ;;  %v9697_v25 = vld [vmem:[#allocation3 + $0x1200] ss:$72 sps:$4 sm:$0xff]  }
  0x80   :  { %5479 = vmatprep.subr.bf16.mxu1 %v9618_v26  ;;  %v11150_v26 = vcombine.high %v11134_v16, %v11134_v16 }
  0x82   :  { %5357 = vmatpush1.bf16.msra.mxu0 %v9613_v27  ;;  %v9700_v27 = vld [vmem:[#allocation3 + $0x1208] ss:$72 sps:$4 sm:$0xff]  }
  0x83   :  { %5480 = vmatpush1.bf16.msra.mxu1 %v9616_v28  ;;  %5358 = vmatprep.subr.bf16.mxu0 %v9621_v29  ;;  %v9705_v28 = vld [vmem:[#allocation3 + $0x1294] ss:$72 sps:$4 sm:$0xff]  }
  0x84   :  { %5481 = vmatprep.subr.bf16.mxu1 %v9624_v30  ;;  %v9708_v29 = vld [vmem:[#allocation3 + $0x129c] ss:$72 sps:$4 sm:$0xff]   ;;  %v9703_v30 = vld [vmem:[#allocation3 + $0x1290] ss:$72 sps:$4 sm:$0xff]  }
  0x86   :  { %5359 = vmatpush1.bf16.msra.mxu0 %v9619_v31  ;;  %v9706_v31 = vld [vmem:[#allocation3 + $0x1298] ss:$72 sps:$4 sm:$0xff]  }
  0x87   :  { %5482 = vmatpush1.bf16.msra.mxu1 %v9622_v32  ;;  %5360 = vmatprep.subr.bf16.mxu0 %v9627_v33  ;;  %v9711_v32 = vld [vmem:[#allocation3 + $0x1324] ss:$72 sps:$4 sm:$0xff]  }
  0x88   :  { %5483 = vmatprep.subr.bf16.mxu1 %v9630_v34  ;;  %v9714_v33 = vld [vmem:[#allocation3 + $0x132c] ss:$72 sps:$4 sm:$0xff]   ;;  %v9709_v34 = vld [vmem:[#allocation3 + $0x1320] ss:$72 sps:$4 sm:$0xff]  }
  0x8a   :  { %5361 = vmatpush1.bf16.msra.mxu0 %v9625_v35  ;;  %v9712_v35 = vld [vmem:[#allocation3 + $0x1328] ss:$72 sps:$4 sm:$0xff]  }
  0x8b   :  { %5484 = vmatpush1.bf16.msra.mxu1 %v9628_v36  ;;  %5362 = vmatprep.subr.bf16.mxu0 %v9633_v37  ;;  %v9717_v36 = vld [vmem:[#allocation3 + $0x13b4] ss:$72 sps:$4 sm:$0xff]  }
  0x8c   :  { %5485 = vmatprep.subr.bf16.mxu1 %v9636_v38  ;;  %v9720_v37 = vld [vmem:[#allocation3 + $0x13bc] ss:$72 sps:$4 sm:$0xff]   ;;  %v9715_v38 = vld [vmem:[#allocation3 + $0x13b0] ss:$72 sps:$4 sm:$0xff]  }
  0x8e   :  { %5363 = vmatpush1.bf16.msra.mxu0 %v9631_v39  ;;  %v9718_v39 = vld [vmem:[#allocation3 + $0x13b8] ss:$72 sps:$4 sm:$0xff]  }
  0x8f   :  { %5486 = vmatpush1.bf16.msra.mxu1 %v9634_v40  ;;  %5364 = vmatprep.subr.bf16.mxu0 %v9639_v41  ;;  %v9723_v40 = vld [vmem:[#allocation3 + $0x1444] ss:$72 sps:$4 sm:$0xff]  }
  0x90   :  { %5487 = vmatprep.subr.bf16.mxu1 %v9642_v42  ;;  %v9726_v41 = vld [vmem:[#allocation3 + $0x144c] ss:$72 sps:$4 sm:$0xff]   ;;  %v9721_v42 = vld [vmem:[#allocation3 + $0x1440] ss:$72 sps:$4 sm:$0xff]  }
  0x92   :  { %5365 = vmatpush1.bf16.msra.mxu0 %v9637_v44  ;;  %v9724_v44 = vld [vmem:[#allocation3 + $0x1448] ss:$72 sps:$4 sm:$0xff]  }
  0x93   :  { %5488 = vmatpush1.bf16.msra.mxu1 %v9640_v45  ;;  %5366 = vmatprep.subr.bf16.mxu0 %v9645_v46  ;;  %v9729_v45 = vld [vmem:[#allocation3 + $0x14d4] ss:$72 sps:$4 sm:$0xff]  }
  0x94   :  { %5489 = vmatprep.subr.bf16.mxu1 %v9648_v47  ;;  %v9732_v46 = vld [vmem:[#allocation3 + $0x14dc] ss:$72 sps:$4 sm:$0xff]   ;;  %v9727_v47 = vld [vmem:[#allocation3 + $0x14d0] ss:$72 sps:$4 sm:$0xff]  }
  0x96   :  { %5367 = vmatpush1.bf16.msra.mxu0 %v9643_v48  ;;  %v9730_v48 = vld [vmem:[#allocation3 + $0x14d8] ss:$72 sps:$4 sm:$0xff]  }
  0x97   :  { %5490 = vmatpush1.bf16.msra.mxu1 %v9646_v49  ;;  %5368 = vmatprep.subr.bf16.mxu0 %v9651_v50  ;;  %v9735_v49 = vld [vmem:[#allocation3 + $0x1564] ss:$72 sps:$4 sm:$0xff]  }
  0x98   :  { %5491 = vmatprep.subr.bf16.mxu1 %v9654_v51  ;;  %v9738_v50 = vld [vmem:[#allocation3 + $0x156c] ss:$72 sps:$4 sm:$0xff]   ;;  %v9733_v51 = vld [vmem:[#allocation3 + $0x1560] ss:$72 sps:$4 sm:$0xff]  }
  0x9a   :  { %5369 = vmatpush1.bf16.msra.mxu0 %v9649_v52  ;;  %v9736_v52 = vld [vmem:[#allocation3 + $0x1568] ss:$72 sps:$4 sm:$0xff]  }
  0x9b   :  { %5492 = vmatpush1.bf16.msra.mxu1 %v9652_v53  ;;  %5370 = vmatprep.subr.bf16.mxu0 %v9657_v54  ;;  %v9741_v53 = vld [vmem:[#allocation3 + $0x15f4] ss:$72 sps:$4 sm:$0xff]  }
  0x9c   :  { %5493 = vmatprep.subr.bf16.mxu1 %v9660_v55  ;;  %v9744_v54 = vld [vmem:[#allocation3 + $0x15fc] ss:$72 sps:$4 sm:$0xff]   ;;  %v9739_v55 = vld [vmem:[#allocation3 + $0x15f0] ss:$72 sps:$4 sm:$0xff]  }
  0x9e   :  { %5371 = vmatpush1.bf16.msra.mxu0 %v9655_v56  ;;  %v9742_v56 = vld [vmem:[#allocation3 + $0x15f8] ss:$72 sps:$4 sm:$0xff]  }
  0x9f   :  { %5494 = vmatpush1.bf16.msra.mxu1 %v9658_v57  ;;  %5372 = vmatprep.subr.bf16.mxu0 %v9663_v58  ;;  %v9747_v57 = vld [vmem:[#allocation3 + $0x1684] ss:$72 sps:$4 sm:$0xff]  }
  0xa0   :  { %5495 = vmatprep.subr.bf16.mxu1 %v9666_v59  ;;  %v9750_v58 = vld [vmem:[#allocation3 + $0x168c] ss:$72 sps:$4 sm:$0xff]   ;;  %v9745_v59 = vld [vmem:[#allocation3 + $0x1680] ss:$72 sps:$4 sm:$0xff]  }
  0xa2   :  { %5373 = vmatpush1.bf16.msra.mxu0 %v9661_v61  ;;  %v9748_v61 = vld [vmem:[#allocation3 + $0x1688] ss:$72 sps:$4 sm:$0xff]  }
  0xa3   :  { %5496 = vmatpush1.bf16.msra.mxu1 %v9664_v62  ;;  %5374 = vmatprep.subr.bf16.mxu0 %v9669_v63  ;;  %v9753_v62 = vld [vmem:[#allocation3 + $0x1714] ss:$72 sps:$4 sm:$0xff]  }
  0xa4   :  { %5497 = vmatprep.subr.bf16.mxu1 %v9672_v0  ;;  %v9756_v63 = vld [vmem:[#allocation3 + $0x171c] ss:$72 sps:$4 sm:$0xff]   ;;  %v9751_v0 = vld [vmem:[#allocation3 + $0x1710] ss:$72 sps:$4 sm:$0xff]  }
  0xa6   :  { %5375 = vmatpush1.bf16.msra.mxu0 %v9667_v1  ;;  %v9754_v1 = vld [vmem:[#allocation3 + $0x1718] ss:$72 sps:$4 sm:$0xff]  }
  0xa7   :  { %5498 = vmatpush1.bf16.msra.mxu1 %v9670_v2  ;;  %5376 = vmatprep.subr.bf16.mxu0 %v9675_v3  ;;  %v9759_v2 = vld [vmem:[#allocation3 + $0x17a4] ss:$72 sps:$4 sm:$0xff]  }
  0xa8   :  { %5499 = vmatprep.subr.bf16.mxu1 %v9678_v4  ;;  %v9762_v3 = vld [vmem:[#allocation3 + $0x17ac] ss:$72 sps:$4 sm:$0xff]   ;;  %v9757_v4 = vld [vmem:[#allocation3 + $0x17a0] ss:$72 sps:$4 sm:$0xff]  }
  0xaa   :  { %5377 = vmatpush1.bf16.msra.mxu0 %v9673_v5  ;;  %v9760_v5 = vld [vmem:[#allocation3 + $0x17a8] ss:$72 sps:$4 sm:$0xff]  }
  0xab   :  { %5500 = vmatpush1.bf16.msra.mxu1 %v9676_v6  ;;  %5378 = vmatprep.subr.bf16.mxu0 %v9681_v7  ;;  %v9765_v6 = vld [vmem:[#allocation3 + $0x1834] ss:$72 sps:$4 sm:$0xff]  }
  0xac   :  { %5501 = vmatprep.subr.bf16.mxu1 %v9684_v8  ;;  %v9768_v7 = vld [vmem:[#allocation3 + $0x183c] ss:$72 sps:$4 sm:$0xff]   ;;  %v9763_v8 = vld [vmem:[#allocation3 + $0x1830] ss:$72 sps:$4 sm:$0xff]  }
  0xae   :  { %5379 = vmatpush1.bf16.msra.mxu0 %v9679_v9  ;;  %v9766_v9 = vld [vmem:[#allocation3 + $0x1838] ss:$72 sps:$4 sm:$0xff]  }
  0xaf   :  { %5502 = vmatpush1.bf16.msra.mxu1 %v9682_v10  ;;  %5380 = vmatprep.subr.bf16.mxu0 %v9687_v11  ;;  %v9771_v10 = vld [vmem:[#allocation3 + $0x18c4] ss:$72 sps:$4 sm:$0xff]  }
  0xb0   :  { %5503 = vmatprep.subr.bf16.mxu1 %v9690_v12  ;;  %v9774_v11 = vld [vmem:[#allocation3 + $0x18cc] ss:$72 sps:$4 sm:$0xff]   ;;  %v9769_v12 = vld [vmem:[#allocation3 + $0x18c0] ss:$72 sps:$4 sm:$0xff]  }
  0xb2   :  { %5381 = vmatpush1.bf16.msra.mxu0 %v9685_v13  ;;  %v9772_v13 = vld [vmem:[#allocation3 + $0x18c8] ss:$72 sps:$4 sm:$0xff]  }
  0xb3   :  { %5504 = vmatpush1.bf16.msra.mxu1 %v9688_v14  ;;  %5382 = vmatprep.subr.bf16.mxu0 %v9693_v15  ;;  %v9777_v14 = vld [vmem:[#allocation3 + $0x1954] ss:$72 sps:$4 sm:$0xff]  }
  0xb4   :  { %5505 = vmatprep.subr.bf16.mxu1 %v9696_v17  ;;  %v9780_v15 = vld [vmem:[#allocation3 + $0x195c] ss:$72 sps:$4 sm:$0xff]   ;;  %v9775_v17 = vld [vmem:[#allocation3 + $0x1950] ss:$72 sps:$4 sm:$0xff]  }
  0xb6   :  { %5383 = vmatpush1.bf16.msra.mxu0 %v9691_v20  ;;  %v9778_v20 = vld [vmem:[#allocation3 + $0x1958] ss:$72 sps:$4 sm:$0xff]  }
  0xb7   :  { %5506 = vmatpush1.bf16.msra.mxu1 %v9694_v21  ;;  %5393 = vmatprep.subr.bf16.mxu0 %v9699_v23  ;;  %v9783_v21 = vld [vmem:[#allocation3 + $0x19e4] ss:$72 sps:$4 sm:$0xff]  }
  0xb8   :  { %5516 = vmatprep.subr.bf16.mxu1 %v9702_v24  ;;  %v9786_v23 = vld [vmem:[#allocation3 + $0x19ec] ss:$72 sps:$4 sm:$0xff]   ;;  %v9781_v24 = vld [vmem:[#allocation3 + $0x19e0] ss:$72 sps:$4 sm:$0xff]  }
  0xb9   :  { %5385 = vmatmul.mubr.bf16.vlgmr.msra.gmra.mrb[0].mxu0 %v11150_v26 }
  0xba   :  { %5508 = vmatmul.mubr.bf16.vlgmr.msra.gmra.mrb[0].mxu1 %v11150_v26  ;;  %5394 = vmatpush1.bf16.msra.mxu0 %v9697_v25  ;;  %v9784_v25 = vld [vmem:[#allocation3 + $0x19e8] ss:$72 sps:$4 sm:$0xff]  }
  0xbb   :  { %5517 = vmatpush1.bf16.msra.mxu1 %v9700_v27  ;;  %5395 = vmatprep.subr.bf16.mxu0 %v9705_v28  ;;  %v9789_v27 = vld [vmem:[#allocation3 + $0x1a74] ss:$72 sps:$4 sm:$0xff]  }
  0xbc   :  { %5518 = vmatprep.subr.bf16.mxu1 %v9708_v29  ;;  %5425 = vmatprep.mubr.bf16.mxu0 %v11136_v18  ;;  %v9792_v28 = vld [vmem:[#allocation3 + $0x1a7c] ss:$72 sps:$4 sm:$0xff]   ;;  %v9787_v29 = vld [vmem:[#allocation3 + $0x1a70] ss:$72 sps:$4 sm:$0xff]  }
  0xbd   :  { %5548 = vmatprep.mubr.bf16.mxu1 %v11136_v18 }
  0xbe   :  { %5396 = vmatpush1.bf16.msra.mxu0 %v9703_v30  ;;  %v9790_v30 = vld [vmem:[#allocation3 + $0x1a78] ss:$72 sps:$4 sm:$0xff]  }
  0xbf   :  { %5519 = vmatpush1.bf16.msra.mxu1 %v9706_v31  ;;  %5397 = vmatprep.subr.bf16.mxu0 %v9711_v32  ;;  %v9796_v31 = vld [vmem:[#allocation3 + $0x14] ss:$72 sps:$4 sm:$0xff]  }
  0xc0   :  { %5520 = vmatprep.subr.bf16.mxu1 %v9714_v33  ;;  %v9799_v32 = vld [vmem:[#allocation3 + $0x1c] ss:$72 sps:$4 sm:$0xff]   ;;  %v9794_v33 = vld [vmem:[#allocation3 + $0x10] ss:$72 sps:$4 sm:$0xff]  }
  0xc2   :  { %5398 = vmatpush1.bf16.msra.mxu0 %v9709_v34  ;;  %v9797_v34 = vld [vmem:[#allocation3 + $0x18] ss:$72 sps:$4 sm:$0xff]  }
  0xc3   :  { %5521 = vmatpush1.bf16.msra.mxu1 %v9712_v35  ;;  %5399 = vmatprep.subr.bf16.mxu0 %v9717_v36  ;;  %v9802_v35 = vld [vmem:[#allocation3 + $0xa4] ss:$72 sps:$4 sm:$0xff]  }
  0xc4   :  { %5522 = vmatprep.subr.bf16.mxu1 %v9720_v37  ;;  %v9805_v36 = vld [vmem:[#allocation3 + $0xac] ss:$72 sps:$4 sm:$0xff]   ;;  %v9800_v37 = vld [vmem:[#allocation3 + $0xa0] ss:$72 sps:$4 sm:$0xff]  }
  0xc6   :  { %5400 = vmatpush1.bf16.msra.mxu0 %v9715_v38  ;;  %v9803_v38 = vld [vmem:[#allocation3 + $0xa8] ss:$72 sps:$4 sm:$0xff]  }
  0xc7   :  { %5523 = vmatpush1.bf16.msra.mxu1 %v9718_v39  ;;  %5401 = vmatprep.subr.bf16.mxu0 %v9723_v40  ;;  %v9808_v39 = vld [vmem:[#allocation3 + $0x134] ss:$72 sps:$4 sm:$0xff]  }
  0xc8   :  { %5524 = vmatprep.subr.bf16.mxu1 %v9726_v41  ;;  %v9811_v40 = vld [vmem:[#allocation3 + $0x13c] ss:$72 sps:$4 sm:$0xff]   ;;  %v9806_v41 = vld [vmem:[#allocation3 + $0x130] ss:$72 sps:$4 sm:$0xff]  }
  0xca   :  { %5402 = vmatpush1.bf16.msra.mxu0 %v9721_v42  ;;  %v9809_v42 = vld [vmem:[#allocation3 + $0x138] ss:$72 sps:$4 sm:$0xff]  }
  0xcb   :  { %5525 = vmatpush1.bf16.msra.mxu1 %v9724_v44  ;;  %5403 = vmatprep.subr.bf16.mxu0 %v9729_v45  ;;  %v9814_v44 = vld [vmem:[#allocation3 + $0x1c4] ss:$72 sps:$4 sm:$0xff]  }
  0xcc   :  { %5526 = vmatprep.subr.bf16.mxu1 %v9732_v46  ;;  %v9817_v45 = vld [vmem:[#allocation3 + $0x1cc] ss:$72 sps:$4 sm:$0xff]   ;;  %v9812_v46 = vld [vmem:[#allocation3 + $0x1c0] ss:$72 sps:$4 sm:$0xff]  }
  0xce   :  { %5404 = vmatpush1.bf16.msra.mxu0 %v9727_v47  ;;  %v9815_v47 = vld [vmem:[#allocation3 + $0x1c8] ss:$72 sps:$4 sm:$0xff]  }
  0xcf   :  { %5527 = vmatpush1.bf16.msra.mxu1 %v9730_v48  ;;  %5405 = vmatprep.subr.bf16.mxu0 %v9735_v49  ;;  %v9820_v48 = vld [vmem:[#allocation3 + $0x254] ss:$72 sps:$4 sm:$0xff]  }
  0xd0   :  { %5528 = vmatprep.subr.bf16.mxu1 %v9738_v50  ;;  %v9823_v49 = vld [vmem:[#allocation3 + $0x25c] ss:$72 sps:$4 sm:$0xff]   ;;  %v9818_v50 = vld [vmem:[#allocation3 + $0x250] ss:$72 sps:$4 sm:$0xff]  }
  0xd2   :  { %5406 = vmatpush1.bf16.msra.mxu0 %v9733_v51  ;;  %v9821_v51 = vld [vmem:[#allocation3 + $0x258] ss:$72 sps:$4 sm:$0xff]  }
  0xd3   :  { %5529 = vmatpush1.bf16.msra.mxu1 %v9736_v52  ;;  %5407 = vmatprep.subr.bf16.mxu0 %v9741_v53  ;;  %v9826_v52 = vld [vmem:[#allocation3 + $0x2e4] ss:$72 sps:$4 sm:$0xff]  }
  0xd4   :  { %5530 = vmatprep.subr.bf16.mxu1 %v9744_v54  ;;  %v9829_v53 = vld [vmem:[#allocation3 + $0x2ec] ss:$72 sps:$4 sm:$0xff]   ;;  %v9824_v54 = vld [vmem:[#allocation3 + $0x2e0] ss:$72 sps:$4 sm:$0xff]  }
  0xd6   :  { %5408 = vmatpush1.bf16.msra.mxu0 %v9739_v55  ;;  %v9827_v55 = vld [vmem:[#allocation3 + $0x2e8] ss:$72 sps:$4 sm:$0xff]  }
  0xd7   :  { %5531 = vmatpush1.bf16.msra.mxu1 %v9742_v56  ;;  %5409 = vmatprep.subr.bf16.mxu0 %v9747_v57  ;;  %v9832_v56 = vld [vmem:[#allocation3 + $0x374] ss:$72 sps:$4 sm:$0xff]  }
  0xd8   :  { %5532 = vmatprep.subr.bf16.mxu1 %v9750_v58  ;;  %v9835_v57 = vld [vmem:[#allocation3 + $0x37c] ss:$72 sps:$4 sm:$0xff]   ;;  %v9830_v58 = vld [vmem:[#allocation3 + $0x370] ss:$72 sps:$4 sm:$0xff]  }
  0xda   :  { %5410 = vmatpush1.bf16.msra.mxu0 %v9745_v59  ;;  %v9833_v59 = vld [vmem:[#allocation3 + $0x378] ss:$72 sps:$4 sm:$0xff]  }
  0xdb   :  { %5533 = vmatpush1.bf16.msra.mxu1 %v9748_v61  ;;  %5411 = vmatprep.subr.bf16.mxu0 %v9753_v62  ;;  %v9838_v61 = vld [vmem:[#allocation3 + $0x404] ss:$72 sps:$4 sm:$0xff]  }
  0xdc   :  { %5534 = vmatprep.subr.bf16.mxu1 %v9756_v63  ;;  %v9841_v62 = vld [vmem:[#allocation3 + $0x40c] ss:$72 sps:$4 sm:$0xff]   ;;  %v9836_v63 = vld [vmem:[#allocation3 + $0x400] ss:$72 sps:$4 sm:$0xff]  }
  0xde   :  { %5412 = vmatpush1.bf16.msra.mxu0 %v9751_v0  ;;  %v9839_v0 = vld [vmem:[#allocation3 + $0x408] ss:$72 sps:$4 sm:$0xff]  }
  0xdf   :  { %5535 = vmatpush1.bf16.msra.mxu1 %v9754_v1  ;;  %5413 = vmatprep.subr.bf16.mxu0 %v9759_v2  ;;  %v9844_v1 = vld [vmem:[#allocation3 + $0x494] ss:$72 sps:$4 sm:$0xff]  }
  0xe0   :  { %5536 = vmatprep.subr.bf16.mxu1 %v9762_v3  ;;  %v9847_v2 = vld [vmem:[#allocation3 + $0x49c] ss:$72 sps:$4 sm:$0xff]   ;;  %v9842_v3 = vld [vmem:[#allocation3 + $0x490] ss:$72 sps:$4 sm:$0xff]  }
  0xe2   :  { %5414 = vmatpush1.bf16.msra.mxu0 %v9757_v4  ;;  %v9845_v4 = vld [vmem:[#allocation3 + $0x498] ss:$72 sps:$4 sm:$0xff]  }
  0xe3   :  { %5537 = vmatpush1.bf16.msra.mxu1 %v9760_v5  ;;  %5415 = vmatprep.subr.bf16.mxu0 %v9765_v6  ;;  %v9850_v5 = vld [vmem:[#allocation3 + $0x524] ss:$72 sps:$4 sm:$0xff]  }
  0xe4   :  { %5538 = vmatprep.subr.bf16.mxu1 %v9768_v7  ;;  %v9853_v6 = vld [vmem:[#allocation3 + $0x52c] ss:$72 sps:$4 sm:$0xff]   ;;  %v9848_v7 = vld [vmem:[#allocation3 + $0x520] ss:$72 sps:$4 sm:$0xff]  }
  0xe6   :  { %5416 = vmatpush1.bf16.msra.mxu0 %v9763_v8  ;;  %v9851_v8 = vld [vmem:[#allocation3 + $0x528] ss:$72 sps:$4 sm:$0xff]  }
  0xe7   :  { %5539 = vmatpush1.bf16.msra.mxu1 %v9766_v9  ;;  %5417 = vmatprep.subr.bf16.mxu0 %v9771_v10  ;;  %v9856_v9 = vld [vmem:[#allocation3 + $0x5b4] ss:$72 sps:$4 sm:$0xff]  }
  0xe8   :  { %5540 = vmatprep.subr.bf16.mxu1 %v9774_v11  ;;  %v9859_v10 = vld [vmem:[#allocation3 + $0x5bc] ss:$72 sps:$4 sm:$0xff]   ;;  %v9854_v11 = vld [vmem:[#allocation3 + $0x5b0] ss:$72 sps:$4 sm:$0xff]  }
  0xea   :  { %5418 = vmatpush1.bf16.msra.mxu0 %v9769_v12  ;;  %v9857_v12 = vld [vmem:[#allocation3 + $0x5b8] ss:$72 sps:$4 sm:$0xff]  }
  0xeb   :  { %5541 = vmatpush1.bf16.msra.mxu1 %v9772_v13  ;;  %5419 = vmatprep.subr.bf16.mxu0 %v9777_v14  ;;  %v9862_v13 = vld [vmem:[#allocation3 + $0x644] ss:$72 sps:$4 sm:$0xff]  }
  0xec   :  { %5542 = vmatprep.subr.bf16.mxu1 %v9780_v15  ;;  %v9865_v14 = vld [vmem:[#allocation3 + $0x64c] ss:$72 sps:$4 sm:$0xff]   ;;  %v9860_v15 = vld [vmem:[#allocation3 + $0x640] ss:$72 sps:$4 sm:$0xff]  }
  0xee   :  { %5420 = vmatpush1.bf16.msra.mxu0 %v9775_v17  ;;  %v9863_v17 = vld [vmem:[#allocation3 + $0x648] ss:$72 sps:$4 sm:$0xff]  }
  0xef   :  { %5543 = vmatpush1.bf16.msra.mxu1 %v9778_v20  ;;  %5421 = vmatprep.subr.bf16.mxu0 %v9783_v21  ;;  %v9868_v20 = vld [vmem:[#allocation3 + $0x6d4] ss:$72 sps:$4 sm:$0xff]  }
  0xf0   :  { %5544 = vmatprep.subr.bf16.mxu1 %v9786_v23  ;;  %v9871_v21 = vld [vmem:[#allocation3 + $0x6dc] ss:$72 sps:$4 sm:$0xff]   ;;  %v9866_v23 = vld [vmem:[#allocation3 + $0x6d0] ss:$72 sps:$4 sm:$0xff]  }
  0xf2   :  { %5422 = vmatpush1.bf16.msra.mxu0 %v9781_v24  ;;  %v9869_v24 = vld [vmem:[#allocation3 + $0x6d8] ss:$72 sps:$4 sm:$0xff]  }
  0xf3   :  { %5545 = vmatpush1.bf16.msra.mxu1 %v9784_v25  ;;  %5423 = vmatprep.subr.bf16.mxu0 %v9789_v27  ;;  %v9874_v25 = vld [vmem:[#allocation3 + $0x764] ss:$72 sps:$4 sm:$0xff]  }
  0xf4   :  { %5546 = vmatprep.subr.bf16.mxu1 %v9792_v28  ;;  %v9877_v27 = vld [vmem:[#allocation3 + $0x76c] ss:$72 sps:$4 sm:$0xff]   ;;  %v9872_v28 = vld [vmem:[#allocation3 + $0x760] ss:$72 sps:$4 sm:$0xff]  }
  0xf6   :  { %5424 = vmatpush1.bf16.msra.mxu0 %v9787_v29  ;;  %v9875_v29 = vld [vmem:[#allocation3 + $0x768] ss:$72 sps:$4 sm:$0xff]  }
  0xf7   :  { %5547 = vmatpush1.bf16.msra.mxu1 %v9790_v30  ;;  %5557 = vmatprep.subr.bf16.mxu0 %v9796_v31  ;;  %v9880_v30 = vld [vmem:[#allocation3 + $0x7f4] ss:$72 sps:$4 sm:$0xff]  }
  0xf8   :  { %5680 = vmatprep.subr.bf16.mxu1 %v9799_v32  ;;  %v9883_v31 = vld [vmem:[#allocation3 + $0x7fc] ss:$72 sps:$4 sm:$0xff]   ;;  %v9878_v32 = vld [vmem:[#allocation3 + $0x7f0] ss:$72 sps:$4 sm:$0xff]  }
  0xf9   :  { %5426 = vmatmul.mubr.bf16.vlgmr.msra.gmra.mrb[0].mxu0 %v11138_v19 }
  0xfa   :  { %5549 = vmatmul.mubr.bf16.vlgmr.msra.gmra.mrb[0].mxu1 %v11138_v19  ;;  %5558 = vmatpush1.bf16.msra.mxu0 %v9794_v33  ;;  %v9881_v33 = vld [vmem:[#allocation3 + $0x7f8] ss:$72 sps:$4 sm:$0xff]  }
  0xfb   :  { %5681 = vmatpush1.bf16.msra.mxu1 %v9797_v34  ;;  %5559 = vmatprep.subr.bf16.mxu0 %v9802_v35  ;;  %v9886_v34 = vld [vmem:[#allocation3 + $0x884] ss:$72 sps:$4 sm:$0xff]  }
  0xfc   :  { %5682 = vmatprep.subr.bf16.mxu1 %v9805_v36  ;;  %5589 = vmatprep.mubr.bf16.mxu0 %v11130_v60  ;;  %v9889_v35 = vld [vmem:[#allocation3 + $0x88c] ss:$72 sps:$4 sm:$0xff]   ;;  %v9884_v36 = vld [vmem:[#allocation3 + $0x880] ss:$72 sps:$4 sm:$0xff]  }
  0xfd   :  { %5712 = vmatprep.mubr.bf16.mxu1 %v11130_v60 }
  0xfe   :  { %5560 = vmatpush1.bf16.msra.mxu0 %v9800_v37  ;;  %v9887_v37 = vld [vmem:[#allocation3 + $0x888] ss:$72 sps:$4 sm:$0xff]  }
  0xff   :  { %5683 = vmatpush1.bf16.msra.mxu1 %v9803_v38  ;;  %5561 = vmatprep.subr.bf16.mxu0 %v9808_v39  ;;  %v9892_v38 = vld [vmem:[#allocation3 + $0x914] ss:$72 sps:$4 sm:$0xff]  }
 0x100   :  { %5684 = vmatprep.subr.bf16.mxu1 %v9811_v40  ;;  %v9895_v39 = vld [vmem:[#allocation3 + $0x91c] ss:$72 sps:$4 sm:$0xff]   ;;  %v9890_v40 = vld [vmem:[#allocation3 + $0x910] ss:$72 sps:$4 sm:$0xff]  }
 0x102   :  { %5562 = vmatpush1.bf16.msra.mxu0 %v9806_v41  ;;  %v9893_v41 = vld [vmem:[#allocation3 + $0x918] ss:$72 sps:$4 sm:$0xff]  }
 0x103   :  { %5685 = vmatpush1.bf16.msra.mxu1 %v9809_v42  ;;  %5563 = vmatprep.subr.bf16.mxu0 %v9814_v44  ;;  %v9898_v42 = vld [vmem:[#allocation3 + $0x9a4] ss:$72 sps:$4 sm:$0xff]  }
 0x104   :  { %5686 = vmatprep.subr.bf16.mxu1 %v9817_v45  ;;  %v9901_v44 = vld [vmem:[#allocation3 + $0x9ac] ss:$72 sps:$4 sm:$0xff]   ;;  %v9896_v45 = vld [vmem:[#allocation3 + $0x9a0] ss:$72 sps:$4 sm:$0xff]  }
 0x106   :  { %5564 = vmatpush1.bf16.msra.mxu0 %v9812_v46  ;;  %v9899_v46 = vld [vmem:[#allocation3 + $0x9a8] ss:$72 sps:$4 sm:$0xff]  }
 0x107   :  { %5687 = vmatpush1.bf16.msra.mxu1 %v9815_v47  ;;  %5565 = vmatprep.subr.bf16.mxu0 %v9820_v48  ;;  %v9904_v47 = vld [vmem:[#allocation3 + $0xa34] ss:$72 sps:$4 sm:$0xff]  }
 0x108   :  { %5688 = vmatprep.subr.bf16.mxu1 %v9823_v49  ;;  %v9907_v48 = vld [vmem:[#allocation3 + $0xa3c] ss:$72 sps:$4 sm:$0xff]   ;;  %v9902_v49 = vld [vmem:[#allocation3 + $0xa30] ss:$72 sps:$4 sm:$0xff]  }
 0x10a   :  { %5566 = vmatpush1.bf16.msra.mxu0 %v9818_v50  ;;  %v9905_v50 = vld [vmem:[#allocation3 + $0xa38] ss:$72 sps:$4 sm:$0xff]  }
 0x10b   :  { %5689 = vmatpush1.bf16.msra.mxu1 %v9821_v51  ;;  %5567 = vmatprep.subr.bf16.mxu0 %v9826_v52  ;;  %v9910_v51 = vld [vmem:[#allocation3 + $0xac4] ss:$72 sps:$4 sm:$0xff]  }
 0x10c   :  { %5690 = vmatprep.subr.bf16.mxu1 %v9829_v53  ;;  %v9913_v52 = vld [vmem:[#allocation3 + $0xacc] ss:$72 sps:$4 sm:$0xff]   ;;  %v9908_v53 = vld [vmem:[#allocation3 + $0xac0] ss:$72 sps:$4 sm:$0xff]  }
 0x10e   :  { %5568 = vmatpush1.bf16.msra.mxu0 %v9824_v54  ;;  %v9911_v54 = vld [vmem:[#allocation3 + $0xac8] ss:$72 sps:$4 sm:$0xff]  }
 0x10f   :  { %5691 = vmatpush1.bf16.msra.mxu1 %v9827_v55  ;;  %5569 = vmatprep.subr.bf16.mxu0 %v9832_v56  ;;  %v9916_v55 = vld [vmem:[#allocation3 + $0xb54] ss:$72 sps:$4 sm:$0xff]  }
 0x110   :  { %5692 = vmatprep.subr.bf16.mxu1 %v9835_v57  ;;  %v9919_v56 = vld [vmem:[#allocation3 + $0xb5c] ss:$72 sps:$4 sm:$0xff]   ;;  %v9914_v57 = vld [vmem:[#allocation3 + $0xb50] ss:$72 sps:$4 sm:$0xff]  }
 0x112   :  { %5570 = vmatpush1.bf16.msra.mxu0 %v9830_v58  ;;  %v9917_v58 = vld [vmem:[#allocation3 + $0xb58] ss:$72 sps:$4 sm:$0xff]  }
 0x113   :  { %5693 = vmatpush1.bf16.msra.mxu1 %v9833_v59  ;;  %5571 = vmatprep.subr.bf16.mxu0 %v9838_v61  ;;  %v9922_v59 = vld [vmem:[#allocation3 + $0xbe4] ss:$72 sps:$4 sm:$0xff]  }
 0x114   :  { %5694 = vmatprep.subr.bf16.mxu1 %v9841_v62  ;;  %v9925_v61 = vld [vmem:[#allocation3 + $0xbec] ss:$72 sps:$4 sm:$0xff]   ;;  %v9920_v62 = vld [vmem:[#allocation3 + $0xbe0] ss:$72 sps:$4 sm:$0xff]  }
 0x116   :  { %5572 = vmatpush1.bf16.msra.mxu0 %v9836_v63  ;;  %v9923_v63 = vld [vmem:[#allocation3 + $0xbe8] ss:$72 sps:$4 sm:$0xff]  }
 0x117   :  { %5695 = vmatpush1.bf16.msra.mxu1 %v9839_v0  ;;  %5573 = vmatprep.subr.bf16.mxu0 %v9844_v1  ;;  %v9928_v0 = vld [vmem:[#allocation3 + $0xc74] ss:$72 sps:$4 sm:$0xff]  }
 0x118   :  { %5696 = vmatprep.subr.bf16.mxu1 %v9847_v2  ;;  %v9931_v1 = vld [vmem:[#allocation3 + $0xc7c] ss:$72 sps:$4 sm:$0xff]   ;;  %v9926_v2 = vld [vmem:[#allocation3 + $0xc70] ss:$72 sps:$4 sm:$0xff]  }
 0x11a   :  { %5574 = vmatpush1.bf16.msra.mxu0 %v9842_v3  ;;  %v9929_v3 = vld [vmem:[#allocation3 + $0xc78] ss:$72 sps:$4 sm:$0xff]  }
 0x11b   :  { %5697 = vmatpush1.bf16.msra.mxu1 %v9845_v4  ;;  %5575 = vmatprep.subr.bf16.mxu0 %v9850_v5  ;;  %v9934_v4 = vld [vmem:[#allocation3 + $0xd04] ss:$72 sps:$4 sm:$0xff]  }
 0x11c   :  { %5698 = vmatprep.subr.bf16.mxu1 %v9853_v6  ;;  %v9937_v5 = vld [vmem:[#allocation3 + $0xd0c] ss:$72 sps:$4 sm:$0xff]   ;;  %v9932_v6 = vld [vmem:[#allocation3 + $0xd00] ss:$72 sps:$4 sm:$0xff]  }
 0x11e   :  { %5576 = vmatpush1.bf16.msra.mxu0 %v9848_v7  ;;  %v9935_v7 = vld [vmem:[#allocation3 + $0xd08] ss:$72 sps:$4 sm:$0xff]  }
 0x11f   :  { %5699 = vmatpush1.bf16.msra.mxu1 %v9851_v8  ;;  %5577 = vmatprep.subr.bf16.mxu0 %v9856_v9  ;;  %v11060_v8 = vmov 0.0   ;;  %v9940_v9 = vld [vmem:[#allocation3 + $0xd94] ss:$72 sps:$4 sm:$0xff]  }
 0x120   :  { %5700 = vmatprep.subr.bf16.mxu1 %v9859_v10  ;;  %66 = vst [vmem:[#allocation2 + $0x20] sm:$0xf] %v11060_v8  ;;  %v9943_v10 = vld [vmem:[#allocation3 + $0xd9c] ss:$72 sps:$4 sm:$0xff]  }
 0x121   :  { %v10024_v8 = vld [vmem:[#allocation3 + $0x1574] ss:$72 sps:$4 sm:$0xff]  }
 0x122   :  { %5578 = vmatpush1.bf16.msra.mxu0 %v9854_v11  ;;  %v9938_v11 = vld [vmem:[#allocation3 + $0xd90] ss:$72 sps:$4 sm:$0xff]  }
 0x123   :  { %5701 = vmatpush1.bf16.msra.mxu1 %v9857_v12  ;;  %5579 = vmatprep.subr.bf16.mxu0 %v9862_v13  ;;  %v9941_v12 = vld [vmem:[#allocation3 + $0xd98] ss:$72 sps:$4 sm:$0xff]   ;;  %v9946_v13 = vld [vmem:[#allocation3 + $0xe24] ss:$72 sps:$4 sm:$0xff]  }
 0x124   :  { %5702 = vmatprep.subr.bf16.mxu1 %v9865_v14  ;;  %v9949_v14 = vld [vmem:[#allocation3 + $0xe2c] ss:$72 sps:$4 sm:$0xff]  }
 0x126   :  { %5580 = vmatpush1.bf16.msra.mxu0 %v9860_v15  ;;  %v9944_v15 = vld [vmem:[#allocation3 + $0xe20] ss:$72 sps:$4 sm:$0xff]  }
 0x127   :  { %5703 = vmatpush1.bf16.msra.mxu1 %v9863_v17  ;;  %5581 = vmatprep.subr.bf16.mxu0 %v9868_v20  ;;  %v9947_v17 = vld [vmem:[#allocation3 + $0xe28] ss:$72 sps:$4 sm:$0xff]   ;;  %v9952_v20 = vld [vmem:[#allocation3 + $0xeb4] ss:$72 sps:$4 sm:$0xff]  }
 0x128   :  { %5704 = vmatprep.subr.bf16.mxu1 %v9871_v21  ;;  %v9955_v21 = vld [vmem:[#allocation3 + $0xebc] ss:$72 sps:$4 sm:$0xff]  }
 0x12a   :  { %5582 = vmatpush1.bf16.msra.mxu0 %v9866_v23  ;;  %v9950_v23 = vld [vmem:[#allocation3 + $0xeb0] ss:$72 sps:$4 sm:$0xff]  }
 0x12b   :  { %5705 = vmatpush1.bf16.msra.mxu1 %v9869_v24  ;;  %5583 = vmatprep.subr.bf16.mxu0 %v9874_v25  ;;  %v9953_v24 = vld [vmem:[#allocation3 + $0xeb8] ss:$72 sps:$4 sm:$0xff]   ;;  %v9958_v25 = vld [vmem:[#allocation3 + $0xf44] ss:$72 sps:$4 sm:$0xff]  }
 0x12c   :  { %5706 = vmatprep.subr.bf16.mxu1 %v9877_v27  ;;  %v9961_v27 = vld [vmem:[#allocation3 + $0xf4c] ss:$72 sps:$4 sm:$0xff]  }
 0x12e   :  { %5584 = vmatpush1.bf16.msra.mxu0 %v9872_v28  ;;  %v9956_v28 = vld [vmem:[#allocation3 + $0xf40] ss:$72 sps:$4 sm:$0xff]  }
 0x12f   :  { %5707 = vmatpush1.bf16.msra.mxu1 %v9875_v29  ;;  %5585 = vmatprep.subr.bf16.mxu0 %v9880_v30  ;;  %v9959_v29 = vld [vmem:[#allocation3 + $0xf48] ss:$72 sps:$4 sm:$0xff]   ;;  %v9964_v30 = vld [vmem:[#allocation3 + $0xfd4] ss:$72 sps:$4 sm:$0xff]  }
 0x130   :  { %5708 = vmatprep.subr.bf16.mxu1 %v9883_v31  ;;  %v9967_v31 = vld [vmem:[#allocation3 + $0xfdc] ss:$72 sps:$4 sm:$0xff]  }
 0x132   :  { %5586 = vmatpush1.bf16.msra.mxu0 %v9878_v32  ;;  %v9962_v32 = vld [vmem:[#allocation3 + $0xfd0] ss:$72 sps:$4 sm:$0xff]  }
 0x133   :  { %5709 = vmatpush1.bf16.msra.mxu1 %v9881_v33  ;;  %5587 = vmatprep.subr.bf16.mxu0 %v9886_v34  ;;  %v9965_v33 = vld [vmem:[#allocation3 + $0xfd8] ss:$72 sps:$4 sm:$0xff]   ;;  %v9970_v34 = vld [vmem:[#allocation3 + $0x1064] ss:$72 sps:$4 sm:$0xff]  }
 0x134   :  { %5710 = vmatprep.subr.bf16.mxu1 %v9889_v35  ;;  %v9973_v35 = vld [vmem:[#allocation3 + $0x106c] ss:$72 sps:$4 sm:$0xff]  }
 0x136   :  { %5588 = vmatpush1.bf16.msra.mxu0 %v9884_v36  ;;  %v9968_v36 = vld [vmem:[#allocation3 + $0x1060] ss:$72 sps:$4 sm:$0xff]  }
 0x137   :  { %5711 = vmatpush1.bf16.msra.mxu1 %v9887_v37  ;;  %5598 = vmatprep.subr.bf16.mxu0 %v9892_v38  ;;  %v9971_v37 = vld [vmem:[#allocation3 + $0x1068] ss:$72 sps:$4 sm:$0xff]   ;;  %v9976_v38 = vld [vmem:[#allocation3 + $0x10f4] ss:$72 sps:$4 sm:$0xff]  }
 0x138   :  { %5721 = vmatprep.subr.bf16.mxu1 %v9895_v39  ;;  %v9979_v39 = vld [vmem:[#allocation3 + $0x10fc] ss:$72 sps:$4 sm:$0xff]  }
 0x139   :  { %5590 = vmatmul.mubr.bf16.vlgmr.msra.gmra.mrb[4].mxu0 %v11134_v16 }
 0x13a   :  { %5713 = vmatmul.mubr.bf16.vlgmr.msra.gmra.mrb[4].mxu1 %v11134_v16  ;;  %5599 = vmatpush1.bf16.msra.mxu0 %v9890_v40  ;;  %v9974_v40 = vld [vmem:[#allocation3 + $0x10f0] ss:$72 sps:$4 sm:$0xff]  }
 0x13b   :  { %5722 = vmatpush1.bf16.msra.mxu1 %v9893_v41  ;;  %5600 = vmatprep.subr.bf16.mxu0 %v9898_v42  ;;  %v9977_v41 = vld [vmem:[#allocation3 + $0x10f8] ss:$72 sps:$4 sm:$0xff]   ;;  %v9982_v42 = vld [vmem:[#allocation3 + $0x1184] ss:$72 sps:$4 sm:$0xff]  }
 0x13c   :  { %5723 = vmatprep.subr.bf16.mxu1 %v9901_v44  ;;  %5630 = vmatprep.mubr.bf16.mxu0 %v11142_v22  ;;  %v9985_v44 = vld [vmem:[#allocation3 + $0x118c] ss:$72 sps:$4 sm:$0xff]  }
 0x13d   :  { %5753 = vmatprep.mubr.bf16.mxu1 %v11142_v22 }
 0x13e   :  { %5601 = vmatpush1.bf16.msra.mxu0 %v9896_v45  ;;  %v9980_v45 = vld [vmem:[#allocation3 + $0x1180] ss:$72 sps:$4 sm:$0xff]  }
 0x13f   :  { %5724 = vmatpush1.bf16.msra.mxu1 %v9899_v46  ;;  %5602 = vmatprep.subr.bf16.mxu0 %v9904_v47  ;;  %v9983_v46 = vld [vmem:[#allocation3 + $0x1188] ss:$72 sps:$4 sm:$0xff]   ;;  %v9988_v47 = vld [vmem:[#allocation3 + $0x1214] ss:$72 sps:$4 sm:$0xff]  }
 0x140   :  { %5725 = vmatprep.subr.bf16.mxu1 %v9907_v48  ;;  %v9991_v48 = vld [vmem:[#allocation3 + $0x121c] ss:$72 sps:$4 sm:$0xff]  }
 0x142   :  { %5603 = vmatpush1.bf16.msra.mxu0 %v9902_v49  ;;  %v9986_v49 = vld [vmem:[#allocation3 + $0x1210] ss:$72 sps:$4 sm:$0xff]  }
 0x143   :  { %5726 = vmatpush1.bf16.msra.mxu1 %v9905_v50  ;;  %5604 = vmatprep.subr.bf16.mxu0 %v9910_v51  ;;  %v9989_v50 = vld [vmem:[#allocation3 + $0x1218] ss:$72 sps:$4 sm:$0xff]   ;;  %v9994_v51 = vld [vmem:[#allocation3 + $0x12a4] ss:$72 sps:$4 sm:$0xff]  }
 0x144   :  { %5727 = vmatprep.subr.bf16.mxu1 %v9913_v52  ;;  %v9997_v52 = vld [vmem:[#allocation3 + $0x12ac] ss:$72 sps:$4 sm:$0xff]  }
 0x146   :  { %5605 = vmatpush1.bf16.msra.mxu0 %v9908_v53  ;;  %v9992_v53 = vld [vmem:[#allocation3 + $0x12a0] ss:$72 sps:$4 sm:$0xff]  }
 0x147   :  { %5728 = vmatpush1.bf16.msra.mxu1 %v9911_v54  ;;  %5606 = vmatprep.subr.bf16.mxu0 %v9916_v55  ;;  %v9995_v54 = vld [vmem:[#allocation3 + $0x12a8] ss:$72 sps:$4 sm:$0xff]   ;;  %v10000_v55 = vld [vmem:[#allocation3 + $0x1334] ss:$72 sps:$4 sm:$0xff]  }
 0x148   :  { %5729 = vmatprep.subr.bf16.mxu1 %v9919_v56  ;;  %v10003_v56 = vld [vmem:[#allocation3 + $0x133c] ss:$72 sps:$4 sm:$0xff]  }
 0x14a   :  { %5607 = vmatpush1.bf16.msra.mxu0 %v9914_v57  ;;  %v9998_v57 = vld [vmem:[#allocation3 + $0x1330] ss:$72 sps:$4 sm:$0xff]  }
 0x14b   :  { %5730 = vmatpush1.bf16.msra.mxu1 %v9917_v58  ;;  %5608 = vmatprep.subr.bf16.mxu0 %v9922_v59  ;;  %v10001_v58 = vld [vmem:[#allocation3 + $0x1338] ss:$72 sps:$4 sm:$0xff]   ;;  %v10006_v59 = vld [vmem:[#allocation3 + $0x13c4] ss:$72 sps:$4 sm:$0xff]  }
 0x14c   :  { %5731 = vmatprep.subr.bf16.mxu1 %v9925_v61  ;;  %v10009_v61 = vld [vmem:[#allocation3 + $0x13cc] ss:$72 sps:$4 sm:$0xff]  }
 0x14e   :  { %5609 = vmatpush1.bf16.msra.mxu0 %v9920_v62  ;;  %v10004_v62 = vld [vmem:[#allocation3 + $0x13c0] ss:$72 sps:$4 sm:$0xff]  }
 0x14f   :  { %5732 = vmatpush1.bf16.msra.mxu1 %v9923_v63  ;;  %5610 = vmatprep.subr.bf16.mxu0 %v9928_v0  ;;  %v10007_v63 = vld [vmem:[#allocation3 + $0x13c8] ss:$72 sps:$4 sm:$0xff]   ;;  %v10012_v0 = vld [vmem:[#allocation3 + $0x1454] ss:$72 sps:$4 sm:$0xff]  }
 0x150   :  { %5733 = vmatprep.subr.bf16.mxu1 %v9931_v1  ;;  %v10015_v1 = vld [vmem:[#allocation3 + $0x145c] ss:$72 sps:$4 sm:$0xff]  }
 0x152   :  { %5611 = vmatpush1.bf16.msra.mxu0 %v9926_v2  ;;  %v10010_v2 = vld [vmem:[#allocation3 + $0x1450] ss:$72 sps:$4 sm:$0xff]  }
 0x153   :  { %5734 = vmatpush1.bf16.msra.mxu1 %v9929_v3  ;;  %5612 = vmatprep.subr.bf16.mxu0 %v9934_v4  ;;  %v10013_v3 = vld [vmem:[#allocation3 + $0x1458] ss:$72 sps:$4 sm:$0xff]   ;;  %v10018_v4 = vld [vmem:[#allocation3 + $0x14e4] ss:$72 sps:$4 sm:$0xff]  }
 0x154   :  { %5735 = vmatprep.subr.bf16.mxu1 %v9937_v5  ;;  %v10021_v5 = vld [vmem:[#allocation3 + $0x14ec] ss:$72 sps:$4 sm:$0xff]  }
 0x156   :  { %5613 = vmatpush1.bf16.msra.mxu0 %v9932_v6  ;;  %v10016_v6 = vld [vmem:[#allocation3 + $0x14e0] ss:$72 sps:$4 sm:$0xff]  }
 0x157   :  { %5736 = vmatpush1.bf16.msra.mxu1 %v9935_v7  ;;  %5614 = vmatprep.subr.bf16.mxu0 %v9940_v9  ;;  %v10019_v7 = vld [vmem:[#allocation3 + $0x14e8] ss:$72 sps:$4 sm:$0xff]   ;;  %v10027_v9 = vld [vmem:[#allocation3 + $0x157c] ss:$72 sps:$4 sm:$0xff]  }
 0x158   :  { %5737 = vmatprep.subr.bf16.mxu1 %v9943_v10  ;;  %v10022_v10 = vld [vmem:[#allocation3 + $0x1570] ss:$72 sps:$4 sm:$0xff]  }
 0x15a   :  { %5615 = vmatpush1.bf16.msra.mxu0 %v9938_v11  ;;  %v10025_v11 = vld [vmem:[#allocation3 + $0x1578] ss:$72 sps:$4 sm:$0xff]  }
 0x15b   :  { %5738 = vmatpush1.bf16.msra.mxu1 %v9941_v12  ;;  %5616 = vmatprep.subr.bf16.mxu0 %v9946_v13  ;;  %v10030_v12 = vld [vmem:[#allocation3 + $0x1604] ss:$72 sps:$4 sm:$0xff]  }
 0x15c   :  { %5739 = vmatprep.subr.bf16.mxu1 %v9949_v14  ;;  %v10033_v13 = vld [vmem:[#allocation3 + $0x160c] ss:$72 sps:$4 sm:$0xff]   ;;  %v10028_v14 = vld [vmem:[#allocation3 + $0x1600] ss:$72 sps:$4 sm:$0xff]  }
 0x15e   :  { %5617 = vmatpush1.bf16.msra.mxu0 %v9944_v15  ;;  %v10031_v15 = vld [vmem:[#allocation3 + $0x1608] ss:$72 sps:$4 sm:$0xff]  }
 0x15f   :  { %5740 = vmatpush1.bf16.msra.mxu1 %v9947_v17  ;;  %5618 = vmatprep.subr.bf16.mxu0 %v9952_v20  ;;  %v10036_v17 = vld [vmem:[#allocation3 + $0x1694] ss:$72 sps:$4 sm:$0xff]  }
 0x160   :  { %5741 = vmatprep.subr.bf16.mxu1 %v9955_v21  ;;  %v10039_v20 = vld [vmem:[#allocation3 + $0x169c] ss:$72 sps:$4 sm:$0xff]   ;;  %v10034_v21 = vld [vmem:[#allocation3 + $0x1690] ss:$72 sps:$4 sm:$0xff]  }
 0x162   :  { %5619 = vmatpush1.bf16.msra.mxu0 %v9950_v23  ;;  %v10037_v23 = vld [vmem:[#allocation3 + $0x1698] ss:$72 sps:$4 sm:$0xff]  }
 0x163   :  { %5742 = vmatpush1.bf16.msra.mxu1 %v9953_v24  ;;  %5620 = vmatprep.subr.bf16.mxu0 %v9958_v25  ;;  %v10042_v24 = vld [vmem:[#allocation3 + $0x1724] ss:$72 sps:$4 sm:$0xff]  }
 0x164   :  { %5743 = vmatprep.subr.bf16.mxu1 %v9961_v27  ;;  %v10045_v25 = vld [vmem:[#allocation3 + $0x172c] ss:$72 sps:$4 sm:$0xff]   ;;  %v10040_v27 = vld [vmem:[#allocation3 + $0x1720] ss:$72 sps:$4 sm:$0xff]  }
 0x166   :  { %5621 = vmatpush1.bf16.msra.mxu0 %v9956_v28  ;;  %v10043_v28 = vld [vmem:[#allocation3 + $0x1728] ss:$72 sps:$4 sm:$0xff]  }
 0x167   :  { %5744 = vmatpush1.bf16.msra.mxu1 %v9959_v29  ;;  %5622 = vmatprep.subr.bf16.mxu0 %v9964_v30  ;;  %v10048_v29 = vld [vmem:[#allocation3 + $0x17b4] ss:$72 sps:$4 sm:$0xff]  }
 0x168   :  { %5745 = vmatprep.subr.bf16.mxu1 %v9967_v31  ;;  %v10051_v30 = vld [vmem:[#allocation3 + $0x17bc] ss:$72 sps:$4 sm:$0xff]   ;;  %v10046_v31 = vld [vmem:[#allocation3 + $0x17b0] ss:$72 sps:$4 sm:$0xff]  }
 0x16a   :  { %5623 = vmatpush1.bf16.msra.mxu0 %v9962_v32  ;;  %v10049_v32 = vld [vmem:[#allocation3 + $0x17b8] ss:$72 sps:$4 sm:$0xff]  }
 0x16b   :  { %5746 = vmatpush1.bf16.msra.mxu1 %v9965_v33  ;;  %5624 = vmatprep.subr.bf16.mxu0 %v9970_v34  ;;  %v10054_v33 = vld [vmem:[#allocation3 + $0x1844] ss:$72 sps:$4 sm:$0xff]  }
 0x16c   :  { %5747 = vmatprep.subr.bf16.mxu1 %v9973_v35  ;;  %v10057_v34 = vld [vmem:[#allocation3 + $0x184c] ss:$72 sps:$4 sm:$0xff]   ;;  %v10052_v35 = vld [vmem:[#allocation3 + $0x1840] ss:$72 sps:$4 sm:$0xff]  }
 0x16e   :  { %5625 = vmatpush1.bf16.msra.mxu0 %v9968_v36  ;;  %v10055_v36 = vld [vmem:[#allocation3 + $0x1848] ss:$72 sps:$4 sm:$0xff]  }
 0x16f   :  { %5748 = vmatpush1.bf16.msra.mxu1 %v9971_v37  ;;  %5626 = vmatprep.subr.bf16.mxu0 %v9976_v38  ;;  %v10060_v37 = vld [vmem:[#allocation3 + $0x18d4] ss:$72 sps:$4 sm:$0xff]  }
 0x170   :  { %5749 = vmatprep.subr.bf16.mxu1 %v9979_v39  ;;  %v10063_v38 = vld [vmem:[#allocation3 + $0x18dc] ss:$72 sps:$4 sm:$0xff]   ;;  %v10058_v39 = vld [vmem:[#allocation3 + $0x18d0] ss:$72 sps:$4 sm:$0xff]  }
 0x172   :  { %5627 = vmatpush1.bf16.msra.mxu0 %v9974_v40  ;;  %v10061_v40 = vld [vmem:[#allocation3 + $0x18d8] ss:$72 sps:$4 sm:$0xff]  }
 0x173   :  { %5750 = vmatpush1.bf16.msra.mxu1 %v9977_v41  ;;  %5628 = vmatprep.subr.bf16.mxu0 %v9982_v42  ;;  %v10066_v41 = vld [vmem:[#allocation3 + $0x1964] ss:$72 sps:$4 sm:$0xff]  }
 0x174   :  { %5751 = vmatprep.subr.bf16.mxu1 %v9985_v44  ;;  %v10069_v42 = vld [vmem:[#allocation3 + $0x196c] ss:$72 sps:$4 sm:$0xff]   ;;  %v10064_v44 = vld [vmem:[#allocation3 + $0x1960] ss:$72 sps:$4 sm:$0xff]  }
 0x176   :  { %5629 = vmatpush1.bf16.msra.mxu0 %v9980_v45  ;;  %v10067_v45 = vld [vmem:[#allocation3 + $0x1968] ss:$72 sps:$4 sm:$0xff]  }
 0x177   :  { %5752 = vmatpush1.bf16.msra.mxu1 %v9983_v46  ;;  %5639 = vmatprep.subr.bf16.mxu0 %v9988_v47  ;;  %v10072_v46 = vld [vmem:[#allocation3 + $0x19f4] ss:$72 sps:$4 sm:$0xff]  }
 0x178   :  { %5762 = vmatprep.subr.bf16.mxu1 %v9991_v48  ;;  %v10075_v47 = vld [vmem:[#allocation3 + $0x19fc] ss:$72 sps:$4 sm:$0xff]   ;;  %v10070_v48 = vld [vmem:[#allocation3 + $0x19f0] ss:$72 sps:$4 sm:$0xff]  }
 0x179   :  { %5631 = vmatmul.mubr.bf16.vlgmr.msra.gmra.mrb[4].mxu0 %v11150_v26 }
 0x17a   :  { %5754 = vmatmul.mubr.bf16.vlgmr.msra.gmra.mrb[4].mxu1 %v11150_v26  ;;  %5640 = vmatpush1.bf16.msra.mxu0 %v9986_v49  ;;  %v10073_v49 = vld [vmem:[#allocation3 + $0x19f8] ss:$72 sps:$4 sm:$0xff]  }
 0x17b   :  { %5763 = vmatpush1.bf16.msra.mxu1 %v9989_v50  ;;  %5641 = vmatprep.subr.bf16.mxu0 %v9994_v51  ;;  %v10078_v50 = vld [vmem:[#allocation3 + $0x1a84] ss:$72 sps:$4 sm:$0xff]  }
 0x17c   :  { %5764 = vmatprep.subr.bf16.mxu1 %v9997_v52  ;;  %5671 = vmatprep.mubr.bf16.mxu0 %v11136_v18  ;;  %v10081_v51 = vld [vmem:[#allocation3 + $0x1a8c] ss:$72 sps:$4 sm:$0xff]   ;;  %v10076_v52 = vld [vmem:[#allocation3 + $0x1a80] ss:$72 sps:$4 sm:$0xff]  }
 0x17d   :  { %5794 = vmatprep.mubr.bf16.mxu1 %v11136_v18 }
 0x17e   :  { %5642 = vmatpush1.bf16.msra.mxu0 %v9992_v53  ;;  %v10079_v53 = vld [vmem:[#allocation3 + $0x1a88] ss:$72 sps:$4 sm:$0xff]  }
 0x17f   :  { %5765 = vmatpush1.bf16.msra.mxu1 %v9995_v54  ;;  %5643 = vmatprep.subr.bf16.mxu0 %v10000_v55  ;;  %v10084_v54 = vld [vmem:[#allocation3 + $0x24] ss:$72 sps:$4 sm:$0xff]  }
 0x180   :  { %5766 = vmatprep.subr.bf16.mxu1 %v10003_v56  ;;  %v10087_v55 = vld [vmem:[#allocation3 + $0x2c] ss:$72 sps:$4 sm:$0xff]   ;;  %v10082_v56 = vld [vmem:[#allocation3 + $0x20] ss:$72 sps:$4 sm:$0xff]  }
 0x182   :  { %5644 = vmatpush1.bf16.msra.mxu0 %v9998_v57  ;;  %v10085_v57 = vld [vmem:[#allocation3 + $0x28] ss:$72 sps:$4 sm:$0xff]  }
 0x183   :  { %5767 = vmatpush1.bf16.msra.mxu1 %v10001_v58  ;;  %5645 = vmatprep.subr.bf16.mxu0 %v10006_v59  ;;  %v10090_v58 = vld [vmem:[#allocation3 + $0xb4] ss:$72 sps:$4 sm:$0xff]  }
 0x184   :  { %5768 = vmatprep.subr.bf16.mxu1 %v10009_v61  ;;  %v10093_v59 = vld [vmem:[#allocation3 + $0xbc] ss:$72 sps:$4 sm:$0xff]   ;;  %v10088_v61 = vld [vmem:[#allocation3 + $0xb0] ss:$72 sps:$4 sm:$0xff]  }
 0x186   :  { %5646 = vmatpush1.bf16.msra.mxu0 %v10004_v62  ;;  %v10091_v62 = vld [vmem:[#allocation3 + $0xb8] ss:$72 sps:$4 sm:$0xff]  }
 0x187   :  { %5769 = vmatpush1.bf16.msra.mxu1 %v10007_v63  ;;  %5647 = vmatprep.subr.bf16.mxu0 %v10012_v0  ;;  %v10096_v63 = vld [vmem:[#allocation3 + $0x144] ss:$72 sps:$4 sm:$0xff]  }
 0x188   :  { %5770 = vmatprep.subr.bf16.mxu1 %v10015_v1  ;;  %v10099_v0 = vld [vmem:[#allocation3 + $0x14c] ss:$72 sps:$4 sm:$0xff]   ;;  %v10094_v1 = vld [vmem:[#allocation3 + $0x140] ss:$72 sps:$4 sm:$0xff]  }
 0x18a   :  { %5648 = vmatpush1.bf16.msra.mxu0 %v10010_v2  ;;  %v10097_v2 = vld [vmem:[#allocation3 + $0x148] ss:$72 sps:$4 sm:$0xff]  }
 0x18b   :  { %5771 = vmatpush1.bf16.msra.mxu1 %v10013_v3  ;;  %5649 = vmatprep.subr.bf16.mxu0 %v10018_v4  ;;  %v10102_v3 = vld [vmem:[#allocation3 + $0x1d4] ss:$72 sps:$4 sm:$0xff]  }
 0x18c   :  { %5772 = vmatprep.subr.bf16.mxu1 %v10021_v5  ;;  %v10105_v4 = vld [vmem:[#allocation3 + $0x1dc] ss:$72 sps:$4 sm:$0xff]   ;;  %v10100_v5 = vld [vmem:[#allocation3 + $0x1d0] ss:$72 sps:$4 sm:$0xff]  }
 0x18e   :  { %5650 = vmatpush1.bf16.msra.mxu0 %v10016_v6  ;;  %v10103_v6 = vld [vmem:[#allocation3 + $0x1d8] ss:$72 sps:$4 sm:$0xff]  }
 0x18f   :  { %5773 = vmatpush1.bf16.msra.mxu1 %v10019_v7  ;;  %5651 = vmatprep.subr.bf16.mxu0 %v10024_v8  ;;  %v10108_v7 = vld [vmem:[#allocation3 + $0x264] ss:$72 sps:$4 sm:$0xff]  }
 0x190   :  { %5774 = vmatprep.subr.bf16.mxu1 %v10027_v9  ;;  %v10111_v8 = vld [vmem:[#allocation3 + $0x26c] ss:$72 sps:$4 sm:$0xff]   ;;  %v11061_v9 = vmov 1983009808  }
 0x192   :  { %5652 = vmatpush1.bf16.msra.mxu0 %v10022_v10  ;;  %v6439_v10 = vunpack.c.l.s4 %v11061_v9  ;;  %v10169_v9 = vld [vmem:[#allocation3 + $0x808] ss:$72 sps:$4 sm:$0xff]  }
 0x193   :  { %5775 = vmatpush1.bf16.msra.mxu1 %v10025_v11  ;;  %5653 = vmatprep.subr.bf16.mxu0 %v10030_v12  ;;  %v10106_v11 = vld [vmem:[#allocation3 + $0x260] ss:$72 sps:$4 sm:$0xff]  }
 0x194   :  { %5776 = vmatprep.subr.bf16.mxu1 %v10033_v13  ;;  %v10109_v12 = vld [vmem:[#allocation3 + $0x268] ss:$72 sps:$4 sm:$0xff]   ;;  %v10114_v13 = vld [vmem:[#allocation3 + $0x2f4] ss:$72 sps:$4 sm:$0xff]  }
 0x196   :  { %5654 = vmatpush1.bf16.msra.mxu0 %v10028_v14  ;;  %v10117_v14 = vld [vmem:[#allocation3 + $0x2fc] ss:$72 sps:$4 sm:$0xff]  }
 0x197   :  { %5777 = vmatpush1.bf16.msra.mxu1 %v10031_v15  ;;  %5655 = vmatprep.subr.bf16.mxu0 %v10036_v17  ;;  %v6440_v15 = vunpack.c.0.s8 %v6439_v10  ;;  %v10112_v17 = vld [vmem:[#allocation3 + $0x2f0] ss:$72 sps:$4 sm:$0xff]   ;;  %v10174_v10 = vld [vmem:[#allocation3 + $0x894] ss:$72 sps:$4 sm:$0xff]  }
 0x198   :  { %5778 = vmatprep.subr.bf16.mxu1 %v10039_v20  ;;  %v10115_v20 = vld [vmem:[#allocation3 + $0x2f8] ss:$72 sps:$4 sm:$0xff]  }
 0x19a   :  { %5656 = vmatpush1.bf16.msra.mxu0 %v10034_v21  ;;  %v10120_v21 = vld [vmem:[#allocation3 + $0x384] ss:$72 sps:$4 sm:$0xff]  }
 0x19b   :  { %5779 = vmatpush1.bf16.msra.mxu1 %v10037_v23  ;;  %5657 = vmatprep.subr.bf16.mxu0 %v10042_v24  ;;  %v10123_v23 = vld [vmem:[#allocation3 + $0x38c] ss:$72 sps:$4 sm:$0xff]   ;;  %v11173_v24 = vsub.s32 %v6440_v15, %v11124_v43 }
 0x19c   :  { %5780 = vmatprep.subr.bf16.mxu1 %v10045_v25  ;;  %v10183_v15 = vld [vmem:[#allocation3 + $0x92c] ss:$72 sps:$4 sm:$0xff]  }
 0x19e   :  { %5658 = vmatpush1.bf16.msra.mxu0 %v10040_v27 }
 0x19f   :  { %5781 = vmatpush1.bf16.msra.mxu1 %v10043_v28  ;;  %5659 = vmatprep.subr.bf16.mxu0 %v10048_v29 }
 0x1a0   :  { %5782 = vmatprep.subr.bf16.mxu1 %v10051_v30 }
 0x1a2   :  { %5660 = vmatpush1.bf16.msra.mxu0 %v10046_v31 }
 0x1a3   :  { %5783 = vmatpush1.bf16.msra.mxu1 %v10049_v32  ;;  %5661 = vmatprep.subr.bf16.mxu0 %v10054_v33 }
 0x1a4   :  { %5784 = vmatprep.subr.bf16.mxu1 %v10057_v34  ;;  %v10118_v34 = vld [vmem:[#allocation3 + $0x380] ss:$72 sps:$4 sm:$0xff]  }
 0x1a6   :  { %5662 = vmatpush1.bf16.msra.mxu0 %v10052_v35  ;;  %v10121_v35 = vld [vmem:[#allocation3 + $0x388] ss:$72 sps:$4 sm:$0xff]  }
 0x1a7   :  { %5785 = vmatpush1.bf16.msra.mxu1 %v10055_v36  ;;  %5663 = vmatprep.subr.bf16.mxu0 %v10060_v37 }
 0x1a8   :  { %5786 = vmatprep.subr.bf16.mxu1 %v10063_v38  ;;  %v10126_v38 = vld [vmem:[#allocation3 + $0x414] ss:$72 sps:$4 sm:$0xff]  }
 0x1aa   :  { %5664 = vmatpush1.bf16.msra.mxu0 %v10058_v39  ;;  %v10129_v39 = vld [vmem:[#allocation3 + $0x41c] ss:$72 sps:$4 sm:$0xff]  }
 0x1ab   :  { %5787 = vmatpush1.bf16.msra.mxu1 %v10061_v40  ;;  %5665 = vmatprep.subr.bf16.mxu0 %v10066_v41 }
 0x1ac   :  { %5788 = vmatprep.subr.bf16.mxu1 %v10069_v42  ;;  %v10124_v42 = vld [vmem:[#allocation3 + $0x410] ss:$72 sps:$4 sm:$0xff]  }
 0x1ae   :  { %5666 = vmatpush1.bf16.msra.mxu0 %v10064_v44  ;;  %v10127_v44 = vld [vmem:[#allocation3 + $0x418] ss:$72 sps:$4 sm:$0xff]  }
 0x1af   :  { %5789 = vmatpush1.bf16.msra.mxu1 %v10067_v45  ;;  %5667 = vmatprep.subr.bf16.mxu0 %v10072_v46  ;;  %v10132_v45 = vld [vmem:[#allocation3 + $0x4a4] ss:$72 sps:$4 sm:$0xff]  }
 0x1b0   :  { %5790 = vmatprep.subr.bf16.mxu1 %v10075_v47  ;;  %v10135_v46 = vld [vmem:[#allocation3 + $0x4ac] ss:$72 sps:$4 sm:$0xff]   ;;  %v10130_v47 = vld [vmem:[#allocation3 + $0x4a0] ss:$72 sps:$4 sm:$0xff]  }
 0x1b2   :  { %5668 = vmatpush1.bf16.msra.mxu0 %v10070_v48  ;;  %v10133_v48 = vld [vmem:[#allocation3 + $0x4a8] ss:$72 sps:$4 sm:$0xff]  }
 0x1b3   :  { %5791 = vmatpush1.bf16.msra.mxu1 %v10073_v49  ;;  %5669 = vmatprep.subr.bf16.mxu0 %v10078_v50  ;;  %v10138_v49 = vld [vmem:[#allocation3 + $0x534] ss:$72 sps:$4 sm:$0xff]  }
 0x1b4   :  { %5792 = vmatprep.subr.bf16.mxu1 %v10081_v51  ;;  %v10141_v50 = vld [vmem:[#allocation3 + $0x53c] ss:$72 sps:$4 sm:$0xff]   ;;  %v10136_v51 = vld [vmem:[#allocation3 + $0x530] ss:$72 sps:$4 sm:$0xff]  }
 0x1b6   :  { %5670 = vmatpush1.bf16.msra.mxu0 %v10076_v52  ;;  %v10139_v52 = vld [vmem:[#allocation3 + $0x538] ss:$72 sps:$4 sm:$0xff]  }
 0x1b7   :  { %5793 = vmatpush1.bf16.msra.mxu1 %v10079_v53  ;;  %5803 = vmatprep.subr.bf16.mxu0 %v10084_v54  ;;  %v10144_v53 = vld [vmem:[#allocation3 + $0x5c4] ss:$72 sps:$4 sm:$0xff]  }
 0x1b8   :  { %5926 = vmatprep.subr.bf16.mxu1 %v10087_v55  ;;  %v10147_v54 = vld [vmem:[#allocation3 + $0x5cc] ss:$72 sps:$4 sm:$0xff]   ;;  %v10142_v55 = vld [vmem:[#allocation3 + $0x5c0] ss:$72 sps:$4 sm:$0xff]  }
 0x1b9   :  { %5672 = vmatmul.mubr.bf16.vlgmr.msra.gmra.mrb[4].mxu0 %v11138_v19 }
 0x1ba   :  { %5795 = vmatmul.mubr.bf16.vlgmr.msra.gmra.mrb[4].mxu1 %v11138_v19  ;;  %5804 = vmatpush1.bf16.msra.mxu0 %v10082_v56  ;;  %v10145_v56 = vld [vmem:[#allocation3 + $0x5c8] ss:$72 sps:$4 sm:$0xff]  }
 0x1bb   :  { %5927 = vmatpush1.bf16.msra.mxu1 %v10085_v57  ;;  %5805 = vmatprep.subr.bf16.mxu0 %v10090_v58  ;;  %v10150_v57 = vld [vmem:[#allocation3 + $0x654] ss:$72 sps:$4 sm:$0xff]  }
 0x1bc   :  { %5928 = vmatprep.subr.bf16.mxu1 %v10093_v59  ;;  %5835 = vmatprep.mubr.bf16.mxu0 %v11130_v60  ;;  %v10153_v58 = vld [vmem:[#allocation3 + $0x65c] ss:$72 sps:$4 sm:$0xff]   ;;  %v10148_v59 = vld [vmem:[#allocation3 + $0x650] ss:$72 sps:$4 sm:$0xff]  }
 0x1bd   :  { %5958 = vmatprep.mubr.bf16.mxu1 %v11130_v60 }
 0x1be   :  { %5806 = vmatpush1.bf16.msra.mxu0 %v10088_v61  ;;  %v10151_v61 = vld [vmem:[#allocation3 + $0x658] ss:$72 sps:$4 sm:$0xff]  }
 0x1bf   :  { %5929 = vmatpush1.bf16.msra.mxu1 %v10091_v62  ;;  %5807 = vmatprep.subr.bf16.mxu0 %v10096_v63  ;;  %v10156_v62 = vld [vmem:[#allocation3 + $0x6e4] ss:$72 sps:$4 sm:$0xff]  }
 0x1c0   :  { %5930 = vmatprep.subr.bf16.mxu1 %v10099_v0  ;;  %v10159_v63 = vld [vmem:[#allocation3 + $0x6ec] ss:$72 sps:$4 sm:$0xff]   ;;  %v10154_v0 = vld [vmem:[#allocation3 + $0x6e0] ss:$72 sps:$4 sm:$0xff]  }
 0x1c2   :  { %5808 = vmatpush1.bf16.msra.mxu0 %v10094_v1  ;;  %v10157_v1 = vld [vmem:[#allocation3 + $0x6e8] ss:$72 sps:$4 sm:$0xff]  }
 0x1c3   :  { %5931 = vmatpush1.bf16.msra.mxu1 %v10097_v2  ;;  %5809 = vmatprep.subr.bf16.mxu0 %v10102_v3  ;;  %v10162_v2 = vld [vmem:[#allocation3 + $0x774] ss:$72 sps:$4 sm:$0xff]  }
 0x1c4   :  { %5932 = vmatprep.subr.bf16.mxu1 %v10105_v4  ;;  %v10165_v3 = vld [vmem:[#allocation3 + $0x77c] ss:$72 sps:$4 sm:$0xff]   ;;  %v10160_v4 = vld [vmem:[#allocation3 + $0x770] ss:$72 sps:$4 sm:$0xff]  }
 0x1c6   :  { %5810 = vmatpush1.bf16.msra.mxu0 %v10100_v5  ;;  %v10163_v5 = vld [vmem:[#allocation3 + $0x778] ss:$72 sps:$4 sm:$0xff]  }
 0x1c7   :  { %5933 = vmatpush1.bf16.msra.mxu1 %v10103_v6  ;;  %5811 = vmatprep.subr.bf16.mxu0 %v10108_v7  ;;  %v10168_v6 = vld [vmem:[#allocation3 + $0x804] ss:$72 sps:$4 sm:$0xff]  }
 0x1c8   :  { %5934 = vmatprep.subr.bf16.mxu1 %v10111_v8  ;;  %v10171_v7 = vld [vmem:[#allocation3 + $0x80c] ss:$72 sps:$4 sm:$0xff]   ;;  %v10166_v8 = vld [vmem:[#allocation3 + $0x800] ss:$72 sps:$4 sm:$0xff]  }
 0x1ca   :  { %5812 = vmatpush1.bf16.msra.mxu0 %v10106_v11  ;;  %v10177_v11 = vld [vmem:[#allocation3 + $0x89c] ss:$72 sps:$4 sm:$0xff]  }
 0x1cb   :  { %5935 = vmatpush1.bf16.msra.mxu1 %v10109_v12  ;;  %5813 = vmatprep.subr.bf16.mxu0 %v10114_v13  ;;  %v10172_v12 = vld [vmem:[#allocation3 + $0x890] ss:$72 sps:$4 sm:$0xff]  }
 0x1cc   :  { %5936 = vmatprep.subr.bf16.mxu1 %v10117_v14  ;;  %v5427_v25 = vpop.f32.mrb[0].mxu0  ;;  %v10175_v13 = vld [vmem:[#allocation3 + $0x898] ss:$72 sps:$4 sm:$0xff]   ;;  %v10180_v14 = vld [vmem:[#allocation3 + $0x924] ss:$72 sps:$4 sm:$0xff]  }
 0x1cd   :  { %v5550_v27 = vpop.f32.mrb[0].mxu1  ;;  %v5429_v28 = vpop.f32.mrb[1].mxu0 }
 0x1ce   :  { %v5552_v29 = vpop.f32.mrb[1].mxu1  ;;  %v6436_v30 = vcombine.low %v5427_v25, %v5429_v28  ;;  %v5431_v32 = vpop.f32.mrb[2].mxu0  ;;  %5814 = vmatpush1.bf16.msra.mxu0 %v10112_v17  ;;  %v10178_v17 = vld [vmem:[#allocation3 + $0x920] ss:$72 sps:$4 sm:$0xff]   ;;  %v10184_v25 = vld [vmem:[#allocation3 + $0x9b0] ss:$72 sps:$4 sm:$0xff]  }
 0x1cf   :  { %v6437_v31 = vcombine.low %v5550_v27, %v5552_v29  ;;  %v5554_v33 = vpop.f32.mrb[2].mxu1  ;;  %5937 = vmatpush1.bf16.msra.mxu1 %v10115_v20  ;;  %v5432_v36 = vpop.f32.mrb[3].mxu0  ;;  %5815 = vmatprep.subr.bf16.mxu0 %v10120_v21  ;;  %v10181_v20 = vld [vmem:[#allocation3 + $0x928] ss:$72 sps:$4 sm:$0xff]   ;;  %v10186_v21 = vld [vmem:[#allocation3 + $0x9b4] ss:$72 sps:$4 sm:$0xff]  }
 0x1d0   :  { %v5555_v37 = vpop.f32.mrb[3].mxu1  ;;  %5938 = vmatprep.subr.bf16.mxu1 %v10123_v23  ;;  %v6444_v43 = vrot.slane %v6436_v30, %v11173_v24  ;;  %v10189_v23 = vld [vmem:[#allocation3 + $0x9bc] ss:$72 sps:$4 sm:$0xff]   ;;  %v10187_v27 = vld [vmem:[#allocation3 + $0x9b8] ss:$72 sps:$4 sm:$0xff]  }
 0x1d1   :  { %v6451_v40 = vrot.slane %v6437_v31, %v11173_v24  ;;  %v10192_v28 = vld [vmem:[#allocation3 + $0xa44] ss:$72 sps:$4 sm:$0xff]   ;;  %v10190_v30 = vld [vmem:[#allocation3 + $0xa40] ss:$72 sps:$4 sm:$0xff]   ;;  %v10198_v32 = vld [vmem:[#allocation3 + $0xad4] ss:$72 sps:$4 sm:$0xff]  }
 0x1d2   :  { %5816 = vmatpush1.bf16.msra.mxu0 %v10118_v34  ;;  %v10195_v29 = vld [vmem:[#allocation3 + $0xa4c] ss:$72 sps:$4 sm:$0xff]   ;;  %v10193_v31 = vld [vmem:[#allocation3 + $0xa48] ss:$72 sps:$4 sm:$0xff]   ;;  %v10201_v33 = vld [vmem:[#allocation3 + $0xadc] ss:$72 sps:$4 sm:$0xff]  }
 0x1d3   :  { %v6452_v41 = vcombine.low %v6444_v43, %v6451_v40  ;;  %5939 = vmatpush1.bf16.msra.mxu1 %v10121_v35  ;;  %5817 = vmatprep.subr.bf16.mxu0 %v10126_v38  ;;  %v10196_v34 = vld [vmem:[#allocation3 + $0xad0] ss:$72 sps:$4 sm:$0xff]   ;;  %v10204_v36 = vld [vmem:[#allocation3 + $0xb64] ss:$72 sps:$4 sm:$0xff]   ;;  %v10202_v38 = vld [vmem:[#allocation3 + $0xb60] ss:$72 sps:$4 sm:$0xff]  }
 0x1d4   :  { %5940 = vmatprep.subr.bf16.mxu1 %v10129_v39  ;;  %v10199_v35 = vld [vmem:[#allocation3 + $0xad8] ss:$72 sps:$4 sm:$0xff]   ;;  %v10207_v37 = vld [vmem:[#allocation3 + $0xb6c] ss:$72 sps:$4 sm:$0xff]   ;;  %v10205_v39 = vld [vmem:[#allocation3 + $0xb68] ss:$72 sps:$4 sm:$0xff]  }
 0x1d5   :  { %6522 = vst [vmem:[#allocation2] sm:$0xff] %v6452_v41  ;;  %v10210_v43 = vld [vmem:[#allocation3 + $0xbf4] ss:$72 sps:$4 sm:$0xff]   ;;  %v10208_v41 = vld [vmem:[#allocation3 + $0xbf0] ss:$72 sps:$4 sm:$0xff]  }
 0x1d6   :  { %5818 = vmatpush1.bf16.msra.mxu0 %v10124_v42  ;;  %v10213_v40 = vld [vmem:[#allocation3 + $0xbfc] ss:$72 sps:$4 sm:$0xff]   ;;  %v10211_v42 = vld [vmem:[#allocation3 + $0xbf8] ss:$72 sps:$4 sm:$0xff]  }
 0x1d7   :  { %5941 = vmatpush1.bf16.msra.mxu1 %v10127_v44  ;;  %5819 = vmatprep.subr.bf16.mxu0 %v10132_v45  ;;  %v10216_v44 = vld [vmem:[#allocation3 + $0xc84] ss:$72 sps:$4 sm:$0xff]  }
 0x1d8   :  { %5942 = vmatprep.subr.bf16.mxu1 %v10135_v46  ;;  %v10219_v45 = vld [vmem:[#allocation3 + $0xc8c] ss:$72 sps:$4 sm:$0xff]   ;;  %v10214_v46 = vld [vmem:[#allocation3 + $0xc80] ss:$72 sps:$4 sm:$0xff]  }
 0x1da   :  { %5820 = vmatpush1.bf16.msra.mxu0 %v10130_v47  ;;  %v10217_v47 = vld [vmem:[#allocation3 + $0xc88] ss:$72 sps:$4 sm:$0xff]  }
 0x1db   :  { %5943 = vmatpush1.bf16.msra.mxu1 %v10133_v48  ;;  %5821 = vmatprep.subr.bf16.mxu0 %v10138_v49  ;;  %v10222_v48 = vld [vmem:[#allocation3 + $0xd14] ss:$72 sps:$4 sm:$0xff]  }
 0x1dc   :  { %5944 = vmatprep.subr.bf16.mxu1 %v10141_v50  ;;  %v10225_v49 = vld [vmem:[#allocation3 + $0xd1c] ss:$72 sps:$4 sm:$0xff]   ;;  %v10220_v50 = vld [vmem:[#allocation3 + $0xd10] ss:$72 sps:$4 sm:$0xff]  }
 0x1de   :  { %5822 = vmatpush1.bf16.msra.mxu0 %v10136_v51  ;;  %v10223_v51 = vld [vmem:[#allocation3 + $0xd18] ss:$72 sps:$4 sm:$0xff]  }
 0x1df   :  { %5945 = vmatpush1.bf16.msra.mxu1 %v10139_v52  ;;  %5823 = vmatprep.subr.bf16.mxu0 %v10144_v53  ;;  %v10228_v52 = vld [vmem:[#allocation3 + $0xda4] ss:$72 sps:$4 sm:$0xff]  }
 0x1e0   :  { %5946 = vmatprep.subr.bf16.mxu1 %v10147_v54  ;;  %v10231_v53 = vld [vmem:[#allocation3 + $0xdac] ss:$72 sps:$4 sm:$0xff]   ;;  %v10226_v54 = vld [vmem:[#allocation3 + $0xda0] ss:$72 sps:$4 sm:$0xff]  }
 0x1e2   :  { %5824 = vmatpush1.bf16.msra.mxu0 %v10142_v55  ;;  %v10229_v55 = vld [vmem:[#allocation3 + $0xda8] ss:$72 sps:$4 sm:$0xff]  }
 0x1e3   :  { %5947 = vmatpush1.bf16.msra.mxu1 %v10145_v56  ;;  %5825 = vmatprep.subr.bf16.mxu0 %v10150_v57  ;;  %v10234_v56 = vld [vmem:[#allocation3 + $0xe34] ss:$72 sps:$4 sm:$0xff]  }
 0x1e4   :  { %5948 = vmatprep.subr.bf16.mxu1 %v10153_v58  ;;  %v10237_v57 = vld [vmem:[#allocation3 + $0xe3c] ss:$72 sps:$4 sm:$0xff]   ;;  %v10232_v58 = vld [vmem:[#allocation3 + $0xe30] ss:$72 sps:$4 sm:$0xff]  }
 0x1e6   :  { %5826 = vmatpush1.bf16.msra.mxu0 %v10148_v59  ;;  %v10235_v59 = vld [vmem:[#allocation3 + $0xe38] ss:$72 sps:$4 sm:$0xff]  }
 0x1e7   :  { %5949 = vmatpush1.bf16.msra.mxu1 %v10151_v61  ;;  %5827 = vmatprep.subr.bf16.mxu0 %v10156_v62  ;;  %v10240_v61 = vld [vmem:[#allocation3 + $0xec4] ss:$72 sps:$4 sm:$0xff]  }
 0x1e8   :  { %5950 = vmatprep.subr.bf16.mxu1 %v10159_v63  ;;  %v10243_v62 = vld [vmem:[#allocation3 + $0xecc] ss:$72 sps:$4 sm:$0xff]   ;;  %v10238_v63 = vld [vmem:[#allocation3 + $0xec0] ss:$72 sps:$4 sm:$0xff]  }
 0x1ea   :  { %5828 = vmatpush1.bf16.msra.mxu0 %v10154_v0  ;;  %v10241_v0 = vld [vmem:[#allocation3 + $0xec8] ss:$72 sps:$4 sm:$0xff]  }
 0x1eb   :  { %5951 = vmatpush1.bf16.msra.mxu1 %v10157_v1  ;;  %5829 = vmatprep.subr.bf16.mxu0 %v10162_v2  ;;  %v10246_v1 = vld [vmem:[#allocation3 + $0xf54] ss:$72 sps:$4 sm:$0xff]  }
 0x1ec   :  { %5952 = vmatprep.subr.bf16.mxu1 %v10165_v3  ;;  %v10249_v2 = vld [vmem:[#allocation3 + $0xf5c] ss:$72 sps:$4 sm:$0xff]   ;;  %v10244_v3 = vld [vmem:[#allocation3 + $0xf50] ss:$72 sps:$4 sm:$0xff]  }
 0x1ee   :  { %5830 = vmatpush1.bf16.msra.mxu0 %v10160_v4  ;;  %v10247_v4 = vld [vmem:[#allocation3 + $0xf58] ss:$72 sps:$4 sm:$0xff]  }
 0x1ef   :  { %5953 = vmatpush1.bf16.msra.mxu1 %v10163_v5  ;;  %5831 = vmatprep.subr.bf16.mxu0 %v10168_v6  ;;  %v10252_v5 = vld [vmem:[#allocation3 + $0xfe4] ss:$72 sps:$4 sm:$0xff]  }
 0x1f0   :  { %5954 = vmatprep.subr.bf16.mxu1 %v10171_v7  ;;  %v10255_v6 = vld [vmem:[#allocation3 + $0xfec] ss:$72 sps:$4 sm:$0xff]   ;;  %v10250_v7 = vld [vmem:[#allocation3 + $0xfe0] ss:$72 sps:$4 sm:$0xff]  }
 0x1f2   :  { %5832 = vmatpush1.bf16.msra.mxu0 %v10166_v8  ;;  %v10253_v8 = vld [vmem:[#allocation3 + $0xfe8] ss:$72 sps:$4 sm:$0xff]  }
 0x1f3   :  { %5955 = vmatpush1.bf16.msra.mxu1 %v10169_v9  ;;  %5833 = vmatprep.subr.bf16.mxu0 %v10174_v10  ;;  %v10258_v9 = vld [vmem:[#allocation3 + $0x1074] ss:$72 sps:$4 sm:$0xff]  }
 0x1f4   :  { %5956 = vmatprep.subr.bf16.mxu1 %v10177_v11  ;;  %v10261_v10 = vld [vmem:[#allocation3 + $0x107c] ss:$72 sps:$4 sm:$0xff]   ;;  %v10256_v11 = vld [vmem:[#allocation3 + $0x1070] ss:$72 sps:$4 sm:$0xff]  }
 0x1f6   :  { %5834 = vmatpush1.bf16.msra.mxu0 %v10172_v12  ;;  %v10259_v12 = vld [vmem:[#allocation3 + $0x1078] ss:$72 sps:$4 sm:$0xff]  }
 0x1f7   :  { %5957 = vmatpush1.bf16.msra.mxu1 %v10175_v13  ;;  %5844 = vmatprep.subr.bf16.mxu0 %v10180_v14  ;;  %v10264_v13 = vld [vmem:[#allocation3 + $0x1104] ss:$72 sps:$4 sm:$0xff]  }
 0x1f8   :  { %5967 = vmatprep.subr.bf16.mxu1 %v10183_v15  ;;  %v10267_v14 = vld [vmem:[#allocation3 + $0x110c] ss:$72 sps:$4 sm:$0xff]   ;;  %v10262_v15 = vld [vmem:[#allocation3 + $0x1100] ss:$72 sps:$4 sm:$0xff]  }
 0x1f9   :  { %5836 = vmatmul.mubr.bf16.vlgmr.msra.gmra.mrb[8].mxu0 %v11134_v16 }
 0x1fa   :  { %5959 = vmatmul.mubr.bf16.vlgmr.msra.gmra.mrb[8].mxu1 %v11134_v16  ;;  %5845 = vmatpush1.bf16.msra.mxu0 %v10178_v17  ;;  %v10265_v17 = vld [vmem:[#allocation3 + $0x1108] ss:$72 sps:$4 sm:$0xff]  }
 0x1fb   :  { %5968 = vmatpush1.bf16.msra.mxu1 %v10181_v20  ;;  %5846 = vmatprep.subr.bf16.mxu0 %v10186_v21  ;;  %v10270_v20 = vld [vmem:[#allocation3 + $0x1194] ss:$72 sps:$4 sm:$0xff]  }
 0x1fc   :  { %5969 = vmatprep.subr.bf16.mxu1 %v10189_v23  ;;  %5876 = vmatprep.mubr.bf16.mxu0 %v11142_v22  ;;  %v10273_v21 = vld [vmem:[#allocation3 + $0x119c] ss:$72 sps:$4 sm:$0xff]   ;;  %v10268_v23 = vld [vmem:[#allocation3 + $0x1190] ss:$72 sps:$4 sm:$0xff]  }
 0x1fd   :  { %5999 = vmatprep.mubr.bf16.mxu1 %v11142_v22 }
 0x1fe   :  { %5847 = vmatpush1.bf16.msra.mxu0 %v10184_v25  ;;  %v10271_v25 = vld [vmem:[#allocation3 + $0x1198] ss:$72 sps:$4 sm:$0xff]  }
 0x1ff   :  { %5970 = vmatpush1.bf16.msra.mxu1 %v10187_v27  ;;  %5848 = vmatprep.subr.bf16.mxu0 %v10192_v28  ;;  %v10276_v27 = vld [vmem:[#allocation3 + $0x1224] ss:$72 sps:$4 sm:$0xff]  }
 0x200   :  { %5971 = vmatprep.subr.bf16.mxu1 %v10195_v29  ;;  %v10279_v28 = vld [vmem:[#allocation3 + $0x122c] ss:$72 sps:$4 sm:$0xff]   ;;  %v10274_v29 = vld [vmem:[#allocation3 + $0x1220] ss:$72 sps:$4 sm:$0xff]  }
 0x202   :  { %5849 = vmatpush1.bf16.msra.mxu0 %v10190_v30  ;;  %v10277_v30 = vld [vmem:[#allocation3 + $0x1228] ss:$72 sps:$4 sm:$0xff]  }
 0x203   :  { %5972 = vmatpush1.bf16.msra.mxu1 %v10193_v31  ;;  %5850 = vmatprep.subr.bf16.mxu0 %v10198_v32  ;;  %v10282_v31 = vld [vmem:[#allocation3 + $0x12b4] ss:$72 sps:$4 sm:$0xff]  }
 0x204   :  { %5973 = vmatprep.subr.bf16.mxu1 %v10201_v33  ;;  %v10285_v32 = vld [vmem:[#allocation3 + $0x12bc] ss:$72 sps:$4 sm:$0xff]   ;;  %v10280_v33 = vld [vmem:[#allocation3 + $0x12b0] ss:$72 sps:$4 sm:$0xff]  }
 0x206   :  { %5851 = vmatpush1.bf16.msra.mxu0 %v10196_v34  ;;  %v10283_v34 = vld [vmem:[#allocation3 + $0x12b8] ss:$72 sps:$4 sm:$0xff]  }
 0x207   :  { %5974 = vmatpush1.bf16.msra.mxu1 %v10199_v35  ;;  %5852 = vmatprep.subr.bf16.mxu0 %v10204_v36  ;;  %v10288_v35 = vld [vmem:[#allocation3 + $0x1344] ss:$72 sps:$4 sm:$0xff]  }
 0x208   :  { %5975 = vmatprep.subr.bf16.mxu1 %v10207_v37  ;;  %v10291_v36 = vld [vmem:[#allocation3 + $0x134c] ss:$72 sps:$4 sm:$0xff]   ;;  %v10286_v37 = vld [vmem:[#allocation3 + $0x1340] ss:$72 sps:$4 sm:$0xff]  }
 0x20a   :  { %5853 = vmatpush1.bf16.msra.mxu0 %v10202_v38  ;;  %v10289_v38 = vld [vmem:[#allocation3 + $0x1348] ss:$72 sps:$4 sm:$0xff]  }
 0x20b   :  { %5976 = vmatpush1.bf16.msra.mxu1 %v10205_v39  ;;  %5854 = vmatprep.subr.bf16.mxu0 %v10210_v43  ;;  %v10294_v39 = vld [vmem:[#allocation3 + $0x13d4] ss:$72 sps:$4 sm:$0xff]  }
 0x20c   :  { %5977 = vmatprep.subr.bf16.mxu1 %v10213_v40  ;;  %v10297_v43 = vld [vmem:[#allocation3 + $0x13dc] ss:$72 sps:$4 sm:$0xff]   ;;  %v10292_v40 = vld [vmem:[#allocation3 + $0x13d0] ss:$72 sps:$4 sm:$0xff]  }
 0x20e   :  { %5855 = vmatpush1.bf16.msra.mxu0 %v10208_v41  ;;  %v10295_v41 = vld [vmem:[#allocation3 + $0x13d8] ss:$72 sps:$4 sm:$0xff]  }
 0x20f   :  { %5978 = vmatpush1.bf16.msra.mxu1 %v10211_v42  ;;  %5856 = vmatprep.subr.bf16.mxu0 %v10216_v44  ;;  %v10300_v42 = vld [vmem:[#allocation3 + $0x1464] ss:$72 sps:$4 sm:$0xff]  }
 0x210   :  { %5979 = vmatprep.subr.bf16.mxu1 %v10219_v45  ;;  %v10303_v44 = vld [vmem:[#allocation3 + $0x146c] ss:$72 sps:$4 sm:$0xff]   ;;  %v10298_v45 = vld [vmem:[#allocation3 + $0x1460] ss:$72 sps:$4 sm:$0xff]  }
 0x212   :  { %5857 = vmatpush1.bf16.msra.mxu0 %v10214_v46  ;;  %v10301_v46 = vld [vmem:[#allocation3 + $0x1468] ss:$72 sps:$4 sm:$0xff]  }
 0x213   :  { %5980 = vmatpush1.bf16.msra.mxu1 %v10217_v47  ;;  %5858 = vmatprep.subr.bf16.mxu0 %v10222_v48  ;;  %v10306_v47 = vld [vmem:[#allocation3 + $0x14f4] ss:$72 sps:$4 sm:$0xff]  }
 0x214   :  { %5981 = vmatprep.subr.bf16.mxu1 %v10225_v49  ;;  %v10309_v48 = vld [vmem:[#allocation3 + $0x14fc] ss:$72 sps:$4 sm:$0xff]   ;;  %v10304_v49 = vld [vmem:[#allocation3 + $0x14f0] ss:$72 sps:$4 sm:$0xff]  }
 0x216   :  { %5859 = vmatpush1.bf16.msra.mxu0 %v10220_v50  ;;  %v10307_v50 = vld [vmem:[#allocation3 + $0x14f8] ss:$72 sps:$4 sm:$0xff]  }
 0x217   :  { %5982 = vmatpush1.bf16.msra.mxu1 %v10223_v51  ;;  %5860 = vmatprep.subr.bf16.mxu0 %v10228_v52  ;;  %v10312_v51 = vld [vmem:[#allocation3 + $0x1584] ss:$72 sps:$4 sm:$0xff]  }
 0x218   :  { %5983 = vmatprep.subr.bf16.mxu1 %v10231_v53  ;;  %v10315_v52 = vld [vmem:[#allocation3 + $0x158c] ss:$72 sps:$4 sm:$0xff]   ;;  %v10310_v53 = vld [vmem:[#allocation3 + $0x1580] ss:$72 sps:$4 sm:$0xff]  }
 0x21a   :  { %5861 = vmatpush1.bf16.msra.mxu0 %v10226_v54  ;;  %v10313_v54 = vld [vmem:[#allocation3 + $0x1588] ss:$72 sps:$4 sm:$0xff]  }
 0x21b   :  { %5984 = vmatpush1.bf16.msra.mxu1 %v10229_v55  ;;  %5862 = vmatprep.subr.bf16.mxu0 %v10234_v56  ;;  %v10318_v55 = vld [vmem:[#allocation3 + $0x1614] ss:$72 sps:$4 sm:$0xff]  }
 0x21c   :  { %5985 = vmatprep.subr.bf16.mxu1 %v10237_v57  ;;  %v10321_v56 = vld [vmem:[#allocation3 + $0x161c] ss:$72 sps:$4 sm:$0xff]   ;;  %v10316_v57 = vld [vmem:[#allocation3 + $0x1610] ss:$72 sps:$4 sm:$0xff]  }
 0x21e   :  { %5863 = vmatpush1.bf16.msra.mxu0 %v10232_v58  ;;  %v10319_v58 = vld [vmem:[#allocation3 + $0x1618] ss:$72 sps:$4 sm:$0xff]  }
 0x21f   :  { %5986 = vmatpush1.bf16.msra.mxu1 %v10235_v59  ;;  %5864 = vmatprep.subr.bf16.mxu0 %v10240_v61  ;;  %v10324_v59 = vld [vmem:[#allocation3 + $0x16a4] ss:$72 sps:$4 sm:$0xff]  }
 0x220   :  { %5987 = vmatprep.subr.bf16.mxu1 %v10243_v62  ;;  %v10327_v61 = vld [vmem:[#allocation3 + $0x16ac] ss:$72 sps:$4 sm:$0xff]   ;;  %v10322_v62 = vld [vmem:[#allocation3 + $0x16a0] ss:$72 sps:$4 sm:$0xff]  }
 0x222   :  { %5865 = vmatpush1.bf16.msra.mxu0 %v10238_v63  ;;  %v10325_v63 = vld [vmem:[#allocation3 + $0x16a8] ss:$72 sps:$4 sm:$0xff]  }
 0x223   :  { %5988 = vmatpush1.bf16.msra.mxu1 %v10241_v0  ;;  %5866 = vmatprep.subr.bf16.mxu0 %v10246_v1  ;;  %v10330_v0 = vld [vmem:[#allocation3 + $0x1734] ss:$72 sps:$4 sm:$0xff]  }
 0x224   :  { %5989 = vmatprep.subr.bf16.mxu1 %v10249_v2  ;;  %v10333_v1 = vld [vmem:[#allocation3 + $0x173c] ss:$72 sps:$4 sm:$0xff]   ;;  %v10328_v2 = vld [vmem:[#allocation3 + $0x1730] ss:$72 sps:$4 sm:$0xff]  }
 0x226   :  { %5867 = vmatpush1.bf16.msra.mxu0 %v10244_v3  ;;  %v10331_v3 = vld [vmem:[#allocation3 + $0x1738] ss:$72 sps:$4 sm:$0xff]  }
 0x227   :  { %5990 = vmatpush1.bf16.msra.mxu1 %v10247_v4  ;;  %5868 = vmatprep.subr.bf16.mxu0 %v10252_v5  ;;  %v10336_v4 = vld [vmem:[#allocation3 + $0x17c4] ss:$72 sps:$4 sm:$0xff]  }
 0x228   :  { %5991 = vmatprep.subr.bf16.mxu1 %v10255_v6  ;;  %v10339_v5 = vld [vmem:[#allocation3 + $0x17cc] ss:$72 sps:$4 sm:$0xff]   ;;  %v10334_v6 = vld [vmem:[#allocation3 + $0x17c0] ss:$72 sps:$4 sm:$0xff]  }
 0x22a   :  { %5869 = vmatpush1.bf16.msra.mxu0 %v10250_v7  ;;  %v10337_v7 = vld [vmem:[#allocation3 + $0x17c8] ss:$72 sps:$4 sm:$0xff]  }
 0x22b   :  { %5992 = vmatpush1.bf16.msra.mxu1 %v10253_v8  ;;  %5870 = vmatprep.subr.bf16.mxu0 %v10258_v9  ;;  %v10342_v8 = vld [vmem:[#allocation3 + $0x1854] ss:$72 sps:$4 sm:$0xff]  }
 0x22c   :  { %5993 = vmatprep.subr.bf16.mxu1 %v10261_v10  ;;  %v10345_v9 = vld [vmem:[#allocation3 + $0x185c] ss:$72 sps:$4 sm:$0xff]   ;;  %v10340_v10 = vld [vmem:[#allocation3 + $0x1850] ss:$72 sps:$4 sm:$0xff]  }
 0x22e   :  { %5871 = vmatpush1.bf16.msra.mxu0 %v10256_v11  ;;  %v10343_v11 = vld [vmem:[#allocation3 + $0x1858] ss:$72 sps:$4 sm:$0xff]  }
 0x22f   :  { %5994 = vmatpush1.bf16.msra.mxu1 %v10259_v12  ;;  %5872 = vmatprep.subr.bf16.mxu0 %v10264_v13  ;;  %v10348_v12 = vld [vmem:[#allocation3 + $0x18e4] ss:$72 sps:$4 sm:$0xff]  }
 0x230   :  { %5995 = vmatprep.subr.bf16.mxu1 %v10267_v14  ;;  %v10351_v13 = vld [vmem:[#allocation3 + $0x18ec] ss:$72 sps:$4 sm:$0xff]   ;;  %v10346_v14 = vld [vmem:[#allocation3 + $0x18e0] ss:$72 sps:$4 sm:$0xff]  }
 0x232   :  { %5873 = vmatpush1.bf16.msra.mxu0 %v10262_v15  ;;  %v10349_v15 = vld [vmem:[#allocation3 + $0x18e8] ss:$72 sps:$4 sm:$0xff]  }
 0x233   :  { %5996 = vmatpush1.bf16.msra.mxu1 %v10265_v17  ;;  %5874 = vmatprep.subr.bf16.mxu0 %v10270_v20  ;;  %v10354_v17 = vld [vmem:[#allocation3 + $0x1974] ss:$72 sps:$4 sm:$0xff]  }
 0x234   :  { %5997 = vmatprep.subr.bf16.mxu1 %v10273_v21  ;;  %v10357_v20 = vld [vmem:[#allocation3 + $0x197c] ss:$72 sps:$4 sm:$0xff]   ;;  %v10352_v21 = vld [vmem:[#allocation3 + $0x1970] ss:$72 sps:$4 sm:$0xff]  }
 0x236   :  { %5875 = vmatpush1.bf16.msra.mxu0 %v10268_v23  ;;  %v10355_v23 = vld [vmem:[#allocation3 + $0x1978] ss:$72 sps:$4 sm:$0xff]  }
 0x237   :  { %5998 = vmatpush1.bf16.msra.mxu1 %v10271_v25  ;;  %5885 = vmatprep.subr.bf16.mxu0 %v10276_v27  ;;  %v10360_v25 = vld [vmem:[#allocation3 + $0x1a04] ss:$72 sps:$4 sm:$0xff]  }
 0x238   :  { %6008 = vmatprep.subr.bf16.mxu1 %v10279_v28  ;;  %v10363_v27 = vld [vmem:[#allocation3 + $0x1a0c] ss:$72 sps:$4 sm:$0xff]   ;;  %v10358_v28 = vld [vmem:[#allocation3 + $0x1a00] ss:$72 sps:$4 sm:$0xff]  }
 0x239   :  { %5877 = vmatmul.mubr.bf16.vlgmr.msra.gmra.mrb[8].mxu0 %v11150_v26 }
 0x23a   :  { %6000 = vmatmul.mubr.bf16.vlgmr.msra.gmra.mrb[8].mxu1 %v11150_v26  ;;  %5886 = vmatpush1.bf16.msra.mxu0 %v10274_v29  ;;  %v10361_v29 = vld [vmem:[#allocation3 + $0x1a08] ss:$72 sps:$4 sm:$0xff]  }
 0x23b   :  { %6009 = vmatpush1.bf16.msra.mxu1 %v10277_v30  ;;  %5887 = vmatprep.subr.bf16.mxu0 %v10282_v31  ;;  %v10366_v30 = vld [vmem:[#allocation3 + $0x1a94] ss:$72 sps:$4 sm:$0xff]  }
 0x23c   :  { %6010 = vmatprep.subr.bf16.mxu1 %v10285_v32  ;;  %5917 = vmatprep.mubr.bf16.mxu0 %v11136_v18  ;;  %v10369_v31 = vld [vmem:[#allocation3 + $0x1a9c] ss:$72 sps:$4 sm:$0xff]   ;;  %v10364_v32 = vld [vmem:[#allocation3 + $0x1a90] ss:$72 sps:$4 sm:$0xff]  }
 0x23d   :  { %6040 = vmatprep.mubr.bf16.mxu1 %v11136_v18 }
 0x23e   :  { %5888 = vmatpush1.bf16.msra.mxu0 %v10280_v33  ;;  %v10367_v33 = vld [vmem:[#allocation3 + $0x1a98] ss:$72 sps:$4 sm:$0xff]  }
 0x23f   :  { %6011 = vmatpush1.bf16.msra.mxu1 %v10283_v34  ;;  %5889 = vmatprep.subr.bf16.mxu0 %v10288_v35  ;;  %v10372_v34 = vld [vmem:[#allocation3 + $0x34] ss:$72 sps:$4 sm:$0xff]  }
 0x240   :  { %6012 = vmatprep.subr.bf16.mxu1 %v10291_v36  ;;  %v10375_v35 = vld [vmem:[#allocation3 + $0x3c] ss:$72 sps:$4 sm:$0xff]   ;;  %v10370_v36 = vld [vmem:[#allocation3 + $0x30] ss:$72 sps:$4 sm:$0xff]  }
 0x242   :  { %5890 = vmatpush1.bf16.msra.mxu0 %v10286_v37  ;;  %v10373_v37 = vld [vmem:[#allocation3 + $0x38] ss:$72 sps:$4 sm:$0xff]  }
 0x243   :  { %6013 = vmatpush1.bf16.msra.mxu1 %v10289_v38  ;;  %5891 = vmatprep.subr.bf16.mxu0 %v10294_v39  ;;  %v10378_v38 = vld [vmem:[#allocation3 + $0xc4] ss:$72 sps:$4 sm:$0xff]  }
 0x244   :  { %6014 = vmatprep.subr.bf16.mxu1 %v10297_v43  ;;  %v10381_v39 = vld [vmem:[#allocation3 + $0xcc] ss:$72 sps:$4 sm:$0xff]   ;;  %v10376_v43 = vld [vmem:[#allocation3 + $0xc0] ss:$72 sps:$4 sm:$0xff]  }
 0x246   :  { %5892 = vmatpush1.bf16.msra.mxu0 %v10292_v40  ;;  %v10379_v40 = vld [vmem:[#allocation3 + $0xc8] ss:$72 sps:$4 sm:$0xff]  }
 0x247   :  { %6015 = vmatpush1.bf16.msra.mxu1 %v10295_v41  ;;  %5893 = vmatprep.subr.bf16.mxu0 %v10300_v42  ;;  %v10384_v41 = vld [vmem:[#allocation3 + $0x154] ss:$72 sps:$4 sm:$0xff]  }
 0x248   :  { %6016 = vmatprep.subr.bf16.mxu1 %v10303_v44  ;;  %v10387_v42 = vld [vmem:[#allocation3 + $0x15c] ss:$72 sps:$4 sm:$0xff]   ;;  %v10382_v44 = vld [vmem:[#allocation3 + $0x150] ss:$72 sps:$4 sm:$0xff]  }
 0x24a   :  { %5894 = vmatpush1.bf16.msra.mxu0 %v10298_v45  ;;  %v10385_v45 = vld [vmem:[#allocation3 + $0x158] ss:$72 sps:$4 sm:$0xff]  }
 0x24b   :  { %6017 = vmatpush1.bf16.msra.mxu1 %v10301_v46  ;;  %5895 = vmatprep.subr.bf16.mxu0 %v10306_v47  ;;  %v10390_v46 = vld [vmem:[#allocation3 + $0x1e4] ss:$72 sps:$4 sm:$0xff]  }
 0x24c   :  { %6018 = vmatprep.subr.bf16.mxu1 %v10309_v48  ;;  %v10393_v47 = vld [vmem:[#allocation3 + $0x1ec] ss:$72 sps:$4 sm:$0xff]   ;;  %v10388_v48 = vld [vmem:[#allocation3 + $0x1e0] ss:$72 sps:$4 sm:$0xff]  }
 0x24e   :  { %5896 = vmatpush1.bf16.msra.mxu0 %v10304_v49  ;;  %v10391_v49 = vld [vmem:[#allocation3 + $0x1e8] ss:$72 sps:$4 sm:$0xff]  }
 0x24f   :  { %6019 = vmatpush1.bf16.msra.mxu1 %v10307_v50  ;;  %5897 = vmatprep.subr.bf16.mxu0 %v10312_v51  ;;  %v10396_v50 = vld [vmem:[#allocation3 + $0x274] ss:$72 sps:$4 sm:$0xff]  }
 0x250   :  { %6020 = vmatprep.subr.bf16.mxu1 %v10315_v52  ;;  %v10399_v51 = vld [vmem:[#allocation3 + $0x27c] ss:$72 sps:$4 sm:$0xff]   ;;  %v10394_v52 = vld [vmem:[#allocation3 + $0x270] ss:$72 sps:$4 sm:$0xff]  }
 0x252   :  { %5898 = vmatpush1.bf16.msra.mxu0 %v10310_v53  ;;  %v10397_v53 = vld [vmem:[#allocation3 + $0x278] ss:$72 sps:$4 sm:$0xff]  }
 0x253   :  { %6021 = vmatpush1.bf16.msra.mxu1 %v10313_v54  ;;  %5899 = vmatprep.subr.bf16.mxu0 %v10318_v55  ;;  %v10402_v54 = vld [vmem:[#allocation3 + $0x304] ss:$72 sps:$4 sm:$0xff]  }
 0x254   :  { %6022 = vmatprep.subr.bf16.mxu1 %v10321_v56  ;;  %v10405_v55 = vld [vmem:[#allocation3 + $0x30c] ss:$72 sps:$4 sm:$0xff]   ;;  %v10400_v56 = vld [vmem:[#allocation3 + $0x300] ss:$72 sps:$4 sm:$0xff]  }
 0x256   :  { %5900 = vmatpush1.bf16.msra.mxu0 %v10316_v57  ;;  %v10403_v57 = vld [vmem:[#allocation3 + $0x308] ss:$72 sps:$4 sm:$0xff]  }
 0x257   :  { %6023 = vmatpush1.bf16.msra.mxu1 %v10319_v58  ;;  %5901 = vmatprep.subr.bf16.mxu0 %v10324_v59  ;;  %v10408_v58 = vld [vmem:[#allocation3 + $0x394] ss:$72 sps:$4 sm:$0xff]  }
 0x258   :  { %6024 = vmatprep.subr.bf16.mxu1 %v10327_v61  ;;  %v10411_v59 = vld [vmem:[#allocation3 + $0x39c] ss:$72 sps:$4 sm:$0xff]  }
 0x25a   :  { %5902 = vmatpush1.bf16.msra.mxu0 %v10322_v62 }
 0x25b   :  { %6025 = vmatpush1.bf16.msra.mxu1 %v10325_v63  ;;  %5903 = vmatprep.subr.bf16.mxu0 %v10330_v0 }
 0x25c   :  { %6026 = vmatprep.subr.bf16.mxu1 %v10333_v1 }
 0x25e   :  { %5904 = vmatpush1.bf16.msra.mxu0 %v10328_v2 }
 0x25f   :  { %6027 = vmatpush1.bf16.msra.mxu1 %v10331_v3  ;;  %5905 = vmatprep.subr.bf16.mxu0 %v10336_v4 }
 0x260   :  { %6028 = vmatprep.subr.bf16.mxu1 %v10339_v5  ;;  %v10406_v5 = vld [vmem:[#allocation3 + $0x390] ss:$72 sps:$4 sm:$0xff]  }
 0x262   :  { %5906 = vmatpush1.bf16.msra.mxu0 %v10334_v6  ;;  %v10409_v6 = vld [vmem:[#allocation3 + $0x398] ss:$72 sps:$4 sm:$0xff]  }
 0x263   :  { %6029 = vmatpush1.bf16.msra.mxu1 %v10337_v7  ;;  %5907 = vmatprep.subr.bf16.mxu0 %v10342_v8 }
 0x264   :  { %6030 = vmatprep.subr.bf16.mxu1 %v10345_v9  ;;  %v10414_v9 = vld [vmem:[#allocation3 + $0x424] ss:$72 sps:$4 sm:$0xff]  }
 0x266   :  { %5908 = vmatpush1.bf16.msra.mxu0 %v10340_v10  ;;  %v10417_v10 = vld [vmem:[#allocation3 + $0x42c] ss:$72 sps:$4 sm:$0xff]  }
 0x267   :  { %6031 = vmatpush1.bf16.msra.mxu1 %v10343_v11  ;;  %5909 = vmatprep.subr.bf16.mxu0 %v10348_v12 }
 0x268   :  { %6032 = vmatprep.subr.bf16.mxu1 %v10351_v13 }
 0x26a   :  { %5910 = vmatpush1.bf16.msra.mxu0 %v10346_v14  ;;  %v10412_v14 = vld [vmem:[#allocation3 + $0x420] ss:$72 sps:$4 sm:$0xff]  }
 0x26b   :  { %6033 = vmatpush1.bf16.msra.mxu1 %v10349_v15  ;;  %5911 = vmatprep.subr.bf16.mxu0 %v10354_v17  ;;  %v10415_v15 = vld [vmem:[#allocation3 + $0x428] ss:$72 sps:$4 sm:$0xff]   ;;  %v10420_v17 = vld [vmem:[#allocation3 + $0x4b4] ss:$72 sps:$4 sm:$0xff]  }
 0x26c   :  { %6034 = vmatprep.subr.bf16.mxu1 %v10357_v20  ;;  %v10423_v20 = vld [vmem:[#allocation3 + $0x4bc] ss:$72 sps:$4 sm:$0xff]  }
 0x26e   :  { %5912 = vmatpush1.bf16.msra.mxu0 %v10352_v21  ;;  %v10418_v21 = vld [vmem:[#allocation3 + $0x4b0] ss:$72 sps:$4 sm:$0xff]  }
 0x26f   :  { %6035 = vmatpush1.bf16.msra.mxu1 %v10355_v23  ;;  %5913 = vmatprep.subr.bf16.mxu0 %v10360_v25  ;;  %v10421_v23 = vld [vmem:[#allocation3 + $0x4b8] ss:$72 sps:$4 sm:$0xff]   ;;  %v10426_v25 = vld [vmem:[#allocation3 + $0x544] ss:$72 sps:$4 sm:$0xff]  }
 0x270   :  { %6036 = vmatprep.subr.bf16.mxu1 %v10363_v27  ;;  %v10429_v27 = vld [vmem:[#allocation3 + $0x54c] ss:$72 sps:$4 sm:$0xff]  }
 0x272   :  { %5914 = vmatpush1.bf16.msra.mxu0 %v10358_v28  ;;  %v10424_v28 = vld [vmem:[#allocation3 + $0x540] ss:$72 sps:$4 sm:$0xff]  }
 0x273   :  { %6037 = vmatpush1.bf16.msra.mxu1 %v10361_v29  ;;  %5915 = vmatprep.subr.bf16.mxu0 %v10366_v30  ;;  %v10427_v29 = vld [vmem:[#allocation3 + $0x548] ss:$72 sps:$4 sm:$0xff]   ;;  %v10432_v30 = vld [vmem:[#allocation3 + $0x5d4] ss:$72 sps:$4 sm:$0xff]  }
 0x274   :  { %6038 = vmatprep.subr.bf16.mxu1 %v10369_v31  ;;  %v10435_v31 = vld [vmem:[#allocation3 + $0x5dc] ss:$72 sps:$4 sm:$0xff]  }
 0x276   :  { %5916 = vmatpush1.bf16.msra.mxu0 %v10364_v32  ;;  %v10430_v32 = vld [vmem:[#allocation3 + $0x5d0] ss:$72 sps:$4 sm:$0xff]  }
 0x277   :  { %6039 = vmatpush1.bf16.msra.mxu1 %v10367_v33  ;;  %6049 = vmatprep.subr.bf16.mxu0 %v10372_v34  ;;  %v10433_v33 = vld [vmem:[#allocation3 + $0x5d8] ss:$72 sps:$4 sm:$0xff]   ;;  %v10438_v34 = vld [vmem:[#allocation3 + $0x664] ss:$72 sps:$4 sm:$0xff]  }
 0x278   :  { %6172 = vmatprep.subr.bf16.mxu1 %v10375_v35  ;;  %v10441_v35 = vld [vmem:[#allocation3 + $0x66c] ss:$72 sps:$4 sm:$0xff]  }
 0x279   :  { %5918 = vmatmul.mubr.bf16.vlgmr.msra.gmra.mrb[8].mxu0 %v11138_v19 }
 0x27a   :  { %6041 = vmatmul.mubr.bf16.vlgmr.msra.gmra.mrb[8].mxu1 %v11138_v19  ;;  %6050 = vmatpush1.bf16.msra.mxu0 %v10370_v36  ;;  %v10436_v36 = vld [vmem:[#allocation3 + $0x660] ss:$72 sps:$4 sm:$0xff]  }
 0x27b   :  { %6173 = vmatpush1.bf16.msra.mxu1 %v10373_v37  ;;  %6051 = vmatprep.subr.bf16.mxu0 %v10378_v38  ;;  %v10439_v37 = vld [vmem:[#allocation3 + $0x668] ss:$72 sps:$4 sm:$0xff]   ;;  %v10444_v38 = vld [vmem:[#allocation3 + $0x6f4] ss:$72 sps:$4 sm:$0xff]  }
 0x27c   :  { %6174 = vmatprep.subr.bf16.mxu1 %v10381_v39  ;;  %6081 = vmatprep.mubr.bf16.mxu0 %v11130_v60  ;;  %v10447_v39 = vld [vmem:[#allocation3 + $0x6fc] ss:$72 sps:$4 sm:$0xff]  }
 0x27d   :  { %6204 = vmatprep.mubr.bf16.mxu1 %v11130_v60 }
 0x27e   :  { %6052 = vmatpush1.bf16.msra.mxu0 %v10376_v43  ;;  %v10442_v43 = vld [vmem:[#allocation3 + $0x6f0] ss:$72 sps:$4 sm:$0xff]  }
 0x27f   :  { %6175 = vmatpush1.bf16.msra.mxu1 %v10379_v40  ;;  %6053 = vmatprep.subr.bf16.mxu0 %v10384_v41  ;;  %v10445_v40 = vld [vmem:[#allocation3 + $0x6f8] ss:$72 sps:$4 sm:$0xff]   ;;  %v10450_v41 = vld [vmem:[#allocation3 + $0x784] ss:$72 sps:$4 sm:$0xff]  }
 0x280   :  { %6176 = vmatprep.subr.bf16.mxu1 %v10387_v42  ;;  %v10453_v42 = vld [vmem:[#allocation3 + $0x78c] ss:$72 sps:$4 sm:$0xff]  }
 0x282   :  { %6054 = vmatpush1.bf16.msra.mxu0 %v10382_v44  ;;  %v10448_v44 = vld [vmem:[#allocation3 + $0x780] ss:$72 sps:$4 sm:$0xff]  }
 0x283   :  { %6177 = vmatpush1.bf16.msra.mxu1 %v10385_v45  ;;  %6055 = vmatprep.subr.bf16.mxu0 %v10390_v46  ;;  %v10451_v45 = vld [vmem:[#allocation3 + $0x788] ss:$72 sps:$4 sm:$0xff]   ;;  %v10456_v46 = vld [vmem:[#allocation3 + $0x814] ss:$72 sps:$4 sm:$0xff]  }
 0x284   :  { %6178 = vmatprep.subr.bf16.mxu1 %v10393_v47  ;;  %v10459_v47 = vld [vmem:[#allocation3 + $0x81c] ss:$72 sps:$4 sm:$0xff]  }
 0x286   :  { %6056 = vmatpush1.bf16.msra.mxu0 %v10388_v48  ;;  %v10454_v48 = vld [vmem:[#allocation3 + $0x810] ss:$72 sps:$4 sm:$0xff]  }
 0x287   :  { %6179 = vmatpush1.bf16.msra.mxu1 %v10391_v49  ;;  %6057 = vmatprep.subr.bf16.mxu0 %v10396_v50  ;;  %v10457_v49 = vld [vmem:[#allocation3 + $0x818] ss:$72 sps:$4 sm:$0xff]   ;;  %v10462_v50 = vld [vmem:[#allocation3 + $0x8a4] ss:$72 sps:$4 sm:$0xff]  }
 0x288   :  { %6180 = vmatprep.subr.bf16.mxu1 %v10399_v51  ;;  %v10465_v51 = vld [vmem:[#allocation3 + $0x8ac] ss:$72 sps:$4 sm:$0xff]  }
 0x28a   :  { %6058 = vmatpush1.bf16.msra.mxu0 %v10394_v52  ;;  %v10460_v52 = vld [vmem:[#allocation3 + $0x8a0] ss:$72 sps:$4 sm:$0xff]  }
 0x28b   :  { %6181 = vmatpush1.bf16.msra.mxu1 %v10397_v53  ;;  %6059 = vmatprep.subr.bf16.mxu0 %v10402_v54  ;;  %v10463_v53 = vld [vmem:[#allocation3 + $0x8a8] ss:$72 sps:$4 sm:$0xff]   ;;  %v10468_v54 = vld [vmem:[#allocation3 + $0x934] ss:$72 sps:$4 sm:$0xff]  }
 0x28c   :  { %6182 = vmatprep.subr.bf16.mxu1 %v10405_v55  ;;  %v5673_v61 = vpop.f32.mrb[4].mxu0  ;;  %v10471_v55 = vld [vmem:[#allocation3 + $0x93c] ss:$72 sps:$4 sm:$0xff]  }
 0x28d   :  { %v5796_v62 = vpop.f32.mrb[4].mxu1  ;;  %v5675_v63 = vpop.f32.mrb[5].mxu0 }
 0x28e   :  { %v5798_v0 = vpop.f32.mrb[5].mxu1  ;;  %v6453_v1 = vcombine.low %v5673_v61, %v5675_v63  ;;  %v5677_v3 = vpop.f32.mrb[6].mxu0  ;;  %6060 = vmatpush1.bf16.msra.mxu0 %v10400_v56  ;;  %v10466_v56 = vld [vmem:[#allocation3 + $0x930] ss:$72 sps:$4 sm:$0xff]   ;;  %v10472_v61 = vld [vmem:[#allocation3 + $0x9c0] ss:$72 sps:$4 sm:$0xff]  }
 0x28f   :  { %v6454_v2 = vcombine.low %v5796_v62, %v5798_v0  ;;  %v5800_v4 = vpop.f32.mrb[6].mxu1  ;;  %6183 = vmatpush1.bf16.msra.mxu1 %v10403_v57  ;;  %v5678_v7 = vpop.f32.mrb[7].mxu0  ;;  %6061 = vmatprep.subr.bf16.mxu0 %v10408_v58  ;;  %v10469_v57 = vld [vmem:[#allocation3 + $0x938] ss:$72 sps:$4 sm:$0xff]   ;;  %v10474_v58 = vld [vmem:[#allocation3 + $0x9c4] ss:$72 sps:$4 sm:$0xff]  }
 0x290   :  { %v5801_v8 = vpop.f32.mrb[7].mxu1  ;;  %6184 = vmatprep.subr.bf16.mxu1 %v10411_v59  ;;  %v6461_v11 = vrot.slane %v6453_v1, %v11173_v24  ;;  %v10477_v59 = vld [vmem:[#allocation3 + $0x9cc] ss:$72 sps:$4 sm:$0xff]   ;;  %v10475_v62 = vld [vmem:[#allocation3 + $0x9c8] ss:$72 sps:$4 sm:$0xff]  }
 0x291   :  { %v6468_v12 = vrot.slane %v6454_v2, %v11173_v24  ;;  %v10480_v63 = vld [vmem:[#allocation3 + $0xa54] ss:$72 sps:$4 sm:$0xff]   ;;  %v10478_v1 = vld [vmem:[#allocation3 + $0xa50] ss:$72 sps:$4 sm:$0xff]   ;;  %v10486_v3 = vld [vmem:[#allocation3 + $0xae4] ss:$72 sps:$4 sm:$0xff]  }
 0x292   :  { %6062 = vmatpush1.bf16.msra.mxu0 %v10406_v5  ;;  %v10483_v0 = vld [vmem:[#allocation3 + $0xa5c] ss:$72 sps:$4 sm:$0xff]   ;;  %v10481_v2 = vld [vmem:[#allocation3 + $0xa58] ss:$72 sps:$4 sm:$0xff]   ;;  %v10489_v4 = vld [vmem:[#allocation3 + $0xaec] ss:$72 sps:$4 sm:$0xff]  }
 0x293   :  { %v6469_v13 = vcombine.low %v6461_v11, %v6468_v12  ;;  %6185 = vmatpush1.bf16.msra.mxu1 %v10409_v6  ;;  %6063 = vmatprep.subr.bf16.mxu0 %v10414_v9  ;;  %v10484_v5 = vld [vmem:[#allocation3 + $0xae0] ss:$72 sps:$4 sm:$0xff]   ;;  %v10492_v7 = vld [vmem:[#allocation3 + $0xb74] ss:$72 sps:$4 sm:$0xff]   ;;  %v10490_v9 = vld [vmem:[#allocation3 + $0xb70] ss:$72 sps:$4 sm:$0xff]  }
 0x294   :  { %6186 = vmatprep.subr.bf16.mxu1 %v10417_v10  ;;  %v10487_v6 = vld [vmem:[#allocation3 + $0xae8] ss:$72 sps:$4 sm:$0xff]   ;;  %v10495_v8 = vld [vmem:[#allocation3 + $0xb7c] ss:$72 sps:$4 sm:$0xff]   ;;  %v10493_v10 = vld [vmem:[#allocation3 + $0xb78] ss:$72 sps:$4 sm:$0xff]  }
 0x295   :  { %6523 = vst [vmem:[#allocation2 + $0x8] sm:$0xff] %v6469_v13  ;;  %v10498_v11 = vld [vmem:[#allocation3 + $0xc04] ss:$72 sps:$4 sm:$0xff]   ;;  %v10496_v13 = vld [vmem:[#allocation3 + $0xc00] ss:$72 sps:$4 sm:$0xff]  }
 0x296   :  { %6064 = vmatpush1.bf16.msra.mxu0 %v10412_v14  ;;  %v10501_v12 = vld [vmem:[#allocation3 + $0xc0c] ss:$72 sps:$4 sm:$0xff]   ;;  %v10499_v14 = vld [vmem:[#allocation3 + $0xc08] ss:$72 sps:$4 sm:$0xff]  }
 0x297   :  { %6187 = vmatpush1.bf16.msra.mxu1 %v10415_v15  ;;  %6065 = vmatprep.subr.bf16.mxu0 %v10420_v17  ;;  %v10504_v15 = vld [vmem:[#allocation3 + $0xc94] ss:$72 sps:$4 sm:$0xff]  }
 0x298   :  { %6188 = vmatprep.subr.bf16.mxu1 %v10423_v20  ;;  %v10507_v17 = vld [vmem:[#allocation3 + $0xc9c] ss:$72 sps:$4 sm:$0xff]   ;;  %v10502_v20 = vld [vmem:[#allocation3 + $0xc90] ss:$72 sps:$4 sm:$0xff]  }
 0x29a   :  { %6066 = vmatpush1.bf16.msra.mxu0 %v10418_v21  ;;  %v10505_v21 = vld [vmem:[#allocation3 + $0xc98] ss:$72 sps:$4 sm:$0xff]  }
 0x29b   :  { %6189 = vmatpush1.bf16.msra.mxu1 %v10421_v23  ;;  %6067 = vmatprep.subr.bf16.mxu0 %v10426_v25  ;;  %v10510_v23 = vld [vmem:[#allocation3 + $0xd24] ss:$72 sps:$4 sm:$0xff]  }
 0x29c   :  { %6190 = vmatprep.subr.bf16.mxu1 %v10429_v27  ;;  %v10513_v25 = vld [vmem:[#allocation3 + $0xd2c] ss:$72 sps:$4 sm:$0xff]   ;;  %v10508_v27 = vld [vmem:[#allocation3 + $0xd20] ss:$72 sps:$4 sm:$0xff]  }
 0x29e   :  { %6068 = vmatpush1.bf16.msra.mxu0 %v10424_v28  ;;  %v10511_v28 = vld [vmem:[#allocation3 + $0xd28] ss:$72 sps:$4 sm:$0xff]  }
 0x29f   :  { %6191 = vmatpush1.bf16.msra.mxu1 %v10427_v29  ;;  %6069 = vmatprep.subr.bf16.mxu0 %v10432_v30  ;;  %v10516_v29 = vld [vmem:[#allocation3 + $0xdb4] ss:$72 sps:$4 sm:$0xff]  }
 0x2a0   :  { %6192 = vmatprep.subr.bf16.mxu1 %v10435_v31  ;;  %v10519_v30 = vld [vmem:[#allocation3 + $0xdbc] ss:$72 sps:$4 sm:$0xff]   ;;  %v10514_v31 = vld [vmem:[#allocation3 + $0xdb0] ss:$72 sps:$4 sm:$0xff]  }
 0x2a2   :  { %6070 = vmatpush1.bf16.msra.mxu0 %v10430_v32  ;;  %v10517_v32 = vld [vmem:[#allocation3 + $0xdb8] ss:$72 sps:$4 sm:$0xff]  }
 0x2a3   :  { %6193 = vmatpush1.bf16.msra.mxu1 %v10433_v33  ;;  %6071 = vmatprep.subr.bf16.mxu0 %v10438_v34  ;;  %v10522_v33 = vld [vmem:[#allocation3 + $0xe44] ss:$72 sps:$4 sm:$0xff]  }
 0x2a4   :  { %6194 = vmatprep.subr.bf16.mxu1 %v10441_v35  ;;  %v10525_v34 = vld [vmem:[#allocation3 + $0xe4c] ss:$72 sps:$4 sm:$0xff]   ;;  %v10520_v35 = vld [vmem:[#allocation3 + $0xe40] ss:$72 sps:$4 sm:$0xff]  }
 0x2a6   :  { %6072 = vmatpush1.bf16.msra.mxu0 %v10436_v36  ;;  %v10523_v36 = vld [vmem:[#allocation3 + $0xe48] ss:$72 sps:$4 sm:$0xff]  }
 0x2a7   :  { %6195 = vmatpush1.bf16.msra.mxu1 %v10439_v37  ;;  %6073 = vmatprep.subr.bf16.mxu0 %v10444_v38  ;;  %v10528_v37 = vld [vmem:[#allocation3 + $0xed4] ss:$72 sps:$4 sm:$0xff]  }
 0x2a8   :  { %6196 = vmatprep.subr.bf16.mxu1 %v10447_v39  ;;  %v10531_v38 = vld [vmem:[#allocation3 + $0xedc] ss:$72 sps:$4 sm:$0xff]   ;;  %v10526_v39 = vld [vmem:[#allocation3 + $0xed0] ss:$72 sps:$4 sm:$0xff]  }
 0x2aa   :  { %6074 = vmatpush1.bf16.msra.mxu0 %v10442_v43  ;;  %v10529_v43 = vld [vmem:[#allocation3 + $0xed8] ss:$72 sps:$4 sm:$0xff]  }
 0x2ab   :  { %6197 = vmatpush1.bf16.msra.mxu1 %v10445_v40  ;;  %6075 = vmatprep.subr.bf16.mxu0 %v10450_v41  ;;  %v10534_v40 = vld [vmem:[#allocation3 + $0xf64] ss:$72 sps:$4 sm:$0xff]  }
 0x2ac   :  { %6198 = vmatprep.subr.bf16.mxu1 %v10453_v42  ;;  %v10537_v41 = vld [vmem:[#allocation3 + $0xf6c] ss:$72 sps:$4 sm:$0xff]   ;;  %v10532_v42 = vld [vmem:[#allocation3 + $0xf60] ss:$72 sps:$4 sm:$0xff]  }
 0x2ae   :  { %6076 = vmatpush1.bf16.msra.mxu0 %v10448_v44  ;;  %v10535_v44 = vld [vmem:[#allocation3 + $0xf68] ss:$72 sps:$4 sm:$0xff]  }
 0x2af   :  { %6199 = vmatpush1.bf16.msra.mxu1 %v10451_v45  ;;  %6077 = vmatprep.subr.bf16.mxu0 %v10456_v46  ;;  %v10540_v45 = vld [vmem:[#allocation3 + $0xff4] ss:$72 sps:$4 sm:$0xff]  }
 0x2b0   :  { %6200 = vmatprep.subr.bf16.mxu1 %v10459_v47  ;;  %v10543_v46 = vld [vmem:[#allocation3 + $0xffc] ss:$72 sps:$4 sm:$0xff]   ;;  %v10538_v47 = vld [vmem:[#allocation3 + $0xff0] ss:$72 sps:$4 sm:$0xff]  }
 0x2b2   :  { %6078 = vmatpush1.bf16.msra.mxu0 %v10454_v48  ;;  %v10541_v48 = vld [vmem:[#allocation3 + $0xff8] ss:$72 sps:$4 sm:$0xff]  }
 0x2b3   :  { %6201 = vmatpush1.bf16.msra.mxu1 %v10457_v49  ;;  %6079 = vmatprep.subr.bf16.mxu0 %v10462_v50  ;;  %v10546_v49 = vld [vmem:[#allocation3 + $0x1084] ss:$72 sps:$4 sm:$0xff]  }
 0x2b4   :  { %6202 = vmatprep.subr.bf16.mxu1 %v10465_v51  ;;  %v10549_v50 = vld [vmem:[#allocation3 + $0x108c] ss:$72 sps:$4 sm:$0xff]   ;;  %v10544_v51 = vld [vmem:[#allocation3 + $0x1080] ss:$72 sps:$4 sm:$0xff]  }
 0x2b6   :  { %6080 = vmatpush1.bf16.msra.mxu0 %v10460_v52  ;;  %v10547_v52 = vld [vmem:[#allocation3 + $0x1088] ss:$72 sps:$4 sm:$0xff]  }
 0x2b7   :  { %6203 = vmatpush1.bf16.msra.mxu1 %v10463_v53  ;;  %6090 = vmatprep.subr.bf16.mxu0 %v10468_v54  ;;  %v10552_v53 = vld [vmem:[#allocation3 + $0x1114] ss:$72 sps:$4 sm:$0xff]  }
 0x2b8   :  { %6213 = vmatprep.subr.bf16.mxu1 %v10471_v55  ;;  %v10555_v54 = vld [vmem:[#allocation3 + $0x111c] ss:$72 sps:$4 sm:$0xff]   ;;  %v10550_v55 = vld [vmem:[#allocation3 + $0x1110] ss:$72 sps:$4 sm:$0xff]  }
 0x2b9   :  { %6082 = vmatmul.mubr.bf16.vlgmr.msra.gmra.mrb[12].mxu0 %v11134_v16 }
 0x2ba   :  { %6205 = vmatmul.mubr.bf16.vlgmr.msra.gmra.mrb[12].mxu1 %v11134_v16  ;;  %6091 = vmatpush1.bf16.msra.mxu0 %v10466_v56  ;;  %v10553_v56 = vld [vmem:[#allocation3 + $0x1118] ss:$72 sps:$4 sm:$0xff]  }
 0x2bb   :  { %6214 = vmatpush1.bf16.msra.mxu1 %v10469_v57  ;;  %6092 = vmatprep.subr.bf16.mxu0 %v10474_v58  ;;  %v10558_v57 = vld [vmem:[#allocation3 + $0x11a4] ss:$72 sps:$4 sm:$0xff]  }
 0x2bc   :  { %6215 = vmatprep.subr.bf16.mxu1 %v10477_v59  ;;  %6122 = vmatprep.mubr.bf16.mxu0 %v11142_v22  ;;  %v10561_v58 = vld [vmem:[#allocation3 + $0x11ac] ss:$72 sps:$4 sm:$0xff]   ;;  %v10556_v59 = vld [vmem:[#allocation3 + $0x11a0] ss:$72 sps:$4 sm:$0xff]  }
 0x2bd   :  { %6245 = vmatprep.mubr.bf16.mxu1 %v11142_v22 }
 0x2be   :  { %6093 = vmatpush1.bf16.msra.mxu0 %v10472_v61  ;;  %v10559_v61 = vld [vmem:[#allocation3 + $0x11a8] ss:$72 sps:$4 sm:$0xff]  }
 0x2bf   :  { %6216 = vmatpush1.bf16.msra.mxu1 %v10475_v62  ;;  %6094 = vmatprep.subr.bf16.mxu0 %v10480_v63  ;;  %v10564_v62 = vld [vmem:[#allocation3 + $0x1234] ss:$72 sps:$4 sm:$0xff]  }
 0x2c0   :  { %6217 = vmatprep.subr.bf16.mxu1 %v10483_v0  ;;  %v10567_v63 = vld [vmem:[#allocation3 + $0x123c] ss:$72 sps:$4 sm:$0xff]   ;;  %v10562_v0 = vld [vmem:[#allocation3 + $0x1230] ss:$72 sps:$4 sm:$0xff]  }
 0x2c2   :  { %6095 = vmatpush1.bf16.msra.mxu0 %v10478_v1  ;;  %v10565_v1 = vld [vmem:[#allocation3 + $0x1238] ss:$72 sps:$4 sm:$0xff]  }
 0x2c3   :  { %6218 = vmatpush1.bf16.msra.mxu1 %v10481_v2  ;;  %6096 = vmatprep.subr.bf16.mxu0 %v10486_v3  ;;  %v10570_v2 = vld [vmem:[#allocation3 + $0x12c4] ss:$72 sps:$4 sm:$0xff]  }
 0x2c4   :  { %6219 = vmatprep.subr.bf16.mxu1 %v10489_v4  ;;  %v10573_v3 = vld [vmem:[#allocation3 + $0x12cc] ss:$72 sps:$4 sm:$0xff]   ;;  %v10568_v4 = vld [vmem:[#allocation3 + $0x12c0] ss:$72 sps:$4 sm:$0xff]  }
 0x2c6   :  { %6097 = vmatpush1.bf16.msra.mxu0 %v10484_v5  ;;  %v10571_v5 = vld [vmem:[#allocation3 + $0x12c8] ss:$72 sps:$4 sm:$0xff]  }
 0x2c7   :  { %6220 = vmatpush1.bf16.msra.mxu1 %v10487_v6  ;;  %6098 = vmatprep.subr.bf16.mxu0 %v10492_v7  ;;  %v10576_v6 = vld [vmem:[#allocation3 + $0x1354] ss:$72 sps:$4 sm:$0xff]  }
 0x2c8   :  { %6221 = vmatprep.subr.bf16.mxu1 %v10495_v8  ;;  %v10579_v7 = vld [vmem:[#allocation3 + $0x135c] ss:$72 sps:$4 sm:$0xff]   ;;  %v10574_v8 = vld [vmem:[#allocation3 + $0x1350] ss:$72 sps:$4 sm:$0xff]  }
 0x2ca   :  { %6099 = vmatpush1.bf16.msra.mxu0 %v10490_v9  ;;  %v10577_v9 = vld [vmem:[#allocation3 + $0x1358] ss:$72 sps:$4 sm:$0xff]  }
 0x2cb   :  { %6222 = vmatpush1.bf16.msra.mxu1 %v10493_v10  ;;  %6100 = vmatprep.subr.bf16.mxu0 %v10498_v11  ;;  %v10582_v10 = vld [vmem:[#allocation3 + $0x13e4] ss:$72 sps:$4 sm:$0xff]  }
 0x2cc   :  { %6223 = vmatprep.subr.bf16.mxu1 %v10501_v12  ;;  %v10585_v11 = vld [vmem:[#allocation3 + $0x13ec] ss:$72 sps:$4 sm:$0xff]   ;;  %v10580_v12 = vld [vmem:[#allocation3 + $0x13e0] ss:$72 sps:$4 sm:$0xff]  }
 0x2ce   :  { %6101 = vmatpush1.bf16.msra.mxu0 %v10496_v13  ;;  %v10583_v13 = vld [vmem:[#allocation3 + $0x13e8] ss:$72 sps:$4 sm:$0xff]  }
 0x2cf   :  { %6224 = vmatpush1.bf16.msra.mxu1 %v10499_v14  ;;  %6102 = vmatprep.subr.bf16.mxu0 %v10504_v15  ;;  %v10588_v14 = vld [vmem:[#allocation3 + $0x1474] ss:$72 sps:$4 sm:$0xff]  }
 0x2d0   :  { %6225 = vmatprep.subr.bf16.mxu1 %v10507_v17  ;;  %v10591_v15 = vld [vmem:[#allocation3 + $0x147c] ss:$72 sps:$4 sm:$0xff]   ;;  %v10586_v17 = vld [vmem:[#allocation3 + $0x1470] ss:$72 sps:$4 sm:$0xff]  }
 0x2d2   :  { %6103 = vmatpush1.bf16.msra.mxu0 %v10502_v20  ;;  %v10589_v20 = vld [vmem:[#allocation3 + $0x1478] ss:$72 sps:$4 sm:$0xff]  }
 0x2d3   :  { %6226 = vmatpush1.bf16.msra.mxu1 %v10505_v21  ;;  %6104 = vmatprep.subr.bf16.mxu0 %v10510_v23  ;;  %v10594_v21 = vld [vmem:[#allocation3 + $0x1504] ss:$72 sps:$4 sm:$0xff]  }
 0x2d4   :  { %6227 = vmatprep.subr.bf16.mxu1 %v10513_v25  ;;  %v10597_v23 = vld [vmem:[#allocation3 + $0x150c] ss:$72 sps:$4 sm:$0xff]   ;;  %v10592_v25 = vld [vmem:[#allocation3 + $0x1500] ss:$72 sps:$4 sm:$0xff]  }
 0x2d6   :  { %6105 = vmatpush1.bf16.msra.mxu0 %v10508_v27  ;;  %v10595_v27 = vld [vmem:[#allocation3 + $0x1508] ss:$72 sps:$4 sm:$0xff]  }
 0x2d7   :  { %6228 = vmatpush1.bf16.msra.mxu1 %v10511_v28  ;;  %6106 = vmatprep.subr.bf16.mxu0 %v10516_v29  ;;  %v10600_v28 = vld [vmem:[#allocation3 + $0x1594] ss:$72 sps:$4 sm:$0xff]  }
 0x2d8   :  { %6229 = vmatprep.subr.bf16.mxu1 %v10519_v30  ;;  %v10603_v29 = vld [vmem:[#allocation3 + $0x159c] ss:$72 sps:$4 sm:$0xff]   ;;  %v10598_v30 = vld [vmem:[#allocation3 + $0x1590] ss:$72 sps:$4 sm:$0xff]  }
 0x2da   :  { %6107 = vmatpush1.bf16.msra.mxu0 %v10514_v31  ;;  %v10601_v31 = vld [vmem:[#allocation3 + $0x1598] ss:$72 sps:$4 sm:$0xff]  }
 0x2db   :  { %6230 = vmatpush1.bf16.msra.mxu1 %v10517_v32  ;;  %6108 = vmatprep.subr.bf16.mxu0 %v10522_v33  ;;  %v10606_v32 = vld [vmem:[#allocation3 + $0x1624] ss:$72 sps:$4 sm:$0xff]  }
 0x2dc   :  { %6231 = vmatprep.subr.bf16.mxu1 %v10525_v34  ;;  %v10609_v33 = vld [vmem:[#allocation3 + $0x162c] ss:$72 sps:$4 sm:$0xff]   ;;  %v10604_v34 = vld [vmem:[#allocation3 + $0x1620] ss:$72 sps:$4 sm:$0xff]  }
 0x2de   :  { %6109 = vmatpush1.bf16.msra.mxu0 %v10520_v35  ;;  %v10607_v35 = vld [vmem:[#allocation3 + $0x1628] ss:$72 sps:$4 sm:$0xff]  }
 0x2df   :  { %6232 = vmatpush1.bf16.msra.mxu1 %v10523_v36  ;;  %6110 = vmatprep.subr.bf16.mxu0 %v10528_v37  ;;  %v10612_v36 = vld [vmem:[#allocation3 + $0x16b4] ss:$72 sps:$4 sm:$0xff]  }
 0x2e0   :  { %6233 = vmatprep.subr.bf16.mxu1 %v10531_v38  ;;  %v10615_v37 = vld [vmem:[#allocation3 + $0x16bc] ss:$72 sps:$4 sm:$0xff]   ;;  %v10610_v38 = vld [vmem:[#allocation3 + $0x16b0] ss:$72 sps:$4 sm:$0xff]  }
 0x2e2   :  { %6111 = vmatpush1.bf16.msra.mxu0 %v10526_v39  ;;  %v10613_v39 = vld [vmem:[#allocation3 + $0x16b8] ss:$72 sps:$4 sm:$0xff]  }
 0x2e3   :  { %6234 = vmatpush1.bf16.msra.mxu1 %v10529_v43  ;;  %6112 = vmatprep.subr.bf16.mxu0 %v10534_v40  ;;  %v10618_v43 = vld [vmem:[#allocation3 + $0x1744] ss:$72 sps:$4 sm:$0xff]  }
 0x2e4   :  { %6235 = vmatprep.subr.bf16.mxu1 %v10537_v41  ;;  %v10621_v40 = vld [vmem:[#allocation3 + $0x174c] ss:$72 sps:$4 sm:$0xff]   ;;  %v10616_v41 = vld [vmem:[#allocation3 + $0x1740] ss:$72 sps:$4 sm:$0xff]  }
 0x2e6   :  { %6113 = vmatpush1.bf16.msra.mxu0 %v10532_v42  ;;  %v10619_v42 = vld [vmem:[#allocation3 + $0x1748] ss:$72 sps:$4 sm:$0xff]  }
 0x2e7   :  { %6236 = vmatpush1.bf16.msra.mxu1 %v10535_v44  ;;  %6114 = vmatprep.subr.bf16.mxu0 %v10540_v45  ;;  %v10624_v44 = vld [vmem:[#allocation3 + $0x17d4] ss:$72 sps:$4 sm:$0xff]  }
 0x2e8   :  { %6237 = vmatprep.subr.bf16.mxu1 %v10543_v46  ;;  %v10627_v45 = vld [vmem:[#allocation3 + $0x17dc] ss:$72 sps:$4 sm:$0xff]   ;;  %v10622_v46 = vld [vmem:[#allocation3 + $0x17d0] ss:$72 sps:$4 sm:$0xff]  }
 0x2ea   :  { %6115 = vmatpush1.bf16.msra.mxu0 %v10538_v47  ;;  %v10625_v47 = vld [vmem:[#allocation3 + $0x17d8] ss:$72 sps:$4 sm:$0xff]  }
 0x2eb   :  { %6238 = vmatpush1.bf16.msra.mxu1 %v10541_v48  ;;  %6116 = vmatprep.subr.bf16.mxu0 %v10546_v49  ;;  %v10630_v48 = vld [vmem:[#allocation3 + $0x1864] ss:$72 sps:$4 sm:$0xff]  }
 0x2ec   :  { %6239 = vmatprep.subr.bf16.mxu1 %v10549_v50  ;;  %v10633_v49 = vld [vmem:[#allocation3 + $0x186c] ss:$72 sps:$4 sm:$0xff]   ;;  %v10628_v50 = vld [vmem:[#allocation3 + $0x1860] ss:$72 sps:$4 sm:$0xff]  }
 0x2ee   :  { %6117 = vmatpush1.bf16.msra.mxu0 %v10544_v51  ;;  %v10631_v51 = vld [vmem:[#allocation3 + $0x1868] ss:$72 sps:$4 sm:$0xff]  }
 0x2ef   :  { %6240 = vmatpush1.bf16.msra.mxu1 %v10547_v52  ;;  %6118 = vmatprep.subr.bf16.mxu0 %v10552_v53  ;;  %v10636_v52 = vld [vmem:[#allocation3 + $0x18f4] ss:$72 sps:$4 sm:$0xff]  }
 0x2f0   :  { %6241 = vmatprep.subr.bf16.mxu1 %v10555_v54  ;;  %v10639_v53 = vld [vmem:[#allocation3 + $0x18fc] ss:$72 sps:$4 sm:$0xff]   ;;  %v10634_v54 = vld [vmem:[#allocation3 + $0x18f0] ss:$72 sps:$4 sm:$0xff]  }
 0x2f2   :  { %6119 = vmatpush1.bf16.msra.mxu0 %v10550_v55  ;;  %v10637_v55 = vld [vmem:[#allocation3 + $0x18f8] ss:$72 sps:$4 sm:$0xff]  }
 0x2f3   :  { %6242 = vmatpush1.bf16.msra.mxu1 %v10553_v56  ;;  %6120 = vmatprep.subr.bf16.mxu0 %v10558_v57  ;;  %v10642_v56 = vld [vmem:[#allocation3 + $0x1984] ss:$72 sps:$4 sm:$0xff]  }
 0x2f4   :  { %6243 = vmatprep.subr.bf16.mxu1 %v10561_v58  ;;  %v10645_v57 = vld [vmem:[#allocation3 + $0x198c] ss:$72 sps:$4 sm:$0xff]   ;;  %v10640_v58 = vld [vmem:[#allocation3 + $0x1980] ss:$72 sps:$4 sm:$0xff]  }
 0x2f6   :  { %6121 = vmatpush1.bf16.msra.mxu0 %v10556_v59  ;;  %v10643_v59 = vld [vmem:[#allocation3 + $0x1988] ss:$72 sps:$4 sm:$0xff]  }
 0x2f7   :  { %6244 = vmatpush1.bf16.msra.mxu1 %v10559_v61  ;;  %6131 = vmatprep.subr.bf16.mxu0 %v10564_v62  ;;  %v10648_v61 = vld [vmem:[#allocation3 + $0x1a14] ss:$72 sps:$4 sm:$0xff]  }
 0x2f8   :  { %6254 = vmatprep.subr.bf16.mxu1 %v10567_v63  ;;  %v10651_v62 = vld [vmem:[#allocation3 + $0x1a1c] ss:$72 sps:$4 sm:$0xff]   ;;  %v10646_v63 = vld [vmem:[#allocation3 + $0x1a10] ss:$72 sps:$4 sm:$0xff]  }
 0x2f9   :  { %6123 = vmatmul.mubr.bf16.vlgmr.msra.gmra.mrb[12].mxu0 %v11150_v26 }
 0x2fa   :  { %6246 = vmatmul.mubr.bf16.vlgmr.msra.gmra.mrb[12].mxu1 %v11150_v26  ;;  %6132 = vmatpush1.bf16.msra.mxu0 %v10562_v0  ;;  %v10649_v0 = vld [vmem:[#allocation3 + $0x1a18] ss:$72 sps:$4 sm:$0xff]  }
 0x2fb   :  { %6255 = vmatpush1.bf16.msra.mxu1 %v10565_v1  ;;  %6133 = vmatprep.subr.bf16.mxu0 %v10570_v2  ;;  %v10654_v1 = vld [vmem:[#allocation3 + $0x1aa4] ss:$72 sps:$4 sm:$0xff]  }
 0x2fc   :  { %6256 = vmatprep.subr.bf16.mxu1 %v10573_v3  ;;  %6163 = vmatprep.mubr.bf16.mxu0 %v11136_v18  ;;  %v10657_v2 = vld [vmem:[#allocation3 + $0x1aac] ss:$72 sps:$4 sm:$0xff]   ;;  %v10652_v3 = vld [vmem:[#allocation3 + $0x1aa0] ss:$72 sps:$4 sm:$0xff]  }
 0x2fd   :  { %6286 = vmatprep.mubr.bf16.mxu1 %v11136_v18 }
 0x2fe   :  { %6134 = vmatpush1.bf16.msra.mxu0 %v10568_v4  ;;  %v10655_v4 = vld [vmem:[#allocation3 + $0x1aa8] ss:$72 sps:$4 sm:$0xff]  }
 0x2ff   :  { %6257 = vmatpush1.bf16.msra.mxu1 %v10571_v5  ;;  %6135 = vmatprep.subr.bf16.mxu0 %v10576_v6  ;;  %v10660_v5 = vld [vmem:[#allocation3 + $0x44] ss:$72 sps:$4 sm:$0xff]   ;;  %v10658_v6 = vld [vmem:[#allocation3 + $0x40] ss:$72 sps:$4 sm:$0xff]  }
 0x300   :  { %6258 = vmatprep.subr.bf16.mxu1 %v10579_v7  ;;  %v10663_v7 = vld [vmem:[#allocation3 + $0xd4] ss:$72 sps:$4 sm:$0xff]  }
 0x302   :  { %6136 = vmatpush1.bf16.msra.mxu0 %v10574_v8  ;;  %v10661_v8 = vld [vmem:[#allocation3 + $0xd0] ss:$72 sps:$4 sm:$0xff]  }
 0x303   :  { %6259 = vmatpush1.bf16.msra.mxu1 %v10577_v9  ;;  %6137 = vmatprep.subr.bf16.mxu0 %v10582_v10  ;;  %v10666_v9 = vld [vmem:[#allocation3 + $0x164] ss:$72 sps:$4 sm:$0xff]   ;;  %v10664_v10 = vld [vmem:[#allocation3 + $0x160] ss:$72 sps:$4 sm:$0xff]  }
 0x304   :  { %6260 = vmatprep.subr.bf16.mxu1 %v10585_v11  ;;  %v10669_v11 = vld [vmem:[#allocation3 + $0x1f4] ss:$72 sps:$4 sm:$0xff]  }
 0x306   :  { %6138 = vmatpush1.bf16.msra.mxu0 %v10580_v12  ;;  %v10667_v12 = vld [vmem:[#allocation3 + $0x1f0] ss:$72 sps:$4 sm:$0xff]  }
 0x307   :  { %6261 = vmatpush1.bf16.msra.mxu1 %v10583_v13  ;;  %6139 = vmatprep.subr.bf16.mxu0 %v10588_v14  ;;  %v10672_v13 = vld [vmem:[#allocation3 + $0x284] ss:$72 sps:$4 sm:$0xff]   ;;  %v10670_v14 = vld [vmem:[#allocation3 + $0x280] ss:$72 sps:$4 sm:$0xff]  }
 0x308   :  { %6262 = vmatprep.subr.bf16.mxu1 %v10591_v15  ;;  %v10675_v15 = vld [vmem:[#allocation3 + $0x314] ss:$72 sps:$4 sm:$0xff]  }
 0x30a   :  { %6140 = vmatpush1.bf16.msra.mxu0 %v10586_v17  ;;  %v10673_v17 = vld [vmem:[#allocation3 + $0x310] ss:$72 sps:$4 sm:$0xff]  }
 0x30b   :  { %6263 = vmatpush1.bf16.msra.mxu1 %v10589_v20  ;;  %6141 = vmatprep.subr.bf16.mxu0 %v10594_v21  ;;  %v10678_v20 = vld [vmem:[#allocation3 + $0x3a4] ss:$72 sps:$4 sm:$0xff]  }
 0x30c   :  { %6264 = vmatprep.subr.bf16.mxu1 %v10597_v23 }
 0x30e   :  { %6142 = vmatpush1.bf16.msra.mxu0 %v10592_v25 }
 0x30f   :  { %6265 = vmatpush1.bf16.msra.mxu1 %v10595_v27  ;;  %6143 = vmatprep.subr.bf16.mxu0 %v10600_v28 }
 0x310   :  { %6266 = vmatprep.subr.bf16.mxu1 %v10603_v29 }
 0x312   :  { %6144 = vmatpush1.bf16.msra.mxu0 %v10598_v30 }
 0x313   :  { %6267 = vmatpush1.bf16.msra.mxu1 %v10601_v31  ;;  %6145 = vmatprep.subr.bf16.mxu0 %v10606_v32  ;;  %v10676_v31 = vld [vmem:[#allocation3 + $0x3a0] ss:$72 sps:$4 sm:$0xff]  }
 0x314   :  { %6268 = vmatprep.subr.bf16.mxu1 %v10609_v33 }
 0x316   :  { %6146 = vmatpush1.bf16.msra.mxu0 %v10604_v34  ;;  %v10681_v34 = vld [vmem:[#allocation3 + $0x434] ss:$72 sps:$4 sm:$0xff]  }
 0x317   :  { %6269 = vmatpush1.bf16.msra.mxu1 %v10607_v35  ;;  %6147 = vmatprep.subr.bf16.mxu0 %v10612_v36 }
 0x318   :  { %6270 = vmatprep.subr.bf16.mxu1 %v10615_v37 }
 0x31a   :  { %6148 = vmatpush1.bf16.msra.mxu0 %v10610_v38  ;;  %v10679_v38 = vld [vmem:[#allocation3 + $0x430] ss:$72 sps:$4 sm:$0xff]  }
 0x31b   :  { %6271 = vmatpush1.bf16.msra.mxu1 %v10613_v39  ;;  %6149 = vmatprep.subr.bf16.mxu0 %v10618_v43  ;;  %v10684_v39 = vld [vmem:[#allocation3 + $0x4c4] ss:$72 sps:$4 sm:$0xff]   ;;  %v10682_v43 = vld [vmem:[#allocation3 + $0x4c0] ss:$72 sps:$4 sm:$0xff]  }
 0x31c   :  { %6272 = vmatprep.subr.bf16.mxu1 %v10621_v40  ;;  %v10687_v40 = vld [vmem:[#allocation3 + $0x554] ss:$72 sps:$4 sm:$0xff]  }
 0x31e   :  { %6150 = vmatpush1.bf16.msra.mxu0 %v10616_v41  ;;  %v10685_v41 = vld [vmem:[#allocation3 + $0x550] ss:$72 sps:$4 sm:$0xff]  }
 0x31f   :  { %6273 = vmatpush1.bf16.msra.mxu1 %v10619_v42  ;;  %6151 = vmatprep.subr.bf16.mxu0 %v10624_v44  ;;  %v10690_v42 = vld [vmem:[#allocation3 + $0x5e4] ss:$72 sps:$4 sm:$0xff]   ;;  %v10688_v44 = vld [vmem:[#allocation3 + $0x5e0] ss:$72 sps:$4 sm:$0xff]  }
 0x320   :  { %6274 = vmatprep.subr.bf16.mxu1 %v10627_v45  ;;  %v10693_v45 = vld [vmem:[#allocation3 + $0x674] ss:$72 sps:$4 sm:$0xff]  }
 0x322   :  { %6152 = vmatpush1.bf16.msra.mxu0 %v10622_v46  ;;  %v10691_v46 = vld [vmem:[#allocation3 + $0x670] ss:$72 sps:$4 sm:$0xff]  }
 0x323   :  { %6275 = vmatpush1.bf16.msra.mxu1 %v10625_v47  ;;  %6153 = vmatprep.subr.bf16.mxu0 %v10630_v48  ;;  %v10696_v47 = vld [vmem:[#allocation3 + $0x704] ss:$72 sps:$4 sm:$0xff]   ;;  %v10694_v48 = vld [vmem:[#allocation3 + $0x700] ss:$72 sps:$4 sm:$0xff]  }
 0x324   :  { %6276 = vmatprep.subr.bf16.mxu1 %v10633_v49  ;;  %v10699_v49 = vld [vmem:[#allocation3 + $0x794] ss:$72 sps:$4 sm:$0xff]  }
 0x326   :  { %6154 = vmatpush1.bf16.msra.mxu0 %v10628_v50  ;;  %v10697_v50 = vld [vmem:[#allocation3 + $0x790] ss:$72 sps:$4 sm:$0xff]  }
 0x327   :  { %6277 = vmatpush1.bf16.msra.mxu1 %v10631_v51  ;;  %6155 = vmatprep.subr.bf16.mxu0 %v10636_v52  ;;  %v10702_v51 = vld [vmem:[#allocation3 + $0x824] ss:$72 sps:$4 sm:$0xff]   ;;  %v10700_v52 = vld [vmem:[#allocation3 + $0x820] ss:$72 sps:$4 sm:$0xff]  }
 0x328   :  { %6278 = vmatprep.subr.bf16.mxu1 %v10639_v53  ;;  %v10705_v53 = vld [vmem:[#allocation3 + $0x8b4] ss:$72 sps:$4 sm:$0xff]  }
 0x32a   :  { %6156 = vmatpush1.bf16.msra.mxu0 %v10634_v54  ;;  %v10703_v54 = vld [vmem:[#allocation3 + $0x8b0] ss:$72 sps:$4 sm:$0xff]  }
 0x32b   :  { %6279 = vmatpush1.bf16.msra.mxu1 %v10637_v55  ;;  %6157 = vmatprep.subr.bf16.mxu0 %v10642_v56  ;;  %v10708_v55 = vld [vmem:[#allocation3 + $0x944] ss:$72 sps:$4 sm:$0xff]   ;;  %v10706_v56 = vld [vmem:[#allocation3 + $0x940] ss:$72 sps:$4 sm:$0xff]  }
 0x32c   :  { %6280 = vmatprep.subr.bf16.mxu1 %v10645_v57  ;;  %v10711_v57 = vld [vmem:[#allocation3 + $0x9d4] ss:$72 sps:$4 sm:$0xff]  }
 0x32e   :  { %6158 = vmatpush1.bf16.msra.mxu0 %v10640_v58  ;;  %v10709_v58 = vld [vmem:[#allocation3 + $0x9d0] ss:$72 sps:$4 sm:$0xff]  }
 0x32f   :  { %6281 = vmatpush1.bf16.msra.mxu1 %v10643_v59  ;;  %6159 = vmatprep.subr.bf16.mxu0 %v10648_v61  ;;  %v10714_v59 = vld [vmem:[#allocation3 + $0xa64] ss:$72 sps:$4 sm:$0xff]   ;;  %v10712_v61 = vld [vmem:[#allocation3 + $0xa60] ss:$72 sps:$4 sm:$0xff]  }
 0x330   :  { %6282 = vmatprep.subr.bf16.mxu1 %v10651_v62  ;;  %v10717_v62 = vld [vmem:[#allocation3 + $0xaf4] ss:$72 sps:$4 sm:$0xff]  }
 0x332   :  { %6160 = vmatpush1.bf16.msra.mxu0 %v10646_v63  ;;  %v10715_v63 = vld [vmem:[#allocation3 + $0xaf0] ss:$72 sps:$4 sm:$0xff]  }
 0x333   :  { %6283 = vmatpush1.bf16.msra.mxu1 %v10649_v0  ;;  %6161 = vmatprep.subr.bf16.mxu0 %v10654_v1  ;;  %v10720_v0 = vld [vmem:[#allocation3 + $0xb84] ss:$72 sps:$4 sm:$0xff]  }
 0x334   :  { %6284 = vmatprep.subr.bf16.mxu1 %v10657_v2  ;;  %v10809_v1 = vld [vmem:[#allocation6 + $0x2c0] sm:$0xff]  }
 0x335   :  { %v10811_v2 = vld [vmem:[#allocation6 + $0x280] sm:$0xff]  }
 0x336   :  { %6162 = vmatpush1.bf16.msra.mxu0 %v10652_v3  ;;  %v10718_v3 = vld [vmem:[#allocation3 + $0xb80] ss:$72 sps:$4 sm:$0xff]  }
 0x337   :  { %6285 = vmatpush1.bf16.msra.mxu1 %v10655_v4  ;;  %6295 = vmatprep.subr.bf16.mxu0 %v10660_v5  ;;  %v10813_v4 = vld [vmem:[#allocation6 + $0x2c8] sm:$0xff]   ;;  %v10721_v5 = vld [vmem:[#allocation3 + $0xc10] ss:$72 sps:$4 sm:$0xff]  }
 0x338   :  { %9224 = vmatprep.subr.bf16.mxu1 %v10809_v1  ;;  %v10781_v1 = vld [vmem:[#allocation3 + $0x1750] ss:$72 sps:$4 sm:$0xff]  }
 0x339   :  { %6164 = vmatmul.mubr.bf16.vlgmr.msra.gmra.mrb[12].mxu0 %v11138_v19 }
 0x33a   :  { %6287 = vmatmul.mubr.bf16.vlgmr.msra.gmra.mrb[12].mxu1 %v11138_v19  ;;  %6296 = vmatpush1.bf16.msra.mxu0 %v10658_v6  ;;  %v10726_v6 = vld [vmem:[#allocation3 + $0xca4] ss:$72 sps:$4 sm:$0xff]  }
 0x33b   :  { %6327 = vmatprep.mubr.bf16.mxu0 %v11130_v60  ;;  %6297 = vmatprep.subr.bf16.mxu0 %v10663_v7  ;;  %v10817_v7 = vld [vmem:[#allocation6 + $0x2d0] sm:$0xff]  }
 0x33c   :  { %9225 = vmatpush3.bf16.msra.mxu1 %v10811_v2  ;;  %v10786_v2 = vld [vmem:[#allocation3 + $0x17e4] ss:$72 sps:$4 sm:$0xff]  }
 0x33d   :  { %9226 = vmatprep.subr.bf16.mxu1 %v10813_v4  ;;  %v10789_v4 = vld [vmem:[#allocation3 + $0x1874] ss:$72 sps:$4 sm:$0xff]  }
 0x33e   :  { %6298 = vmatpush1.bf16.msra.mxu0 %v10661_v8  ;;  %v10819_v8 = vld [vmem:[#allocation6 + $0x290] sm:$0xff]  }
 0x33f   :  { %6299 = vmatprep.subr.bf16.mxu0 %v10666_v9  ;;  %v10724_v9 = vld [vmem:[#allocation3 + $0xca0] ss:$72 sps:$4 sm:$0xff]  }
 0x342   :  { %6300 = vmatpush1.bf16.msra.mxu0 %v10664_v10  ;;  %v10729_v10 = vld [vmem:[#allocation3 + $0xd34] ss:$72 sps:$4 sm:$0xff]  }
 0x343   :  { %6301 = vmatprep.subr.bf16.mxu0 %v10669_v11  ;;  %v10821_v11 = vld [vmem:[#allocation6 + $0x2d8] sm:$0xff]  }
 0x346   :  { %6302 = vmatpush1.bf16.msra.mxu0 %v10667_v12  ;;  %v10823_v12 = vld [vmem:[#allocation6 + $0x298] sm:$0xff]  }
 0x347   :  { %6303 = vmatprep.subr.bf16.mxu0 %v10672_v13  ;;  %v10727_v13 = vld [vmem:[#allocation3 + $0xd30] ss:$72 sps:$4 sm:$0xff]  }
 0x34a   :  { %6304 = vmatpush1.bf16.msra.mxu0 %v10670_v14  ;;  %v10732_v14 = vld [vmem:[#allocation3 + $0xdc4] ss:$72 sps:$4 sm:$0xff]  }
 0x34b   :  { %6305 = vmatprep.subr.bf16.mxu0 %v10675_v15  ;;  %v10825_v15 = vld [vmem:[#allocation6 + $0x2e0] sm:$0xff]  }
 0x34c   :  { %v5919_v21 = vpop.f32.mrb[8].mxu0 }
 0x34d   :  { %v6042_v60 = vpop.f32.mrb[8].mxu1  ;;  %v5921_v23 = vpop.f32.mrb[9].mxu0 }
 0x34e   :  { %v6044_v25 = vpop.f32.mrb[9].mxu1  ;;  %v6470_v27 = vcombine.low %v5919_v21, %v5921_v23  ;;  %v5923_v29 = vpop.f32.mrb[10].mxu0  ;;  %6306 = vmatpush1.bf16.msra.mxu0 %v10673_v17  ;;  %v10827_v17 = vld [vmem:[#allocation6 + $0x2a0] sm:$0xff]   ;;  %v10735_v21 = vld [vmem:[#allocation3 + $0xe54] ss:$72 sps:$4 sm:$0xff]   ;;  %v10831_v23 = vld [vmem:[#allocation6 + $0x2a8] sm:$0xff]  }
 0x34f   :  { %v6471_v28 = vcombine.low %v6042_v60, %v6044_v25  ;;  %v6046_v30 = vpop.f32.mrb[10].mxu1  ;;  %v5924_v32 = vpop.f32.mrb[11].mxu0  ;;  %6307 = vmatprep.subr.bf16.mxu0 %v10678_v20  ;;  %v10730_v20 = vld [vmem:[#allocation3 + $0xdc0] ss:$72 sps:$4 sm:$0xff]   ;;  %v10733_v25 = vld [vmem:[#allocation3 + $0xe50] ss:$72 sps:$4 sm:$0xff]  }
 0x350   :  { %v6047_v33 = vpop.f32.mrb[11].mxu1  ;;  %v6478_v35 = vrot.slane %v6470_v27, %v11173_v24  ;;  %v10829_v60 = vld [vmem:[#allocation6 + $0x2e8] sm:$0xff]   ;;  %v10835_v29 = vld [vmem:[#allocation6 + $0x2b0] sm:$0xff]   ;;  %v10837_v32 = vld [vmem:[#allocation6 + $0x2f8] sm:$0xff]  }
 0x351   :  { %v6485_v36 = vrot.slane %v6471_v28, %v11173_v24  ;;  %v10738_v27 = vld [vmem:[#allocation3 + $0xee4] ss:$72 sps:$4 sm:$0xff]   ;;  %v10833_v28 = vld [vmem:[#allocation6 + $0x2f0] sm:$0xff]   ;;  %v10736_v30 = vld [vmem:[#allocation3 + $0xee0] ss:$72 sps:$4 sm:$0xff]  }
 0x352   :  { %6308 = vmatpush1.bf16.msra.mxu0 %v10676_v31  ;;  %v10741_v31 = vld [vmem:[#allocation3 + $0xf74] ss:$72 sps:$4 sm:$0xff]  }
 0x353   :  { %v6486_v37 = vcombine.low %v6478_v35, %v6485_v36  ;;  %6309 = vmatprep.subr.bf16.mxu0 %v10681_v34  ;;  %v10839_v33 = vld [vmem:[#allocation6 + $0x2b8] sm:$0xff]   ;;  %v10744_v35 = vld [vmem:[#allocation3 + $0x1004] ss:$72 sps:$4 sm:$0xff]  }
 0x354   :  { %v10739_v34 = vld [vmem:[#allocation3 + $0xf70] ss:$72 sps:$4 sm:$0xff]   ;;  %v10841_v36 = vld [vmem:[#allocation6 + $0x340] sm:$0xff]  }
 0x355   :  { %6524 = vst [vmem:[#allocation2 + $0x10] sm:$0xff] %v6486_v37  ;;  %v10742_v37 = vld [vmem:[#allocation3 + $0x1000] ss:$72 sps:$4 sm:$0xff]  }
 0x356   :  { %6310 = vmatpush1.bf16.msra.mxu0 %v10679_v38  ;;  %v10747_v38 = vld [vmem:[#allocation3 + $0x1094] ss:$72 sps:$4 sm:$0xff]  }
 0x357   :  { %6311 = vmatprep.subr.bf16.mxu0 %v10684_v39  ;;  %v10745_v39 = vld [vmem:[#allocation3 + $0x1090] ss:$72 sps:$4 sm:$0xff]  }
 0x35a   :  { %6312 = vmatpush1.bf16.msra.mxu0 %v10682_v43  ;;  %v10750_v43 = vld [vmem:[#allocation3 + $0x1124] ss:$72 sps:$4 sm:$0xff]  }
 0x35b   :  { %6313 = vmatprep.subr.bf16.mxu0 %v10687_v40  ;;  %v10748_v40 = vld [vmem:[#allocation3 + $0x1120] ss:$72 sps:$4 sm:$0xff]  }
 0x35e   :  { %6314 = vmatpush1.bf16.msra.mxu0 %v10685_v41  ;;  %v10753_v41 = vld [vmem:[#allocation3 + $0x11b4] ss:$72 sps:$4 sm:$0xff]  }
 0x35f   :  { %6315 = vmatprep.subr.bf16.mxu0 %v10690_v42  ;;  %v10751_v42 = vld [vmem:[#allocation3 + $0x11b0] ss:$72 sps:$4 sm:$0xff]  }
 0x362   :  { %6316 = vmatpush1.bf16.msra.mxu0 %v10688_v44  ;;  %v10756_v44 = vld [vmem:[#allocation3 + $0x1244] ss:$72 sps:$4 sm:$0xff]  }
 0x363   :  { %6317 = vmatprep.subr.bf16.mxu0 %v10693_v45  ;;  %v10754_v45 = vld [vmem:[#allocation3 + $0x1240] ss:$72 sps:$4 sm:$0xff]  }
 0x366   :  { %6318 = vmatpush1.bf16.msra.mxu0 %v10691_v46  ;;  %v10759_v46 = vld [vmem:[#allocation3 + $0x12d4] ss:$72 sps:$4 sm:$0xff]  }
 0x367   :  { %6319 = vmatprep.subr.bf16.mxu0 %v10696_v47  ;;  %v10757_v47 = vld [vmem:[#allocation3 + $0x12d0] ss:$72 sps:$4 sm:$0xff]  }
 0x36a   :  { %6320 = vmatpush1.bf16.msra.mxu0 %v10694_v48  ;;  %v10762_v48 = vld [vmem:[#allocation3 + $0x1364] ss:$72 sps:$4 sm:$0xff]  }
 0x36b   :  { %6321 = vmatprep.subr.bf16.mxu0 %v10699_v49  ;;  %v10760_v49 = vld [vmem:[#allocation3 + $0x1360] ss:$72 sps:$4 sm:$0xff]  }
 0x36e   :  { %6322 = vmatpush1.bf16.msra.mxu0 %v10697_v50  ;;  %v10765_v50 = vld [vmem:[#allocation3 + $0x13f4] ss:$72 sps:$4 sm:$0xff]  }
 0x36f   :  { %6323 = vmatprep.subr.bf16.mxu0 %v10702_v51  ;;  %v10763_v51 = vld [vmem:[#allocation3 + $0x13f0] ss:$72 sps:$4 sm:$0xff]  }
 0x372   :  { %6324 = vmatpush1.bf16.msra.mxu0 %v10700_v52  ;;  %v10768_v52 = vld [vmem:[#allocation3 + $0x1484] ss:$72 sps:$4 sm:$0xff]  }
 0x373   :  { %6325 = vmatprep.subr.bf16.mxu0 %v10705_v53  ;;  %v10766_v53 = vld [vmem:[#allocation3 + $0x1480] ss:$72 sps:$4 sm:$0xff]  }
 0x376   :  { %6326 = vmatpush1.bf16.msra.mxu0 %v10703_v54  ;;  %v10771_v54 = vld [vmem:[#allocation3 + $0x1514] ss:$72 sps:$4 sm:$0xff]  }
 0x377   :  { %6336 = vmatprep.subr.bf16.mxu0 %v10708_v55  ;;  %v6531_v55 = vld [vmem:[#allocation2 + $0x8] sm:$0xff] }
 0x379   :  { %6328 = vmatmul.mubr.bf16.vlgmr.msra.gmra.mrb[16].mxu0 %v11134_v16  ;;  %v10723_v16 = vld [vmem:[#allocation3 + $0xc14] ss:$72 sps:$4 sm:$0xff]  }
 0x37a   :  { %6337 = vmatpush1.bf16.msra.mxu0 %v10706_v56  ;;  %6368 = vmatprep.mubr.bf16.mxu0 %v11142_v22  ;;  %v10815_v22 = vld [vmem:[#allocation6 + $0x288] sm:$0xff]   ;;  %v9077_v56 = vmul.f32 -1.442695, %v6531_v55 }
 0x37b   :  { %6338 = vmatprep.subr.bf16.mxu0 %v10711_v57  ;;  %9227 = vmatpush3.bf16.msra.mxu1 %v10815_v22  ;;  %v10772_v57 = vld [vmem:[#allocation3 + $0x15a0] ss:$72 sps:$4 sm:$0xff]   ;;  %v10787_v22 = vld [vmem:[#allocation3 + $0x1870] ss:$72 sps:$4 sm:$0xff]  }
 0x37c   :  { %9228 = vmatprep.subr.bf16.mxu1 %v10817_v7  ;;  %10946 = vpow2.f32 %v9077_v56  ;;  %v10795_v7 = vld [vmem:[#allocation3 + $0x1994] ss:$72 sps:$4 sm:$0xff]  }
 0x37d   :  { %v10826_v56 = vld [vmem:[#allocation6 + $0x138] sm:$0xff]  }
 0x37e   :  { %6339 = vmatpush1.bf16.msra.mxu0 %v10709_v58  ;;  %v10777_v58 = vld [vmem:[#allocation3 + $0x1634] ss:$72 sps:$4 sm:$0xff]  }
 0x37f   :  { %6340 = vmatprep.subr.bf16.mxu0 %v10714_v59  ;;  %9229 = vmatpush3.bf16.msra.mxu1 %v10819_v8  ;;  %v10775_v59 = vld [vmem:[#allocation3 + $0x1630] ss:$72 sps:$4 sm:$0xff]   ;;  %v6532_v8 = vld [vmem:[#allocation2 + $0x10] sm:$0xf] }
 0x380   :  { %9230 = vmatprep.subr.bf16.mxu1 %v10821_v11  ;;  %v9078_v11 = vmul.f32 -1.442695, %v6532_v8 }
 0x382   :  { %6341 = vmatpush1.bf16.msra.mxu0 %v10712_v61  ;;  %v10780_v61 = vld [vmem:[#allocation3 + $0x16c4] ss:$72 sps:$4 sm:$0xff]  }
 0x383   :  { %6342 = vmatprep.subr.bf16.mxu0 %v10717_v62  ;;  %9231 = vmatpush3.bf16.msra.mxu1 %v10823_v12  ;;  %v10778_v62 = vld [vmem:[#allocation3 + $0x16c0] ss:$72 sps:$4 sm:$0xff]   ;;  %v10798_v12 = vld [vmem:[#allocation3 + $0x1a24] ss:$72 sps:$4 sm:$0xff]  }
 0x384   :  { %9232 = vmatprep.subr.bf16.mxu1 %v10825_v15  ;;  %v10801_v15 = vld [vmem:[#allocation3 + $0x1ab4] ss:$72 sps:$4 sm:$0xff]  }
 0x386   :  { %6343 = vmatpush1.bf16.msra.mxu0 %v10715_v63  ;;  %v10783_v63 = vld [vmem:[#allocation3 + $0x1754] ss:$72 sps:$4 sm:$0xff]  }
 0x387   :  { %6344 = vmatprep.subr.bf16.mxu0 %v10720_v0  ;;  %9233 = vmatpush3.bf16.msra.mxu1 %v10827_v17  ;;  %v10947_v0 = vpop.eup %10946 }
 0x388   :  { %9234 = vmatprep.subr.bf16.mxu1 %v10829_v60 }
 0x38a   :  { %6345 = vmatpush1.bf16.msra.mxu0 %v10718_v3  ;;  %v6545_v3 = vadd.f32 1.0, %v10947_v0  ;;  %v10836_v0 = vld [vmem:[#allocation6 + $0x250] sm:$0xff]  }
 0x38b   :  { %6346 = vmatprep.subr.bf16.mxu0 %v10723_v16  ;;  %9235 = vmatpush3.bf16.msra.mxu1 %v10831_v23  ;;  %v10784_v16 = vld [vmem:[#allocation3 + $0x17e0] ss:$72 sps:$4 sm:$0xff]  }
 0x38c   :  { %9236 = vmatprep.subr.bf16.mxu1 %v10833_v28  ;;  %10948 = vrcp.f32 %v6545_v3  ;;  %v10803_v23 = vld [vmem:[#allocation6 + $0x100] sm:$0xff]  }
 0x38d   :  { %10950 = vpow2.f32 %v9078_v11 }
 0x38e   :  { %6347 = vmatpush1.bf16.msra.mxu0 %v10721_v5  ;;  %v10792_v5 = vld [vmem:[#allocation3 + $0x1904] ss:$72 sps:$4 sm:$0xff]  }
 0x38f   :  { %6348 = vmatprep.subr.bf16.mxu0 %v10726_v6  ;;  %9237 = vmatpush3.bf16.msra.mxu1 %v10835_v29  ;;  %v10790_v6 = vld [vmem:[#allocation3 + $0x1900] ss:$72 sps:$4 sm:$0xff]  }
 0x390   :  { %9238 = vmatprep.subr.bf16.mxu1 %v10837_v32  ;;  %v10805_v29 = vld [vmem:[#allocation6 + $0x108] sm:$0xff]   ;;  %v10807_v32 = vld [vmem:[#allocation6 + $0x110] sm:$0xff]  }
 0x392   :  { %6349 = vmatpush1.bf16.msra.mxu0 %v10724_v9 }
 0x393   :  { %6350 = vmatprep.subr.bf16.mxu0 %v10729_v10  ;;  %9239 = vmatpush3.bf16.msra.mxu1 %v10839_v33  ;;  %v10793_v10 = vld [vmem:[#allocation3 + $0x1990] ss:$72 sps:$4 sm:$0xff]  }
 0x394   :  { %9246 = vmatprep.subr.bf16.mxu1 %v10841_v36  ;;  %v10808_v33 = vld [vmem:[#allocation6 + $0x158] sm:$0xff]   ;;  %v10814_v36 = vld [vmem:[#allocation6 + $0x120] sm:$0xff]  }
 0x396   :  { %6351 = vmatpush1.bf16.msra.mxu0 %v10727_v13  ;;  %v10949_v9 = vpop.eup %10948 }
 0x397   :  { %6352 = vmatprep.subr.bf16.mxu0 %v10732_v14  ;;  %v11208_v13 = vmul.f32 %v10949_v9, %v6531_v55  ;;  %v10796_v14 = vld [vmem:[#allocation3 + $0x1a20] ss:$72 sps:$4 sm:$0xff]  }
 0x399   :  { %v11212_v17 = vrot.slane %v11208_v13, %v11173_v24 }
 0x39a   :  { %6353 = vmatpush1.bf16.msra.mxu0 %v10730_v20  ;;  %v10799_v20 = vld [vmem:[#allocation3 + $0x1ab0] ss:$72 sps:$4 sm:$0xff]  }
 0x39b   :  { %6354 = vmatprep.subr.bf16.mxu0 %v10735_v21  ;;  %v10802_v21 = vld [vmem:[#allocation6 + $0x140] sm:$0xff]   ;;  %v6591_v60 = vcombine.high %v11212_v17, %v11212_v17 }
 0x39d   :  { %v6616_v28 = vpack.c.bf16 %v6591_v60, %v6591_v60  ;;  %v10849_v60 = vld [vmem:[#allocation6 + $0x350] sm:$0xff]  }
 0x39e   :  { %6355 = vmatpush1.bf16.msra.mxu0 %v10733_v25  ;;  %v10804_v25 = vld [vmem:[#allocation6 + $0x148] sm:$0xff]  }
 0x39f   :  { %6356 = vmatprep.subr.bf16.mxu0 %v10738_v27  ;;  %v10951_v27 = vpop.eup %10950 }
 0x3a2   :  { %6357 = vmatpush1.bf16.msra.mxu0 %v10736_v30  ;;  %v10806_v30 = vld [vmem:[#allocation6 + $0x150] sm:$0xff]  }
 0x3a3   :  { %6358 = vmatprep.subr.bf16.mxu0 %v10741_v31  ;;  %v6546_v31 = vadd.f32 1.0, %v10951_v27  ;;  %v10851_v27 = vld [vmem:[#allocation6 + $0x310] sm:$0xff]  }
 0x3a5   :  { %10952 = vrcp.f32 %v6546_v31  ;;  %v10855_v31 = vld [vmem:[#allocation6 + $0x318] sm:$0xff]  }
 0x3a6   :  { %6359 = vmatpush1.bf16.msra.mxu0 %v10739_v34  ;;  %v10810_v34 = vld [vmem:[#allocation6 + $0x118] sm:$0xff]  }
 0x3a7   :  { %6360 = vmatprep.subr.bf16.mxu0 %v10744_v35  ;;  %v10812_v35 = vld [vmem:[#allocation6 + $0x160] sm:$0xff]  }
 0x3aa   :  { %6361 = vmatpush1.bf16.msra.mxu0 %v10742_v37  ;;  %v10816_v37 = vld [vmem:[#allocation6 + $0x168] sm:$0xff]  }
 0x3ab   :  { %6362 = vmatprep.subr.bf16.mxu0 %v10747_v38  ;;  %v10818_v38 = vld [vmem:[#allocation6 + $0x128] sm:$0xff]  }
 0x3ae   :  { %6363 = vmatpush1.bf16.msra.mxu0 %v10745_v39  ;;  %v10820_v39 = vld [vmem:[#allocation6 + $0x170] sm:$0xff]  }
 0x3af   :  { %6364 = vmatprep.subr.bf16.mxu0 %v10750_v43 }
 0x3b2   :  { %6365 = vmatpush1.bf16.msra.mxu0 %v10748_v40 }
 0x3b3   :  { %6366 = vmatprep.subr.bf16.mxu0 %v10753_v41 }
 0x3b6   :  { %6367 = vmatpush1.bf16.msra.mxu0 %v10751_v42 }
 0x3b7   :  { %6377 = vmatprep.subr.bf16.mxu0 %v10756_v44 }
 0x3b9   :  { %6369 = vmatmul.mubr.bf16.vlgmr.msra.gmra.mrb[16].mxu0 %v11150_v26  ;;  %v10769_v26 = vld [vmem:[#allocation3 + $0x1510] ss:$72 sps:$4 sm:$0xff]  }
 0x3ba   :  { %6378 = vmatpush1.bf16.msra.mxu0 %v10754_v45  ;;  %6409 = vmatprep.mubr.bf16.mxu0 %v11136_v18  ;;  %v10774_v18 = vld [vmem:[#allocation3 + $0x15a4] ss:$72 sps:$4 sm:$0xff]  }
 0x3bb   :  { %6379 = vmatprep.subr.bf16.mxu0 %v10759_v46 }
 0x3be   :  { %6380 = vmatpush1.bf16.msra.mxu0 %v10757_v47 }
 0x3bf   :  { %6381 = vmatprep.subr.bf16.mxu0 %v10762_v48 }
 0x3c2   :  { %6382 = vmatpush1.bf16.msra.mxu0 %v10760_v49  ;;  %v10822_v49 = vld [vmem:[#allocation6 + $0x130] sm:$0xff]  }
 0x3c3   :  { %6383 = vmatprep.subr.bf16.mxu0 %v10765_v50 }
 0x3c6   :  { %6384 = vmatpush1.bf16.msra.mxu0 %v10763_v51 }
 0x3c7   :  { %6385 = vmatprep.subr.bf16.mxu0 %v10768_v52  ;;  %v10824_v52 = vld [vmem:[#allocation6 + $0x178] sm:$0xff]  }
 0x3ca   :  { %6386 = vmatpush1.bf16.msra.mxu0 %v10766_v53 }
 0x3cb   :  { %6387 = vmatprep.subr.bf16.mxu0 %v10771_v54 }
 0x3ce   :  { %6388 = vmatpush1.bf16.msra.mxu0 %v10769_v26 }
 0x3cf   :  { %6389 = vmatprep.subr.bf16.mxu0 %v10774_v18  ;;  %v10828_v18 = vld [vmem:[#allocation6 + $0x240] sm:$0xff]  }
 0x3d2   :  { %6390 = vmatpush1.bf16.msra.mxu0 %v10772_v57 }
 0x3d3   :  { %6391 = vmatprep.subr.bf16.mxu0 %v10777_v58  ;;  %v10830_v58 = vld [vmem:[#allocation6 + $0x200] sm:$0xff]  }
 0x3d6   :  { %6392 = vmatpush1.bf16.msra.mxu0 %v10775_v59  ;;  %v6615_v59 = vpack.c.bf16 %v11212_v17, %v11212_v17  ;;  %v10846_v17 = vld [vmem:[#allocation6 + $0x220] sm:$0xff]  }
 0x3d7   :  { %6393 = vmatprep.subr.bf16.mxu0 %v10780_v61  ;;  %v10832_v61 = vld [vmem:[#allocation6 + $0x248] sm:$0xff]  }
 0x3da   :  { %6394 = vmatpush1.bf16.msra.mxu0 %v10778_v62 }
 0x3db   :  { %6395 = vmatprep.subr.bf16.mxu0 %v10783_v63  ;;  %v10834_v63 = vld [vmem:[#allocation6 + $0x208] sm:$0xff]  }
 0x3de   :  { %6396 = vmatpush1.bf16.msra.mxu0 %v10781_v1 }
 0x3df   :  { %6397 = vmatprep.subr.bf16.mxu0 %v10786_v2  ;;  %v10838_v2 = vld [vmem:[#allocation6 + $0x210] sm:$0xff]  }
 0x3e2   :  { %6398 = vmatpush1.bf16.msra.mxu0 %v10784_v16  ;;  %v10840_v16 = vld [vmem:[#allocation6 + $0x258] sm:$0xff]  }
 0x3e3   :  { %6399 = vmatprep.subr.bf16.mxu0 %v10789_v4 }
 0x3e6   :  { %6400 = vmatpush1.bf16.msra.mxu0 %v10787_v22 }
 0x3e7   :  { %6401 = vmatprep.subr.bf16.mxu0 %v10792_v5 }
 0x3ea   :  { %6402 = vmatpush1.bf16.msra.mxu0 %v10790_v6  ;;  %v10842_v6 = vld [vmem:[#allocation6 + $0x218] sm:$0xff]  }
 0x3eb   :  { %6403 = vmatprep.subr.bf16.mxu0 %v10795_v7 }
 0x3ee   :  { %6404 = vmatpush1.bf16.msra.mxu0 %v10793_v10  ;;  %v10843_v10 = vld [vmem:[#allocation6 + $0x300] sm:$0xff]  }
 0x3ef   :  { %6405 = vmatprep.subr.bf16.mxu0 %v10798_v12 }
 0x3f2   :  { %6406 = vmatpush1.bf16.msra.mxu0 %v10796_v14  ;;  %v10845_v14 = vld [vmem:[#allocation6 + $0x348] sm:$0xff]  }
 0x3f3   :  { %6407 = vmatprep.subr.bf16.mxu0 %v10801_v15 }
 0x3f6   :  { %6408 = vmatpush1.bf16.msra.mxu0 %v10799_v20  ;;  %v10848_v20 = vld [vmem:[#allocation6 + $0x268] sm:$0xff]  }
 0x3f7   :  { %9356 = vmatprep.subr.bf16.mxu0 %v10802_v21  ;;  %v10847_v21 = vld [vmem:[#allocation6 + $0x308] sm:$0xff]  }
 0x3f9   :  { %6410 = vmatmul.mubr.bf16.vlgmr.msra.gmra.mrb[16].mxu0 %v11138_v19  ;;  %v10953_v19 = vpop.eup %10952 }
 0x3fa   :  { %9357 = vmatpush3.bf16.msra.mxu0 %v10803_v23  ;;  %8099 = vmatprep.mubr.bf16.mxu0 %v6616_v28  ;;  %v6555_v41 = vmul.f32 %v10953_v19, %v6532_v8  ;;  %v10844_v8 = vld [vmem:[#allocation6 + $0x260] sm:$0xff]   ;;  %v10850_v23 = vld [vmem:[#allocation6 + $0x228] sm:$0xff]   ;;  %v10853_v28 = vld [vmem:[#allocation6 + $0x358] sm:$0xff]  }
 0x3fb   :  { %9358 = vmatprep.subr.bf16.mxu0 %v10804_v25  ;;  %v10852_v25 = vld [vmem:[#allocation6 + $0x270] sm:$0xff]  }
 0x3fc   :  { %v11220_v55 = vrot.slane %v6555_v41, %v11173_v24  ;;  %v10862_v19 = vld [vmem:[#allocation6 + $0x370] sm:$0xff]   ;;  %v10867_v41 = vld [vmem:[#allocation6 + $0x380] sm:$0xff]  }
 0x3fe   :  { %9359 = vmatpush3.bf16.msra.mxu0 %v10805_v29  ;;  %v6600_v57 = vcombine.high %v11220_v55, %v11220_v55  ;;  %v10854_v29 = vld [vmem:[#allocation6 + $0x230] sm:$0xff]  }
 0x3ff   :  { %9360 = vmatprep.subr.bf16.mxu0 %v10806_v30  ;;  %v10856_v30 = vld [vmem:[#allocation6 + $0x278] sm:$0xff]  }
 0x400   :  { %v6620_v62 = vpack.c.bf16 %v6600_v57, %v6600_v57 }
 0x402   :  { %9361 = vmatpush3.bf16.msra.mxu0 %v10807_v32  ;;  %v10857_v32 = vld [vmem:[#allocation6 + $0x360] sm:$0xff]  }
 0x403   :  { %9362 = vmatprep.subr.bf16.mxu0 %v10808_v33  ;;  %v10858_v33 = vld [vmem:[#allocation6 + $0x238] sm:$0xff]  }
 0x406   :  { %9363 = vmatpush3.bf16.msra.mxu0 %v10810_v34  ;;  %v10859_v34 = vld [vmem:[#allocation6 + $0x320] sm:$0xff]  }
 0x407   :  { %9364 = vmatprep.subr.bf16.mxu0 %v10812_v35  ;;  %v10860_v35 = vld [vmem:[#allocation6 + $0x368] sm:$0xff]  }
 0x40a   :  { %9365 = vmatpush3.bf16.msra.mxu0 %v10814_v36  ;;  %v6619_v36 = vpack.c.bf16 %v11220_v55, %v11220_v55  ;;  %v10879_v55 = vld [vmem:[#allocation6 + $0x3b0] sm:$0xff]  }
 0x40b   :  { %9366 = vmatprep.subr.bf16.mxu0 %v10816_v37  ;;  %v10861_v37 = vld [vmem:[#allocation6 + $0x328] sm:$0xff]  }
 0x40c   :  { %v6165_v43 = vpop.f32.mrb[12].mxu0 }
 0x40d   :  { %v6288_v40 = vpop.f32.mrb[12].mxu1  ;;  %v6167_v42 = vpop.f32.mrb[13].mxu0 }
 0x40e   :  { %v6290_v44 = vpop.f32.mrb[13].mxu1  ;;  %v6487_v45 = vcombine.low %v6165_v43, %v6167_v42  ;;  %v6169_v47 = vpop.f32.mrb[14].mxu0  ;;  %9367 = vmatpush3.bf16.msra.mxu0 %v10818_v38  ;;  %v10863_v38 = vld [vmem:[#allocation6 + $0x330] sm:$0xff]   ;;  %v10865_v43 = vld [vmem:[#allocation6 + $0x338] sm:$0xff]  }
 0x40f   :  { %v6488_v46 = vcombine.low %v6288_v40, %v6290_v44  ;;  %v6292_v48 = vpop.f32.mrb[14].mxu1  ;;  %v6170_v50 = vpop.f32.mrb[15].mxu0  ;;  %9368 = vmatprep.subr.bf16.mxu0 %v10820_v39  ;;  %v10864_v39 = vld [vmem:[#allocation6 + $0x378] sm:$0xff]   ;;  %v10866_v40 = vld [vmem:[#allocation6 + $0x3c0] sm:$0xff]   ;;  %v10868_v44 = vld [vmem:[#allocation6 + $0x3c8] sm:$0xff]  }
 0x410   :  { %v6293_v51 = vpop.f32.mrb[15].mxu1  ;;  %v6495_v53 = vrot.slane %v6487_v45, %v11173_v24  ;;  %v10869_v45 = vld [vmem:[#allocation6 + $0x388] sm:$0xff]   ;;  %v10871_v47 = vld [vmem:[#allocation6 + $0x390] sm:$0xff]   ;;  %v10872_v48 = vld [vmem:[#allocation6 + $0x3d8] sm:$0xff]  }
 0x411   :  { %v6502_v54 = vrot.slane %v6488_v46, %v11173_v24  ;;  %v10870_v46 = vld [vmem:[#allocation6 + $0x3d0] sm:$0xff]   ;;  %v10874_v50 = vld [vmem:[#allocation6 + $0x3e0] sm:$0xff]  }
 0x412   :  { %9369 = vmatpush3.bf16.msra.mxu0 %v10822_v49  ;;  %v10873_v49 = vld [vmem:[#allocation6 + $0x398] sm:$0xff]   ;;  %v10875_v51 = vld [vmem:[#allocation6 + $0x3a0] sm:$0xff]  }
 0x413   :  { %v6503_v26 = vcombine.low %v6495_v53, %v6502_v54  ;;  %9370 = vmatprep.subr.bf16.mxu0 %v10824_v52  ;;  %v10876_v52 = vld [vmem:[#allocation6 + $0x3e8] sm:$0xff]   ;;  %v10878_v54 = vld [vmem:[#allocation6 + $0x3f0] sm:$0xff]  }
 0x414   :  { %v10877_v53 = vld [vmem:[#allocation6 + $0x3a8] sm:$0xff]  }
 0x415   :  { %6525 = vst [vmem:[#allocation2 + $0x18] sm:$0xff] %v6503_v26  ;;  %v10880_v26 = vld [vmem:[#allocation6 + $0x3f8] sm:$0xff]  }
 0x416   :  { %9371 = vmatpush3.bf16.msra.mxu0 %v10826_v56  ;;  %v10881_v56 = vld [vmem:[#allocation6 + $0x3b8] sm:$0xff]  }
 0x417   :  { %9400 = vmatprep.subr.bf16.mxu0 %v10828_v18  ;;  %v10882_v18 = vld [vmem:[#allocation6 + $0x440] sm:$0xff]  }
 0x419   :  { %8100 = vmatmul.mubr.bf16.vlgmr.msra.gmra.mrb[20].mxu0 %v6615_v59 }
 0x41a   :  { %9401 = vmatpush3.bf16.msra.mxu0 %v10830_v58  ;;  %8179 = vmatprep.mubr.bf16.mxu0 %v6620_v62  ;;  %v71_v62 = vld [vmem:[#allocation2 + $0x20] sm:$0xf] }
 0x41b   :  { %9402 = vmatprep.subr.bf16.mxu0 %v10832_v61 }
 0x41c   :  { %v6533_v1 = vld [vmem:[#allocation2 + $0x14] sm:$0xff] }
 0x41d   :  { %v6621_v3 = vmax.f32 %v6533_v1, 0.0 }
 0x41e   :  { %9403 = vmatpush3.bf16.msra.mxu0 %v10834_v63 }
 0x41f   :  { %9404 = vmatprep.subr.bf16.mxu0 %v10836_v0  ;;  %v6632_v4 = vrot.slane %v6621_v3, %v11173_v24  ;;  %v6625_v22 = vcombine.high %v6621_v3, %v6621_v3 }
 0x421   :  { %v6640_v5 = vcombine.high %v6632_v4, %v6632_v4  ;;  %v11228_v7 = vrot.slane %v6625_v22, %v11173_v24  ;;  %v6667_v12 = vpack.c.bf16 %v6632_v4, %v6632_v4 }
 0x422   :  { %9405 = vmatpush3.bf16.msra.mxu0 %v10838_v2  ;;  %v6530_v2 = vld [vmem:[#allocation2] sm:$0xff] }
 0x423   :  { %9406 = vmatprep.subr.bf16.mxu0 %v10840_v16  ;;  %v6668_v9 = vpack.c.bf16 %v6640_v5, %v6640_v5  ;;  %v6641_v11 = vcombine.high %v11228_v7, %v11228_v7  ;;  %v6669_v42 = vpack.c.bf16 %v11228_v7, %v11228_v7  ;;  %v9076_v3 = vmul.f32 -1.442695, %v6530_v2 }
 0x425   :  { %7379 = vmatprep.mubr.bf16.mxu1 %v6668_v9  ;;  %v6670_v15 = vpack.c.bf16 %v6641_v11, %v6641_v11  ;;  %10954 = vpow2.f32 %v9076_v3  ;;  %v10883_v9 = vld [vmem:[#allocation6 + $0x400] sm:$0xff]  }
 0x426   :  { %9407 = vmatpush3.bf16.msra.mxu0 %v10842_v6  ;;  %7380 = vmatmul.mubr.bf16.vlgmr.msra.gmra.mrb[16].mxu1 %v6667_v12  ;;  %v10884_v12 = vld [vmem:[#allocation6 + $0x448] sm:$0xff]  }
 0x427   :  { %9408 = vmatprep.subr.bf16.mxu0 %v10844_v8  ;;  %9247 = vmatpush3.bf16.msra.mxu1 %v10843_v10 }
 0x428   :  { %7419 = vmatprep.mubr.bf16.mxu1 %v6670_v15  ;;  %9248 = vmatprep.subr.bf16.mxu1 %v10845_v14 }
 0x42a   :  { %9409 = vmatpush3.bf16.msra.mxu0 %v10846_v17  ;;  %v10885_v17 = vld [vmem:[#allocation6 + $0x408] sm:$0xff]  }
 0x42b   :  { %9410 = vmatprep.subr.bf16.mxu0 %v10848_v20  ;;  %9249 = vmatpush3.bf16.msra.mxu1 %v10847_v21  ;;  %v10886_v20 = vld [vmem:[#allocation6 + $0x450] sm:$0xff]  }
 0x42c   :  { %9250 = vmatprep.subr.bf16.mxu1 %v10849_v60  ;;  %v10887_v60 = vld [vmem:[#allocation6 + $0x410] sm:$0xff]  }
 0x42e   :  { %9411 = vmatpush3.bf16.msra.mxu0 %v10850_v23  ;;  %v10888_v23 = vld [vmem:[#allocation6 + $0x458] sm:$0xff]  }
 0x42f   :  { %9412 = vmatprep.subr.bf16.mxu0 %v10852_v25  ;;  %9251 = vmatpush3.bf16.msra.mxu1 %v10851_v27  ;;  %v10955_v14 = vpop.eup %10954 }
 0x430   :  { %9252 = vmatprep.subr.bf16.mxu1 %v10853_v28  ;;  %v6544_v21 = vadd.f32 1.0, %v10955_v14 }
 0x432   :  { %9413 = vmatpush3.bf16.msra.mxu0 %v10854_v29  ;;  %10956 = vrcp.f32 %v6544_v21 }
 0x433   :  { %9414 = vmatprep.subr.bf16.mxu0 %v10856_v30  ;;  %9253 = vmatpush3.bf16.msra.mxu1 %v10855_v31  ;;  %v10889_v30 = vld [vmem:[#allocation6 + $0x418] sm:$0xff]  }
 0x434   :  { %9254 = vmatprep.subr.bf16.mxu1 %v10857_v32  ;;  %v10890_v32 = vld [vmem:[#allocation6 + $0x460] sm:$0xff]  }
 0x436   :  { %9415 = vmatpush3.bf16.msra.mxu0 %v10858_v33  ;;  %v10891_v33 = vld [vmem:[#allocation6 + $0x420] sm:$0xff]  }
 0x437   :  { %9255 = vmatpush3.bf16.msra.mxu1 %v10859_v34  ;;  %v10892_v34 = vld [vmem:[#allocation6 + $0x468] sm:$0xff]  }
 0x438   :  { %9256 = vmatprep.subr.bf16.mxu1 %v10860_v35 }
 0x439   :  { %8180 = vmatmul.mubr.bf16.vlgmr.msra.gmra.mrb[24].mxu0 %v6619_v36  ;;  %v10893_v36 = vld [vmem:[#allocation6 + $0x428] sm:$0xff]  }
 0x43b   :  { %9257 = vmatpush3.bf16.msra.mxu1 %v10861_v37  ;;  %v10894_v37 = vld [vmem:[#allocation6 + $0x470] sm:$0xff]  }
 0x43c   :  { %9258 = vmatprep.subr.bf16.mxu1 %v10862_v19  ;;  %v10957_v35 = vpop.eup %10956 }
 0x43d   :  { %v6553_v19 = vmul.f32 %v10957_v35, %v6530_v2  ;;  %v10910_v2 = vld [vmem:[#allocation6 + $0x70] sm:$0xff]   ;;  %v6576_v35 = vcombine.high %v11208_v13, %v11208_v13  ;;  %v10933_v13 = vld [vmem:[#allocation6 + $0x188] sm:$0xff]  }
 0x43f   :  { %9259 = vmatpush3.bf16.msra.mxu1 %v10863_v38  ;;  %v6559_v3 = vcombine.high %v6553_v19, %v6553_v19 }
 0x440   :  { %9260 = vmatprep.subr.bf16.mxu1 %v10864_v39  ;;  %v10895_v39 = vld [vmem:[#allocation6 + $0x430] sm:$0xff]  }
 0x443   :  { %9261 = vmatpush3.bf16.msra.mxu1 %v10865_v43 }
 0x444   :  { %9268 = vmatprep.subr.bf16.mxu1 %v10866_v40  ;;  %v10896_v40 = vld [vmem:[#allocation6 + $0x478] sm:$0xff]  }
 0x446   :  { %7420 = vmatmul.mubr.bf16.vlgmr.msra.gmra.mrb[20].mxu1 %v6669_v42 }
 0x447   :  { %9269 = vmatpush3.bf16.msra.mxu1 %v10867_v41 }
 0x448   :  { %9270 = vmatprep.subr.bf16.mxu1 %v10868_v44  ;;  %v11242_v44 = vrot.slane %v6553_v19, %v11173_v24  ;;  %v6590_v19 = vrot.slane %v6576_v35, %v11173_v24 }
 0x44b   :  { %9271 = vmatpush3.bf16.msra.mxu1 %v10869_v45 }
 0x44c   :  { %9272 = vmatprep.subr.bf16.mxu1 %v10870_v46  ;;  %v10897_v46 = vld [vmem:[#allocation6 + $0x438] sm:$0xff]  }
 0x44f   :  { %9273 = vmatpush3.bf16.msra.mxu1 %v10871_v47  ;;  %v10898_v47 = vld [vmem:[#allocation6 + $0x40] sm:$0xff]  }
 0x450   :  { %9274 = vmatprep.subr.bf16.mxu1 %v10872_v48  ;;  %v6574_v48 = vcombine.high %v11242_v44, %v11242_v44 }
 0x453   :  { %9275 = vmatpush3.bf16.msra.mxu1 %v10873_v49  ;;  %v10899_v49 = vld [vmem:[#allocation6] sm:$0xff]  }
 0x454   :  { %9276 = vmatprep.subr.bf16.mxu1 %v10874_v50 }
 0x457   :  { %9277 = vmatpush3.bf16.msra.mxu1 %v10875_v51  ;;  %v10900_v51 = vld [vmem:[#allocation6 + $0x48] sm:$0xff]  }
 0x458   :  { %9278 = vmatprep.subr.bf16.mxu1 %v10876_v52  ;;  %v6612_v52 = vpack.c.bf16 %v6574_v48, %v6574_v48  ;;  %v10938_v48 = vld [vmem:[#allocation6 + $0x1e0] sm:$0xff]  }
 0x45b   :  { %9279 = vmatpush3.bf16.msra.mxu1 %v10877_v53  ;;  %v10901_v53 = vld [vmem:[#allocation6 + $0x8] sm:$0xff]  }
 0x45c   :  { %9280 = vmatprep.subr.bf16.mxu1 %v10878_v54  ;;  %v10902_v54 = vld [vmem:[#allocation6 + $0x50] sm:$0xff]  }
 0x45f   :  { %9281 = vmatpush3.bf16.msra.mxu1 %v10879_v55  ;;  %v10903_v55 = vld [vmem:[#allocation6 + $0x10] sm:$0xff]  }
 0x460   :  { %9282 = vmatprep.subr.bf16.mxu1 %v10880_v26  ;;  %v10904_v26 = vld [vmem:[#allocation6 + $0x58] sm:$0xff]  }
 0x463   :  { %9283 = vmatpush3.bf16.msra.mxu1 %v10881_v56 }
 0x464   :  { %9290 = vmatprep.subr.bf16.mxu1 %v10882_v18 }
 0x4cc   :  { %v6411_v57 = vpop.f32.mrb[16].mxu0 }
 0x4cd   :  { %v6413_v58 = vpop.f32.mrb[17].mxu0 }
 0x4ce   :  { %v6504_v59 = vcombine.low %v6411_v57, %v6413_v58  ;;  %v6415_v61 = vpop.f32.mrb[18].mxu0 }
 0x4cf   :  { %v6416_v63 = vpop.f32.mrb[19].mxu0 }
 0x4d0   :  { %v6511_v0 = vrot.slane %v6504_v59, %v11173_v24  ;;  %v10905_v59 = vld [vmem:[#allocation6 + $0x18] sm:$0xff]   ;;  %v10907_v63 = vld [vmem:[#allocation6 + $0x20] sm:$0xff]  }
 0x4d2   :  { %v6521_v1 = vadd.f32 %v6511_v0, %v71_v62  ;;  %v10906_v62 = vld [vmem:[#allocation6 + $0x60] sm:$0xff]   ;;  %v10908_v0 = vld [vmem:[#allocation6 + $0x68] sm:$0xff]  }
 0x4d4   :  { %6526 = vst [vmem:[#allocation2 + $0x20] sm:$0xf] %v6521_v1  ;;  %v10909_v1 = vld [vmem:[#allocation6 + $0x28] sm:$0xff]  }
 0x4db   :  { %v6534_v16 = vld [vmem:[#allocation2 + $0x1c] sm:$0xff] }
 0x4dc   :  { %v6622_v4 = vmax.f32 %v6534_v16, 0.0 }
 0x4de   :  { %v6649_v22 = vrot.slane %v6622_v4, %v11173_v24  ;;  %v6642_v5 = vcombine.high %v6622_v4, %v6622_v4  ;;  %v10911_v4 = vld [vmem:[#allocation6 + $0x30] sm:$0xff]  }
 0x4e0   :  { %v6657_v6 = vcombine.high %v6649_v22, %v6649_v22  ;;  %v6656_v7 = vrot.slane %v6642_v5, %v11173_v24  ;;  %v6671_v11 = vpack.c.bf16 %v6649_v22, %v6649_v22  ;;  %v10912_v5 = vld [vmem:[#allocation6 + $0x78] sm:$0xff]  }
 0x4e2   :  { %v6672_v8 = vpack.c.bf16 %v6657_v6, %v6657_v6  ;;  %v6658_v10 = vcombine.high %v6656_v7, %v6656_v7  ;;  %v6673_v50 = vpack.c.bf16 %v6656_v7, %v6656_v7 }
 0x4e4   :  { %7459 = vmatprep.mubr.bf16.mxu1 %v6672_v8  ;;  %v6674_v15 = vpack.c.bf16 %v6658_v10, %v6658_v10  ;;  %v6573_v8 = vrot.slane %v6559_v3, %v11173_v24  ;;  %v10936_v24 = vld [vmem:[#allocation6 + $0x1d8] sm:$0xff]  }
 0x4e5   :  { %7460 = vmatmul.mubr.bf16.vlgmr.msra.gmra.mrb[24].mxu1 %v6671_v11  ;;  %v10913_v11 = vld [vmem:[#allocation6 + $0x38] sm:$0xff]  }
 0x4e6   :  { %9291 = vmatpush3.bf16.msra.mxu1 %v10883_v9  ;;  %7499 = vmatprep.mubr.bf16.mxu1 %v6674_v15  ;;  %v6575_v14 = vcombine.high %v6573_v8, %v6573_v8  ;;  %v10915_v15 = vld [vmem:[#allocation6 + $0x80] sm:$0xff]  }
 0x4e7   :  { %9292 = vmatprep.subr.bf16.mxu1 %v10884_v12  ;;  %v10914_v12 = vld [vmem:[#allocation6 + $0xc0] sm:$0xff]  }
 0x4e8   :  { %v6614_v21 = vpack.c.bf16 %v6575_v14, %v6575_v14 }
 0x4ea   :  { %9293 = vmatpush3.bf16.msra.mxu1 %v10885_v17  ;;  %v6611_v17 = vpack.c.bf16 %v11242_v44, %v11242_v44 }
 0x4eb   :  { %9294 = vmatprep.subr.bf16.mxu1 %v10886_v20  ;;  %v10916_v20 = vld [vmem:[#allocation6 + $0xc8] sm:$0xff]  }
 0x4ec   :  { %v9372_v25 = vpop.f32.mrb[20].mxu0 }
 0x4ed   :  { %v9373_v27 = vpop.f32.mrb[21].mxu0 }
 0x4ee   :  { %9295 = vmatpush3.bf16.msra.mxu1 %v10887_v60  ;;  %v11239_v28 = vadd.f32 %v9373_v27, %v9372_v25  ;;  %v9375_v29 = vpop.f32.mrb[22].mxu0  ;;  %v10917_v60 = vld [vmem:[#allocation6 + $0x88] sm:$0xff]   ;;  %v10919_v25 = vld [vmem:[#allocation6 + $0x90] sm:$0xff]   ;;  %v10920_v27 = vld [vmem:[#allocation6 + $0xd8] sm:$0xff]  }
 0x4ef   :  { %v9376_v31 = vpop.f32.mrb[23].mxu0  ;;  %9296 = vmatprep.subr.bf16.mxu1 %v10888_v23  ;;  %v10918_v23 = vld [vmem:[#allocation6 + $0xd0] sm:$0xff]   ;;  %v10921_v29 = vld [vmem:[#allocation6 + $0x98] sm:$0xff]  }
 0x4f0   :  { %v10923_v31 = vld [vmem:[#allocation6 + $0xa0] sm:$0xff]  }
 0x4f2   :  { %9297 = vmatpush3.bf16.msra.mxu1 %v10889_v30  ;;  %v10922_v30 = vld [vmem:[#allocation6 + $0xe0] sm:$0xff]  }
 0x4f3   :  { %9298 = vmatprep.subr.bf16.mxu1 %v10890_v32  ;;  %v10924_v32 = vld [vmem:[#allocation6 + $0xe8] sm:$0xff]  }
 0x4f6   :  { %9299 = vmatpush3.bf16.msra.mxu1 %v10891_v33  ;;  %v10925_v33 = vld [vmem:[#allocation6 + $0xa8] sm:$0xff]  }
 0x4f7   :  { %9300 = vmatprep.subr.bf16.mxu1 %v10892_v34  ;;  %v10926_v34 = vld [vmem:[#allocation6 + $0xf0] sm:$0xff]  }
 0x4f9   :  { %v9240_v38 = vpop.f32.mrb[16].mxu1 }
 0x4fa   :  { %9301 = vmatpush3.bf16.msra.mxu1 %v10893_v36  ;;  %v9241_v43 = vpop.f32.mrb[17].mxu1  ;;  %v10927_v36 = vld [vmem:[#allocation6 + $0xb0] sm:$0xff]  }
 0x4fb   :  { %9302 = vmatprep.subr.bf16.mxu1 %v10894_v37  ;;  %v9242_v41 = vadd.f32 %v9241_v43, %v9240_v38  ;;  %v9243_v42 = vpop.f32.mrb[18].mxu1  ;;  %v10928_v37 = vld [vmem:[#allocation6 + $0xf8] sm:$0xff]   ;;  %v6592_v43 = vcombine.high %v6590_v19, %v6590_v19 }
 0x4fc   :  { %v9244_v45 = vpop.f32.mrb[19].mxu1  ;;  %v10929_v38 = vld [vmem:[#allocation6 + $0xb8] sm:$0xff]   ;;  %v10932_v42 = vld [vmem:[#allocation6 + $0x1c8] sm:$0xff]  }
 0x4fd   :  { %v6618_v44 = vpack.c.bf16 %v6592_v43, %v6592_v43  ;;  %v10934_v45 = vld [vmem:[#allocation6 + $0x1d0] sm:$0xff]  }
 0x4fe   :  { %9303 = vmatpush3.bf16.msra.mxu1 %v10895_v39  ;;  %v10930_v39 = vld [vmem:[#allocation6 + $0x1c0] sm:$0xff]  }
 0x4ff   :  { %9304 = vmatprep.subr.bf16.mxu1 %v10896_v40  ;;  %v10931_v40 = vld [vmem:[#allocation6 + $0x180] sm:$0xff]  }
 0x502   :  { %9305 = vmatpush3.bf16.msra.mxu1 %v10897_v46  ;;  %v10935_v46 = vld [vmem:[#allocation6 + $0x190] sm:$0xff]  }
 0x503   :  { %9312 = vmatprep.subr.bf16.mxu1 %v10898_v47  ;;  %v10937_v47 = vld [vmem:[#allocation6 + $0x198] sm:$0xff]  }
 0x505   :  { %7500 = vmatmul.mubr.bf16.vlgmr.msra.gmra.mrb[28].mxu1 %v6673_v50  ;;  %v10940_v50 = vld [vmem:[#allocation6 + $0x1e8] sm:$0xff]  }
 0x506   :  { %9313 = vmatpush3.bf16.msra.mxu1 %v10899_v49  ;;  %8019 = vmatprep.mubr.bf16.mxu1 %v6612_v52  ;;  %v10939_v49 = vld [vmem:[#allocation6 + $0x1a0] sm:$0xff]   ;;  %v10942_v52 = vld [vmem:[#allocation6 + $0x1f0] sm:$0xff]  }
 0x507   :  { %9314 = vmatprep.subr.bf16.mxu1 %v10900_v51  ;;  %v10941_v51 = vld [vmem:[#allocation6 + $0x1a8] sm:$0xff]  }
 0x50a   :  { %9315 = vmatpush3.bf16.msra.mxu1 %v10901_v53  ;;  %v10943_v53 = vld [vmem:[#allocation6 + $0x1b0] sm:$0xff]  }
 0x50b   :  { %9316 = vmatprep.subr.bf16.mxu1 %v10902_v54  ;;  %v10944_v54 = vld [vmem:[#allocation6 + $0x1f8] sm:$0xff]  }
 0x50c   :  { %v9416_v56 = vpop.f32.mrb[24].mxu0 }
 0x50d   :  { %v9417_v18 = vpop.f32.mrb[25].mxu0 }
 0x50e   :  { %9317 = vmatpush3.bf16.msra.mxu1 %v10903_v55  ;;  %v11246_v57 = vadd.f32 %v9417_v18, %v9416_v56  ;;  %v9419_v58 = vpop.f32.mrb[26].mxu0  ;;  %v10945_v55 = vld [vmem:[#allocation6 + $0x1b8] sm:$0xff]  }
 0x50f   :  { %v9420_v61 = vpop.f32.mrb[27].mxu0  ;;  %9318 = vmatprep.subr.bf16.mxu1 %v10904_v26  ;;  %v6617_v26 = vpack.c.bf16 %v6590_v19, %v6590_v19 }
 0x512   :  { %9319 = vmatpush3.bf16.msra.mxu1 %v10905_v59 }
 0x513   :  { %9320 = vmatprep.subr.bf16.mxu1 %v10906_v62 }
 0x516   :  { %9321 = vmatpush3.bf16.msra.mxu1 %v10907_v63 }
 0x517   :  { %9322 = vmatprep.subr.bf16.mxu1 %v10908_v0 }
 0x519   :  { %v9262_v16 = vpop.f32.mrb[20].mxu1 }
 0x51a   :  { %9323 = vmatpush3.bf16.msra.mxu1 %v10909_v1  ;;  %v9263_v22 = vpop.f32.mrb[21].mxu1 }
 0x51b   :  { %9324 = vmatprep.subr.bf16.mxu1 %v10910_v2  ;;  %v9264_v6 = vadd.f32 %v9263_v22, %v9262_v16  ;;  %v9265_v7 = vpop.f32.mrb[22].mxu1 }
 0x51c   :  { %v9266_v9 = vpop.f32.mrb[23].mxu1 }
 0x51d   :  { %v11249_v10 = vadd.f32 %v9264_v6, %v9242_v41  ;;  %v6613_v41 = vpack.c.bf16 %v6573_v8, %v6573_v8 }
 0x51e   :  { %9325 = vmatpush3.bf16.msra.mxu1 %v10911_v4 }
 0x51f   :  { %9326 = vmatprep.subr.bf16.mxu1 %v10912_v5 }
 0x522   :  { %9327 = vmatpush3.bf16.msra.mxu1 %v10913_v11 }
 0x523   :  { %9334 = vmatprep.subr.bf16.mxu1 %v10914_v12 }
 0x525   :  { %8020 = vmatmul.mubr.bf16.vlgmr.msra.gmra.mrb[32].mxu1 %v6611_v17 }
 0x526   :  { %9335 = vmatpush3.bf16.msra.mxu1 %v10915_v15  ;;  %8059 = vmatprep.mubr.bf16.mxu1 %v6614_v21 }
 0x527   :  { %9336 = vmatprep.subr.bf16.mxu1 %v10916_v20 }
 0x52a   :  { %9337 = vmatpush3.bf16.msra.mxu1 %v10917_v60 }
 0x52b   :  { %9338 = vmatprep.subr.bf16.mxu1 %v10918_v23 }
 0x52e   :  { %9339 = vmatpush3.bf16.msra.mxu1 %v10919_v25 }
 0x52f   :  { %9340 = vmatprep.subr.bf16.mxu1 %v10920_v27 }
 0x532   :  { %9341 = vmatpush3.bf16.msra.mxu1 %v10921_v29  ;;  %v9223_v29 = vld [vmem:[#allocation8] ss:$0 sm:$0xff] }
 0x533   :  { %9342 = vmatprep.subr.bf16.mxu1 %v10922_v30 }
 0x536   :  { %9343 = vmatpush3.bf16.msra.mxu1 %v10923_v31 }
 0x537   :  { %9344 = vmatprep.subr.bf16.mxu1 %v10924_v32 }
 0x53a   :  { %9345 = vmatpush3.bf16.msra.mxu1 %v10925_v33 }
 0x53b   :  { %9346 = vmatprep.subr.bf16.mxu1 %v10926_v34 }
 0x53e   :  { %9347 = vmatpush3.bf16.msra.mxu1 %v10927_v36 }
 0x53f   :  { %9348 = vmatprep.subr.bf16.mxu1 %v10928_v37 }
 0x542   :  { %9349 = vmatpush3.bf16.msra.mxu1 %v10929_v38 }
 0x543   :  { %9378 = vmatprep.subr.bf16.mxu1 %v10930_v39 }
 0x545   :  { %8060 = vmatmul.mubr.bf16.vlgmr.msra.gmra.mrb[36].mxu1 %v6613_v41 }
 0x546   :  { %9379 = vmatpush3.bf16.msra.mxu1 %v10931_v40  ;;  %8139 = vmatprep.mubr.bf16.mxu1 %v6618_v44 }
 0x547   :  { %9380 = vmatprep.subr.bf16.mxu1 %v10932_v42 }
 0x54a   :  { %9381 = vmatpush3.bf16.msra.mxu1 %v10933_v13 }
 0x54b   :  { %9382 = vmatprep.subr.bf16.mxu1 %v10934_v45 }
 0x54e   :  { %9383 = vmatpush3.bf16.msra.mxu1 %v10935_v46 }
 0x54f   :  { %9384 = vmatprep.subr.bf16.mxu1 %v10936_v24 }
 0x552   :  { %9385 = vmatpush3.bf16.msra.mxu1 %v10937_v47 }
 0x553   :  { %9386 = vmatprep.subr.bf16.mxu1 %v10938_v48 }
 0x556   :  { %9387 = vmatpush3.bf16.msra.mxu1 %v10939_v49 }
 0x557   :  { %9388 = vmatprep.subr.bf16.mxu1 %v10940_v50 }
 0x55a   :  { %9389 = vmatpush3.bf16.msra.mxu1 %v10941_v51 }
 0x55b   :  { %9390 = vmatprep.subr.bf16.mxu1 %v10942_v52 }
 0x55e   :  { %9391 = vmatpush3.bf16.msra.mxu1 %v10943_v53 }
 0x55f   :  { %9392 = vmatprep.subr.bf16.mxu1 %v10944_v54 }
 0x562   :  { %9393 = vmatpush3.bf16.msra.mxu1 %v10945_v55 }
 0x565   :  { %8140 = vmatmul.mubr.bf16.vlgmr.msra.gmra.mrb[40].mxu1 %v6617_v26 }
 0x5b8   :  { %v9284_v56 = vpop.f32.mrb[24].mxu1 }
 0x5b9   :  { %v9285_v18 = vpop.f32.mrb[25].mxu1 }
 0x5ba   :  { %v9286_v58 = vadd.f32 %v9285_v18, %v9284_v56  ;;  %v9287_v59 = vpop.f32.mrb[26].mxu1 }
 0x5bb   :  { %v9288_v61 = vpop.f32.mrb[27].mxu1 }
 0x5bc   :  { %v7462_v62 = vadd.f32 %v9286_v58, %v11249_v10 }
 0x5d8   :  { %v9306_v63 = vpop.f32.mrb[28].mxu1 }
 0x5d9   :  { %v9307_v0 = vpop.f32.mrb[29].mxu1 }
 0x5da   :  { %v9308_v1 = vadd.f32 %v9307_v0, %v9306_v63  ;;  %v9309_v2 = vpop.f32.mrb[30].mxu1 }
 0x5db   :  { %v9310_v3 = vpop.f32.mrb[31].mxu1 }
 0x5dc   :  { %v7502_v16 = vadd.f32 %v9308_v1, %v7462_v62 }
 0x5f8   :  { %v9328_v4 = vpop.f32.mrb[32].mxu1 }
 0x5f9   :  { %v9329_v22 = vpop.f32.mrb[33].mxu1 }
 0x5fa   :  { %v9330_v5 = vadd.f32 %v9329_v22, %v9328_v4  ;;  %v9331_v6 = vpop.f32.mrb[34].mxu1 }
 0x5fb   :  { %v9332_v7 = vpop.f32.mrb[35].mxu1 }
 0x5fc   :  { %v8022_v8 = vadd.f32 %v9330_v5, %v7502_v16 }
 0x618   :  { %v9350_v9 = vpop.f32.mrb[36].mxu1 }
 0x619   :  { %v9351_v11 = vpop.f32.mrb[37].mxu1 }
 0x61a   :  { %v9352_v12 = vadd.f32 %v9351_v11, %v9350_v9  ;;  %v9353_v14 = vpop.f32.mrb[38].mxu1 }
 0x61b   :  { %v9354_v15 = vpop.f32.mrb[39].mxu1 }
 0x61c   :  { %v8062_v17 = vadd.f32 %v9352_v12, %v8022_v8 }
 0x61e   :  { %v8102_v10 = vadd.f32 %v11239_v28, %v8062_v17 }
 0x638   :  { %v9394_v20 = vpop.f32.mrb[40].mxu1 }
 0x639   :  { %v9395_v21 = vpop.f32.mrb[41].mxu1 }
 0x63a   :  { %v9396_v60 = vadd.f32 %v9395_v21, %v9394_v20  ;;  %v9397_v23 = vpop.f32.mrb[42].mxu1 }
 0x63b   :  { %v9398_v25 = vpop.f32.mrb[43].mxu1 }
 0x63c   :  { %v8142_v27 = vadd.f32 %v9396_v60, %v8102_v10 }
 0x63e   :  { %v8182_v30 = vadd.f32 %v11246_v57, %v8142_v27 }
 0x640   :  { %v8194_v31 = vadd.f32 %v9223_v29, %v8182_v30 }
 0x642   :  { %8195 = vst [vmem:[#allocation9] sm:$0x3] %v8194_v31 }
 0x643   :  { %11035 = shalt.err (!%p11032_p0)
}
 0x644   :  { %s11036_s7 = scalar_lea.hbm %s11275_s4, 32 }
 0x645   :  { %p11037_p1 = scmp.ne.s32.totalorder %s11275_s4, %s11036_s7  ;;  %p11040_p2 = scmp.lt.u32.totalorder %s11036_s7, %s11275_s4 }
 0x647   :  { %p11042_p3 = pnand %p11040_p2, %p11037_p1 }
 0x649   :  { %11045 = shalt.err (!%p11042_p3)
}
 0x64a   :  { %8205 = dma.vmem_to_hbm [thread:$0]  %s8203_s29, 32, %s11275_s4, [#allocation5]  }
 0x64b   :  { %11050 = dma.done.wait [#allocation5], 32  }
 0x64c   :  { %11051 = vsyncadd [#allocation5], 4294967264 }
 0x64d   :  { %8209 = vsyncpa [#allocation4], 1 }
 0x64e   :  { %8210 = vsyncpa [#allocation7], 1 }
 0x64f   :  { %8211 = vsyncpa [#allocation5], 1 }

</bundles_post_ra>
